<compile_context>
chip_gen: v6e
topology: v6e:2x2x1
jax: 0.10.0
libtpu: 0.0.40
codegen_flags: <defaults>
</compile_context>

<pallas_src>
import functools
import math

import jax
import jax.numpy as jnp
from jax.experimental import pallas as pl
from jax.experimental.pallas import tpu as pltpu


# ---------------------------------------------------------------------------
# in-kernel helpers (operate on values already resident in vregs/VMEM)
# ---------------------------------------------------------------------------
def _ln_f32(x, g, b, eps):
    """PyTorch nn.LayerNorm over last dim (biased variance), f32 statistics."""
    mean = jnp.mean(x, axis=-1, keepdims=True)
    var = jnp.mean(jnp.square(x - mean), axis=-1, keepdims=True)
    return (x - mean) * jax.lax.rsqrt(var + eps) * g + b


def _conv1d_same(x, w_flat, bias, ksize, relu):
    """'same'-padded 1-D conv as one im2col matmul.

    The im2col taps are built with pltpu.roll (XLU sublane rotate) + a static
    row mask instead of sublane-misaligned slices of a zero-padded buffer.

    x: [T, Cin] f32; w_flat: [ksize*Cin, Cout]; bias: [1, Cout].
    """
    T, _ = x.shape
    if ksize == 1:
        cols = x
    else:
        pad = (ksize - 1) // 2
        rows = jax.lax.broadcasted_iota(jnp.int32, (T, 1), 0)
        taps = []
        for kk in range(ksize):
            off = kk - pad                      # source offset: x[t + off]
            if off == 0:
                taps.append(x)
                continue
            sh = (-off) % T                     # rolled[t] = x[(t + off) mod T]
            shifted = x if sh == 0 else pltpu.roll(x, shift=sh, axis=0)
            src = rows + off
            taps.append(jnp.where((src >= 0) & (src < T), shifted, 0.0))
        cols = jnp.concatenate(taps, axis=-1)   # [T, K*Cin]
    y = jnp.dot(cols, w_flat, preferred_element_type=jnp.float32) + bias
    if relu:
        y = jnp.maximum(y, 0.0)
    return y


# ---------------------------------------------------------------------------
# Pallas kernels
# ---------------------------------------------------------------------------
def _fft_stack_kernel(lens_ref, x_ref, *refs,
                      nh, dk, dv, k1, k2, eps, bb, project_out):
    """Whole FFT stack (grid axis 1 = layer) for one block of `bb` batch rows.

    The running activation lives in the VMEM scratch `h_ref` across the layer
    axis; only the final result (hidden state, or the fused mel projection for
    the decoder) is written back to HBM.
    """
    if project_out:
        (qkvw_ref, qkvb_ref, fcw_ref, fcb_ref, g1_ref, be1_ref,
         w1_ref, b1_ref, w2_ref, b2_ref, g2_ref, be2_ref,
         melw_ref, melb_ref, o_ref, h_ref) = refs
    else:
        (qkvw_ref, qkvb_ref, fcw_ref, fcb_ref, g1_ref, be1_ref,
         w1_ref, b1_ref, w2_ref, b2_ref, g2_ref, be2_ref,
         o_ref, h_ref) = refs

    b = pl.program_id(0)
    l = pl.program_id(1)
    n_layers = pl.num_programs(1)
    _, T, D = x_ref.shape
    dq, dvt = nh * dk, nh * dv
    scale = 1.0 / math.sqrt(dk)

    # layer 0: pull the activation block into the persistent VMEM scratch
    @pl.when(l == 0)
    def _():
        h_ref[...] = x_ref[...].reshape(bb * T, D)

    x = h_ref[...]                                        # [bb*T, D]

    # row-validity mask from the scalar-prefetched lengths (no HBM mask tensor)
    pos = jax.lax.broadcasted_iota(jnp.int32, (T, 1), 0)
    valids = []
    for bi in range(bb):
        sl = lens_ref[b * bb + bi]
        valids.append((pos < sl).astype(jnp.float32))
    valid = jnp.concatenate(valids, axis=0)               # [bb*T, 1]

    # ---- multi-head self-attention (fused QKV projection, flattened batch) ----
    qkv = jnp.dot(x, qkvw_ref[0], preferred_element_type=jnp.float32) + qkvb_ref[0]
    key_pos = jax.lax.broadcasted_iota(jnp.int32, (T, T), 1)
    # TODO(synk): for production T (~1000) tile the KV axis with an online
    # softmax; the full [T,T] intermediates below only fit VMEM at small T.
    attn_rows = []
    for bi in range(bb):
        sl = lens_ref[b * bb + bi]
        qkv_b = qkv[bi * T:(bi + 1) * T, :]
        heads = []
        for h in range(nh):
            qh = qkv_b[:, h * dk:(h + 1) * dk]
            kh = qkv_b[:, dq + h * dk:dq + (h + 1) * dk]
            vh = qkv_b[:, 2 * dq + h * dv:2 * dq + (h + 1) * dv]
            # q @ k^T without relayout of k (contract the last dims)
            s = jax.lax.dot_general(
                qh, kh, dimension_numbers=(((1,), (1,)), ((), ())),
                preferred_element_type=jnp.float32) * scale
            s = jnp.where(key_pos < sl, s, -1e9)          # mask folded into scores
            s = s - jnp.max(s, axis=-1, keepdims=True)
            e = jnp.exp(s)
            p = e * pl.reciprocal(jnp.sum(e, axis=-1, keepdims=True), approx=True)
            heads.append(jnp.dot(p, vh, preferred_element_type=jnp.float32))
        attn_rows.append(jnp.concatenate(heads, axis=-1))  # [T, nh*dv]
    attn = jnp.concatenate(attn_rows, axis=0)               # [bb*T, nh*dv]
    attn = jnp.dot(attn, fcw_ref[0], preferred_element_type=jnp.float32) + fcb_ref[0]
    a1 = _ln_f32(attn + x, g1_ref[0], be1_ref[0], eps) * valid

    # ---- position-wise conv FFN (per batch row block, no cross-b leakage) ----
    ffn_rows = []
    for bi in range(bb):
        ab = a1[bi * T:(bi + 1) * T, :]
        hh = _conv1d_same(ab, w1_ref[0], b1_ref[0], k1, relu=True)
        hh = _conv1d_same(hh, w2_ref[0], b2_ref[0], k2, relu=False)
        ffn_rows.append(hh)
    ffn = jnp.concatenate(ffn_rows, axis=0)
    out = _ln_f32(ffn + a1, g2_ref[0], be2_ref[0], eps) * valid

    h_ref[...] = out                                       # stays resident

    @pl.when(l == n_layers - 1)
    def _():
        if project_out:   # fused mel projection epilogue (decoder)
            mel = (jnp.dot(out, melw_ref[...], preferred_element_type=jnp.float32)
                   + melb_ref[...])
            o_ref[...] = mel.reshape(bb, T, melw_ref.shape[1])
        else:             # encoder: emit the hidden state
            o_ref[...] = out.reshape(bb, T, D)


def _var_predictor_kernel(lens_ref, x_ref,
                          w1_ref, b1_ref, g1_ref, be1_ref,
                          w2_ref, b2_ref, g2_ref, be2_ref,
                          lw_ref, lb_ref, o_ref, *, ksize, eps, bb, npred):
    """`npred` fused VariancePredictors (conv+ReLU+LN, conv+ReLU+LN, linear,
    mask) sharing the same input block.  Output is [bb, npred, T] with time on
    lanes (lane-dense store)."""
    b = pl.program_id(0)
    _, T, _ = x_ref.shape
    per_b = []
    for bi in range(bb):
        sl = lens_ref[b * bb + bi]
        validT = (jax.lax.broadcasted_iota(jnp.int32, (1, T), 1) < sl
                  ).astype(jnp.float32)                    # [1, T]
        xb = x_ref[bi]                                     # [T, D]
        rows = []
        for p in range(npred):
            hh = _conv1d_same(xb, w1_ref[p], b1_ref[p], ksize, relu=True)
            hh = _ln_f32(hh, g1_ref[p], be1_ref[p], eps)
            hh = _conv1d_same(hh, w2_ref[p], b2_ref[p], ksize, relu=True)
            hh = _ln_f32(hh, g2_ref[p], be2_ref[p], eps)
            # head is stored as [1, F]; lin_w @ h^T gives [1, T] directly
            predT = jax.lax.dot_general(
                lw_ref[p], hh, dimension_numbers=(((1,), (1,)), ((), ())),
                preferred_element_type=jnp.float32) + lb_ref[p]
            rows.append(predT * validT)                    # [1, T]
        per_b.append(jnp.concatenate(rows, axis=0))        # [npred, T]
    o_ref[...] = jnp.stack(per_b, axis=0)                  # [bb, npred, T]


# ---------------------------------------------------------------------------
# kernel wrappers
# ---------------------------------------------------------------------------
def _batch_block(batch):
    """Batch rows per grid step; keep >=2 'parallel' steps when possible so
    v7x's two TensorCores both get work (no effect / no harm on v5e/v6e)."""
    if batch >= 2 and batch % 2 == 0:
        return batch // 2
    return 1


_FFT_W_NAMES = (('attn', 'qkv_w'), ('attn', 'qkv_b'), ('attn', 'fc_w'),
                ('attn', 'fc_b'), ('attn', 'ln_g'), ('attn', 'ln_b'),
                ('ffn', 'w1'), ('ffn', 'b1'), ('ffn', 'w2'), ('ffn', 'b2'),
                ('ffn', 'ln_g'), ('ffn', 'ln_b'))


def _fft_cost_estimate(B, T, D, L, cfg, n_out, weights):
    nh, dk, dv = cfg['n_head'], cfg['d_k'], cfg['d_v']
    d_inner = cfg['d_inner']
    k1, k2 = cfg['fft_kernels']
    dq, dvt = nh * dk, nh * dv
    per_row = (2 * D * (2 * dq + dvt) + 2 * dvt * D
               + 2 * k1 * D * d_inner + 2 * k2 * d_inner * D)
    attn = nh * (2 * T * T * dk + 2 * T * T * dv)
    flops = L * (B * T * per_row + B * attn) + 2 * B * T * D * n_out
    trans = L * B * nh * T * T
    bytes_accessed = (4 * (B * T * D + B * T * n_out)
                      + 4 * sum(int(w.size) for w in weights))
    return pl.CostEstimate(flops=int(flops), transcendentals=int(trans),
                           bytes_accessed=int(bytes_accessed))


def pallas_fft_stack(x, lens, layers, cfg, mel_proj=None):
    """Runs a whole FFT stack (and, optionally, the fused mel projection) in a
    single pallas_call.  x: [B, T, D] f32; lens: [B] int32."""
    B, T, D = x.shape
    L = len(layers)
    bb = _batch_block(B)
    nb = B // bb
    k1, k2 = cfg['fft_kernels']

    stacked = [jnp.stack([lp[g][n] for lp in layers], axis=0)
               for (g, n) in _FFT_W_NAMES]
    project_out = mel_proj is not None
    if project_out:
        extra = [mel_proj[0], mel_proj[1]]
        n_out = int(mel_proj[0].shape[1])
    else:
        extra = []
        n_out = D

    in_specs = [pl.BlockSpec((bb, T, D), lambda b, l, lens_ref: (b, 0, 0))]
    in_specs += [pl.BlockSpec((1,) + w.shape[1:],
                              lambda b, l, lens_ref, _nd=w.ndim:
                              (l,) + (0,) * (_nd - 1))
                 for w in stacked]
    in_specs += [pl.BlockSpec(w.shape,
                              lambda b, l, lens_ref, _nd=w.ndim: (0,) * _nd)
                 for w in extra]

    grid_spec = pltpu.PrefetchScalarGridSpec(
        num_scalar_prefetch=1, grid=(nb, L),
        in_specs=in_specs,
        out_specs=pl.BlockSpec((bb, T, n_out), lambda b, l, lens_ref: (b, 0, 0)),
        scratch_shapes=[pltpu.VMEM((bb * T, D), jnp.float32)])

    kernel = functools.partial(
        _fft_stack_kernel, nh=cfg['n_head'], dk=cfg['d_k'], dv=cfg['d_v'],
        k1=k1, k2=k2, eps=1e-5, bb=bb, project_out=project_out)

    return pl.pallas_call(
        kernel,
        grid_spec=grid_spec,
        out_shape=jax.ShapeDtypeStruct((B, T, n_out), jnp.float32),
        compiler_params=pltpu.CompilerParams(
            dimension_semantics=("parallel", "arbitrary"),
            vmem_limit_bytes=32 * 1024 * 1024),
        cost_estimate=_fft_cost_estimate(B, T, D, L, cfg, n_out, stacked + extra),
    )(lens.astype(jnp.int32), x, *stacked, *extra)


_VP_W_NAMES = ('w1', 'b1', 'ln1_g', 'ln1_b', 'w2', 'b2', 'ln2_g', 'ln2_b',
               'lin_w', 'lin_b')


def pallas_variance_predictors(x, lens, predictors, cfg):
    """Runs len(predictors) VariancePredictors over the same input in one fused
    launch.  Returns [B, n_pred, T] (time on lanes; padded positions zeroed)."""
    B, T, D = x.shape
    P = len(predictors)
    bb = _batch_block(B)
    nb = B // bb

    stacked = [jnp.stack([p[n] for p in predictors], axis=0) for n in _VP_W_NAMES]

    in_specs = [pl.BlockSpec((bb, T, D), lambda b, lens_ref: (b, 0, 0))]
    in_specs += [pl.BlockSpec(w.shape, lambda b, lens_ref, _nd=w.ndim: (0,) * _nd)
                 for w in stacked]

    grid_spec = pltpu.PrefetchScalarGridSpec(
        num_scalar_prefetch=1, grid=(nb,),
        in_specs=in_specs,
        out_specs=pl.BlockSpec((bb, P, T), lambda b, lens_ref: (b, 0, 0)))

    F, k = cfg['vp_filter'], cfg['vp_kernel']
    flops = P * B * T * (2 * k * D * F + 2 * k * F * F + 2 * F)
    bytes_accessed = (4 * (B * T * D + B * P * T)
                      + 4 * sum(int(w.size) for w in stacked))
    cost = pl.CostEstimate(flops=int(flops), transcendentals=0,
                           bytes_accessed=int(bytes_accessed))

    return pl.pallas_call(
        functools.partial(_var_predictor_kernel,
                          ksize=k, eps=1e-5, bb=bb, npred=P),
        grid_spec=grid_spec,
        out_shape=jax.ShapeDtypeStruct((B, P, T), jnp.float32),
        compiler_params=pltpu.CompilerParams(
            dimension_semantics=("parallel",),
            vmem_limit_bytes=32 * 1024 * 1024),
        cost_estimate=cost,
    )(lens.astype(jnp.int32), x, *stacked)


# ---------------------------------------------------------------------------
# Model glue (plain JAX: embedding gathers, bucketize, length regulator)
# ---------------------------------------------------------------------------
CFG = dict(
    n_vocab=20, d_model=32, n_enc_layers=2, n_dec_layers=2, n_head=2,
    d_k=16, d_v=16, d_inner=64, fft_kernels=(9, 1),
    vp_filter=32, vp_kernel=3, n_bins=8, n_mel=8, n_speakers=4,
    max_seq_len=1000,
)


def sinusoid_table(n_position, d_hid):
    pos = jnp.arange(n_position, dtype=jnp.float32)[:, None]
    i = jnp.arange(d_hid)[None, :]
    angle = pos / jnp.power(10000.0, (2 * (i // 2)).astype(jnp.float32) / d_hid)
    return jnp.where(i % 2 == 0, jnp.sin(angle), jnp.cos(angle)).astype(jnp.float32)


def init_params(key, cfg):
    d = cfg['d_model']
    nh, dk, dv = cfg['n_head'], cfg['d_k'], cfg['d_v']
    keys = iter(jax.random.split(key, 512))

    def nrm(shape, scale=0.05):
        return scale * jax.random.normal(next(keys), shape, dtype=jnp.float32)

    zeros = lambda s: jnp.zeros(s, jnp.float32)
    ones = lambda s: jnp.ones(s, jnp.float32)

    def attn_params():
        dq, dvt = nh * dk, nh * dv
        return dict(
            qkv_w=nrm((d, 2 * dq + dvt)), qkv_b=zeros((1, 2 * dq + dvt)),
            fc_w=nrm((dvt, d)), fc_b=zeros((1, d)),
            ln_g=ones((1, d)), ln_b=zeros((1, d)),
        )

    def ffn_params():
        k1, k2 = cfg['fft_kernels']
        return dict(
            w1=nrm((k1 * d, cfg['d_inner'])), b1=zeros((1, cfg['d_inner'])),
            w2=nrm((k2 * cfg['d_inner'], d)), b2=zeros((1, d)),
            ln_g=ones((1, d)), ln_b=zeros((1, d)),
        )

    def fft_stack(n):
        return [dict(attn=attn_params(), ffn=ffn_params()) for _ in range(n)]

    def vp_params():
        f, k = cfg['vp_filter'], cfg['vp_kernel']
        return dict(
            w1=nrm((k * d, f)), b1=zeros((1, f)),
            ln1_g=ones((1, f)), ln1_b=zeros((1, f)),
            w2=nrm((k * f, f)), b2=zeros((1, f)),
            ln2_g=ones((1, f)), ln2_b=zeros((1, f)),
            lin_w=nrm((1, f)), lin_b=zeros((1, 1)),      # stored as [1, F] row
        )

    src_emb = nrm((cfg['n_vocab'], d)).at[0].set(0.0)   # padding_idx = 0
    pos_enc = sinusoid_table(cfg['max_seq_len'] + 1, d)

    return dict(
        encoder=dict(src_emb=src_emb, pos_enc=pos_enc,
                     layers=fft_stack(cfg['n_enc_layers'])),
        decoder=dict(pos_enc=pos_enc, layers=fft_stack(cfg['n_dec_layers'])),
        va=dict(
            duration=vp_params(), pitch=vp_params(), energy=vp_params(),
            pitch_bins=jnp.linspace(-1.0, 1.0, cfg['n_bins'] - 1),
            energy_bins=jnp.linspace(-1.0, 1.0, cfg['n_bins'] - 1),
            pitch_embedding=nrm((cfg['n_bins'], d)),
            energy_embedding=nrm((cfg['n_bins'], d)),
        ),
        # TODO(synk): tvcgmm mixture head (n_mel * k * 10 outputs) not
        # implemented; plain n_mel head only.
        mel_w=nrm((d, cfg['n_mel'])), mel_b=zeros((1, cfg['n_mel'])),
        speaker_emb=nrm((cfg['n_speakers'], d)),
    )


def get_mask_from_lengths(lengths, max_len):
    ids = jnp.arange(max_len)[None, :]
    return ids >= lengths[:, None]            # True = padded


def encoder_forward(ep, texts, src_lens, cfg):
    _, T = texts.shape
    x = ep['src_emb'][texts] + ep['pos_enc'][:T][None, :, :]
    return pallas_fft_stack(x, src_lens, ep['layers'], cfg)


def decoder_forward(dp, mel_w, mel_b, x, mel_lens, cfg):
    T = x.shape[1]
    out = x + dp['pos_enc'][:T][None, :, :]
    # decoder stack + mel projection fused into one pallas_call
    return pallas_fft_stack(out, mel_lens, dp['layers'], cfg,
                            mel_proj=(mel_w, mel_b))


def length_regulator(x, durations, max_len):
    B, T, D = x.shape
    cum = jnp.cumsum(durations, axis=1)                    # [B, T]
    mel_len = cum[:, -1]
    frames = jnp.arange(max_len)
    idx = jnp.sum(frames[None, :, None] >= cum[:, None, :], axis=-1)   # [B, max_len]
    idx = jnp.clip(idx, 0, T - 1)
    out = jax.vmap(lambda xb, ib: xb[ib])(x, idx)           # [B, max_len, D]
    valid = (frames[None, :] < mel_len[:, None]).astype(x.dtype)
    return out * valid[..., None], mel_len


def variance_adaptor(vap, x, src_lens, mel_mask, max_mel_len,
                     p_targets, e_targets, d_targets, cfg):
    # teacher-forced (targets given) branch of the PyTorch VarianceAdaptor
    dp_out = pallas_variance_predictors(
        x, src_lens, [vap['duration'], vap['pitch']], cfg)          # [B, 2, T]
    log_d_pred = dp_out[:, 0, :]
    pitch_pred = dp_out[:, 1, :]
    x = x + vap['pitch_embedding'][
        jnp.searchsorted(vap['pitch_bins'], p_targets, side='left')]
    energy_pred = pallas_variance_predictors(
        x, src_lens, [vap['energy']], cfg)[:, 0, :]
    x = x + vap['energy_embedding'][
        jnp.searchsorted(vap['energy_bins'], e_targets, side='left')]
    x, mel_len = length_regulator(x, d_targets, max_mel_len)
    duration_rounded = d_targets
    # TODO(synk): inference branch (d_targets=None) needs a dynamic output
    # length (round(exp(log_d)-1)*d_control) with no static-shape Pallas
    # equivalent.
    return x, pitch_pred, energy_pred, log_d_pred, duration_rounded, mel_len, mel_mask


def fastspeech2_forward(params, cfg, speakers, texts, src_lens, max_src_len,
                        mel_lens, max_mel_len, p_targets, e_targets, d_targets):
    src_masks = get_mask_from_lengths(src_lens, max_src_len)
    mel_masks = get_mask_from_lengths(mel_lens, max_mel_len)
    enc = encoder_forward(params['encoder'], texts, src_lens, cfg)
    enc = enc + params['speaker_emb'][speakers][:, None, :]     # multi_speaker
    (x, pitch_pred, energy_pred, log_d_pred, dur_rounded, mel_lens_out,
     mel_masks_out) = variance_adaptor(params['va'], enc, src_lens, mel_masks,
                                       max_mel_len, p_targets, e_targets,
                                       d_targets, cfg)
    value_pred = decoder_forward(params['decoder'], params['mel_w'],
                                 params['mel_b'], x, mel_lens, cfg)
    return (value_pred, pitch_pred, energy_pred, log_d_pred, dur_rounded,
            src_masks, mel_masks_out, src_lens, mel_lens_out)


# ---------------------------------------------------------------------------
if __name__ == "__main__":
    cfg = CFG
    key = jax.random.PRNGKey(0)
    kp, kt, kd, kpit, ken = jax.random.split(key, 5)
    params = init_params(kp, cfg)

    B, T_src = 2, 8
    src_lens = jnp.array([8, 6], dtype=jnp.int32)
    max_src_len = T_src
    pad_mask = jnp.arange(T_src)[None, :] >= src_lens[:, None]

    texts = jax.random.randint(kt, (B, T_src), 1, cfg['n_vocab'], dtype=jnp.int32)
    texts = jnp.where(pad_mask, 0, texts)
    speakers = jnp.array([0, 3], dtype=jnp.int32)

    d_targets = jax.random.randint(kd, (B, T_src), 1, 4, dtype=jnp.int32)
    d_targets = jnp.where(pad_mask, 0, d_targets)
    mel_lens = jnp.sum(d_targets, axis=1).astype(jnp.int32)
    # bucket the decoder length up to a multiple of 8 (f32 sublane tile and
    # avoids a retrace per distinct mel length)
    max_mel_len = int(-(-int(jnp.max(mel_lens)) // 8) * 8)

    p_targets = jax.random.uniform(kpit, (B, T_src), minval=-1.0, maxval=1.0)
    e_targets = jax.random.uniform(ken, (B, T_src), minval=-1.0, maxval=1.0)

    fwd = jax.jit(functools.partial(fastspeech2_forward, params, cfg),
                  static_argnums=(3, 5))
    outs = fwd(speakers, texts, src_lens, max_src_len,
               mel_lens, max_mel_len, p_targets, e_targets, d_targets)
    outs = jax.block_until_ready(outs)

    value_pred = outs[0]
    assert value_pred.shape == (B, max_mel_len, cfg['n_mel'])
    assert outs[1].shape == (B, T_src)          # pitch predictions
    assert outs[3].shape == (B, T_src)          # log duration predictions
    print("KERNEL_OK")
</pallas_src>

<mosaic_0001>
module attributes {stable_mosaic.version = 11 : i64} {
  func.func @_fft_stack_kernel(%arg0: i32, %arg1: i32, %arg2: memref<2xi32, #tpu.memory_space<smem>>, %arg3: memref<1x8x32xf32, #tpu.memory_space<vmem>>, %arg4: memref<1x32x96xf32, #tpu.memory_space<vmem>>, %arg5: memref<1x1x96xf32, #tpu.memory_space<vmem>>, %arg6: memref<1x32x32xf32, #tpu.memory_space<vmem>>, %arg7: memref<1x1x32xf32, #tpu.memory_space<vmem>>, %arg8: memref<1x1x32xf32, #tpu.memory_space<vmem>>, %arg9: memref<1x1x32xf32, #tpu.memory_space<vmem>>, %arg10: memref<1x288x64xf32, #tpu.memory_space<vmem>>, %arg11: memref<1x1x64xf32, #tpu.memory_space<vmem>>, %arg12: memref<1x64x32xf32, #tpu.memory_space<vmem>>, %arg13: memref<1x1x32xf32, #tpu.memory_space<vmem>>, %arg14: memref<1x1x32xf32, #tpu.memory_space<vmem>>, %arg15: memref<1x1x32xf32, #tpu.memory_space<vmem>>, %arg16: memref<1x8x32xf32, #tpu.memory_space<vmem>>, %arg17: memref<8x32xf32, #tpu.memory_space<vmem>>) attributes {dimension_semantics = [#tpu.dimension_semantics<parallel>, #tpu.dimension_semantics<arbitrary>], iteration_bounds = array<i64: 2, 2>, scalar_prefetch = 1 : i64, scratch_operands = 1 : i64, tpu.core_type = #tpu.core_type<tc>, window_params = [{transform_indices = @transform_0, window_bounds = array<i64: 1, 8, 32>}, {transform_indices = @transform_1, window_bounds = array<i64: 1, 32, 96>}, {transform_indices = @transform_2, window_bounds = array<i64: 1, 1, 96>}, {transform_indices = @transform_3, window_bounds = array<i64: 1, 32, 32>}, {transform_indices = @transform_4, window_bounds = array<i64: 1, 1, 32>}, {transform_indices = @transform_5, window_bounds = array<i64: 1, 1, 32>}, {transform_indices = @transform_6, window_bounds = array<i64: 1, 1, 32>}, {transform_indices = @transform_7, window_bounds = array<i64: 1, 288, 64>}, {transform_indices = @transform_8, window_bounds = array<i64: 1, 1, 64>}, {transform_indices = @transform_9, window_bounds = array<i64: 1, 64, 32>}, {transform_indices = @transform_10, window_bounds = array<i64: 1, 1, 32>}, {transform_indices = @transform_11, window_bounds = array<i64: 1, 1, 32>}, {transform_indices = @transform_12, window_bounds = array<i64: 1, 1, 32>}, {transform_indices = @transform_13, window_bounds = array<i64: 1, 8, 32>}]} {
    %c0_i32 = arith.constant 0 : i32
    %0 = arith.cmpi eq, %arg1, %c0_i32 : i32
    %1 = arith.extui %0 : i1 to i32
    %c0_i32_0 = arith.constant 0 : i32
    %2 = arith.cmpi ne, %1, %c0_i32_0 : i32
    scf.if %2 {
      %c0_100 = arith.constant 0 : index
      %c0_101 = arith.constant 0 : index
      %c0_102 = arith.constant 0 : index
      %251 = vector.load %arg3[%c0_100, %c0_101, %c0_102] : memref<1x8x32xf32, #tpu.memory_space<vmem>>, vector<1x8x32xf32>
      %252 = vector.shape_cast %251 : vector<1x8x32xf32> to vector<8x32xf32>
      %c0_103 = arith.constant 0 : index
      %c0_104 = arith.constant 0 : index
      %253 = vector.load %arg17[%c0_103, %c0_104] : memref<8x32xf32, #tpu.memory_space<vmem>>, vector<8x32xf32>
      tpu.vector_store %arg17[%c0_103, %c0_104], %252 {strides = array<i32>} : memref<8x32xf32, #tpu.memory_space<vmem>>, vector<8x32xf32>,
    } else {
    }
    %c0 = arith.constant 0 : index
    %c0_1 = arith.constant 0 : index
    %3 = vector.load %arg17[%c0, %c0_1] : memref<8x32xf32, #tpu.memory_space<vmem>>, vector<8x32xf32>
    %4 = tpu.iota {dimensions = array<i32: 0>} : vector<8x1xi32>
    %c1_i32 = arith.constant 1 : i32
    %5 = arith.muli %arg0, %c1_i32 : i32
    %c0_i32_2 = arith.constant 0 : i32
    %6 = arith.addi %5, %c0_i32_2 : i32
    %7 = arith.index_cast %6 : i32 to index
    %8 = memref.load %arg2[%7] : memref<2xi32, #tpu.memory_space<smem>>
    %9 = vector.broadcast %8 : i32 to vector<8x1xi32>
    %10 = arith.cmpi slt, %4, %9 : vector<8x1xi32>
    %11 = arith.extui %10 : vector<8x1xi1> to vector<8x1xi32>
    %12 = arith.sitofp %11 : vector<8x1xi32> to vector<8x1xf32>
    %c0_3 = arith.constant 0 : index
    %c0_4 = arith.constant 0 : index
    %c0_5 = arith.constant 0 : index
    %13 = vector.load %arg4[%c0_3, %c0_4, %c0_5] : memref<1x32x96xf32, #tpu.memory_space<vmem>>, vector<1x32x96xf32>
    %14 = vector.shape_cast %13 : vector<1x32x96xf32> to vector<32x96xf32>
    %cst = arith.constant dense<0.000000e+00> : vector<8x96xf32>
    %15 = tpu.matmul %3, %14, %cst {dimension_numbers = #tpu.dot_dimension_numbers<[1], [0], [0], [1], [0, 0, 1, 1], [], []>} : vector<8x32xf32>, vector<32x96xf32>, vector<8x96xf32> -> vector<8x96xf32>
    %c0_6 = arith.constant 0 : index
    %c0_7 = arith.constant 0 : index
    %c0_8 = arith.constant 0 : index
    %16 = vector.load %arg5[%c0_6, %c0_7, %c0_8] : memref<1x1x96xf32, #tpu.memory_space<vmem>>, vector<1x1x96xf32>
    %17 = vector.shape_cast %16 : vector<1x1x96xf32> to vector<1x96xf32>
    %18 = vector.broadcast %17 : vector<1x96xf32> to vector<8x96xf32>
    %19 = arith.addf %15, %18 : vector<8x96xf32>
    %20 = tpu.iota {dimensions = array<i32: 1>} : vector<8x8xi32>
    %c1_i32_9 = arith.constant 1 : i32
    %21 = arith.muli %arg0, %c1_i32_9 : i32
    %c0_i32_10 = arith.constant 0 : i32
    %22 = arith.addi %21, %c0_i32_10 : i32
    %23 = arith.index_cast %22 : i32 to index
    %24 = memref.load %arg2[%23] : memref<2xi32, #tpu.memory_space<smem>>
    %25 = vector.extract_strided_slice %19 {offsets = [0, 0], sizes = [8, 16], strides = [1, 1]} : vector<8x96xf32> to vector<8x16xf32>
    %26 = vector.extract_strided_slice %19 {offsets = [0, 32], sizes = [8, 16], strides = [1, 1]} : vector<8x96xf32> to vector<8x16xf32>
    %27 = vector.extract_strided_slice %19 {offsets = [0, 64], sizes = [8, 16], strides = [1, 1]} : vector<8x96xf32> to vector<8x16xf32>
    %cst_11 = arith.constant dense<0.000000e+00> : vector<8x8xf32>
    %28 = tpu.matmul %25, %26, %cst_11 {dimension_numbers = #tpu.dot_dimension_numbers<[1], [1], [0], [0], [0, 0, 1, 0], [], []>} : vector<8x16xf32>, vector<8x16xf32>, vector<8x8xf32> -> vector<8x8xf32>
    %cst_12 = arith.constant 2.500000e-01 : f32
    %29 = vector.broadcast %cst_12 : f32 to vector<8x8xf32>
    %30 = arith.mulf %28, %29 : vector<8x8xf32>
    %31 = vector.broadcast %24 : i32 to vector<8x8xi32>
    %32 = arith.cmpi slt, %20, %31 : vector<8x8xi32>
    %cst_13 = arith.constant -1.000000e+09 : f32
    %33 = vector.broadcast %cst_13 : f32 to vector<8x8xf32>
    %34 = arith.select %32, %30, %33 : vector<8x8xi1>, vector<8x8xf32>
    %cst_14 = arith.constant dense<0xFF800000> : vector<8xf32>
    %35 = vector.multi_reduction <maximumf>, %34, %cst_14 [1] : vector<8x8xf32> to vector<8xf32>
    %36 = vector.shape_cast %35 : vector<8xf32> to vector<8x1xf32>
    %37 = vector.broadcast %36 : vector<8x1xf32> to vector<8x8xf32>
    %38 = arith.subf %34, %37 : vector<8x8xf32>
    %39 = math.exp %38 : vector<8x8xf32>
    %cst_15 = arith.constant dense<0.000000e+00> : vector<8xf32>
    %40 = vector.multi_reduction <add>, %39, %cst_15 [1] : vector<8x8xf32> to vector<8xf32>
    %41 = vector.shape_cast %40 : vector<8xf32> to vector<8x1xf32>
    %42 = tpu.reciprocal %41 {approx = true} : vector<8x1xf32> -> vector<8x1xf32>
    %43 = vector.broadcast %42 : vector<8x1xf32> to vector<8x8xf32>
    %44 = arith.mulf %39, %43 : vector<8x8xf32>
    %cst_16 = arith.constant dense<0.000000e+00> : vector<8x16xf32>
    %45 = tpu.matmul %44, %27, %cst_16 {dimension_numbers = #tpu.dot_dimension_numbers<[1], [0], [0], [1], [0, 0, 1, 1], [], []>} : vector<8x8xf32>, vector<8x16xf32>, vector<8x16xf32> -> vector<8x16xf32>
    %46 = vector.extract_strided_slice %19 {offsets = [0, 16], sizes = [8, 16], strides = [1, 1]} : vector<8x96xf32> to vector<8x16xf32>
    %47 = vector.extract_strided_slice %19 {offsets = [0, 48], sizes = [8, 16], strides = [1, 1]} : vector<8x96xf32> to vector<8x16xf32>
    %48 = vector.extract_strided_slice %19 {offsets = [0, 80], sizes = [8, 16], strides = [1, 1]} : vector<8x96xf32> to vector<8x16xf32>
    %cst_17 = arith.constant dense<0.000000e+00> : vector<8x8xf32>
    %49 = tpu.matmul %46, %47, %cst_17 {dimension_numbers = #tpu.dot_dimension_numbers<[1], [1], [0], [0], [0, 0, 1, 0], [], []>} : vector<8x16xf32>, vector<8x16xf32>, vector<8x8xf32> -> vector<8x8xf32>
    %cst_18 = arith.constant 2.500000e-01 : f32
    %50 = vector.broadcast %cst_18 : f32 to vector<8x8xf32>
    %51 = arith.mulf %49, %50 : vector<8x8xf32>
    %52 = vector.broadcast %24 : i32 to vector<8x8xi32>
    %53 = arith.cmpi slt, %20, %52 : vector<8x8xi32>
    %cst_19 = arith.constant -1.000000e+09 : f32
    %54 = vector.broadcast %cst_19 : f32 to vector<8x8xf32>
    %55 = arith.select %53, %51, %54 : vector<8x8xi1>, vector<8x8xf32>
    %cst_20 = arith.constant dense<0xFF800000> : vector<8xf32>
    %56 = vector.multi_reduction <maximumf>, %55, %cst_20 [1] : vector<8x8xf32> to vector<8xf32>
    %57 = vector.shape_cast %56 : vector<8xf32> to vector<8x1xf32>
    %58 = vector.broadcast %57 : vector<8x1xf32> to vector<8x8xf32>
    %59 = arith.subf %55, %58 : vector<8x8xf32>
    %60 = math.exp %59 : vector<8x8xf32>
    %cst_21 = arith.constant dense<0.000000e+00> : vector<8xf32>
    %61 = vector.multi_reduction <add>, %60, %cst_21 [1] : vector<8x8xf32> to vector<8xf32>
    %62 = vector.shape_cast %61 : vector<8xf32> to vector<8x1xf32>
    %63 = tpu.reciprocal %62 {approx = true} : vector<8x1xf32> -> vector<8x1xf32>
    %64 = vector.broadcast %63 : vector<8x1xf32> to vector<8x8xf32>
    %65 = arith.mulf %60, %64 : vector<8x8xf32>
    %cst_22 = arith.constant dense<0.000000e+00> : vector<8x16xf32>
    %66 = tpu.matmul %65, %48, %cst_22 {dimension_numbers = #tpu.dot_dimension_numbers<[1], [0], [0], [1], [0, 0, 1, 1], [], []>} : vector<8x8xf32>, vector<8x16xf32>, vector<8x16xf32> -> vector<8x16xf32>
    %67 = tpu.concatenate %45, %66 in 1 : vector<8x16xf32>, vector<8x16xf32> -> vector<8x32xf32>
    %c0_23 = arith.constant 0 : index
    %c0_24 = arith.constant 0 : index
    %c0_25 = arith.constant 0 : index
    %68 = vector.load %arg6[%c0_23, %c0_24, %c0_25] : memref<1x32x32xf32, #tpu.memory_space<vmem>>, vector<1x32x32xf32>
    %69 = vector.shape_cast %68 : vector<1x32x32xf32> to vector<32x32xf32>
    %cst_26 = arith.constant dense<0.000000e+00> : vector<8x32xf32>
    %70 = tpu.matmul %67, %69, %cst_26 {dimension_numbers = #tpu.dot_dimension_numbers<[1], [0], [0], [1], [0, 0, 1, 1], [], []>} : vector<8x32xf32>, vector<32x32xf32>, vector<8x32xf32> -> vector<8x32xf32>
    %c0_27 = arith.constant 0 : index
    %c0_28 = arith.constant 0 : index
    %c0_29 = arith.constant 0 : index
    %71 = vector.load %arg7[%c0_27, %c0_28, %c0_29] : memref<1x1x32xf32, #tpu.memory_space<vmem>>, vector<1x1x32xf32>
    %72 = vector.shape_cast %71 : vector<1x1x32xf32> to vector<1x32xf32>
    %73 = vector.broadcast %72 : vector<1x32xf32> to vector<8x32xf32>
    %74 = arith.addf %70, %73 : vector<8x32xf32>
    %75 = arith.addf %74, %3 : vector<8x32xf32>
    %c0_30 = arith.constant 0 : index
    %c0_31 = arith.constant 0 : index
    %c0_32 = arith.constant 0 : index
    %76 = vector.load %arg8[%c0_30, %c0_31, %c0_32] : memref<1x1x32xf32, #tpu.memory_space<vmem>>, vector<1x1x32xf32>
    %77 = vector.shape_cast %76 : vector<1x1x32xf32> to vector<1x32xf32>
    %c0_33 = arith.constant 0 : index
    %c0_34 = arith.constant 0 : index
    %c0_35 = arith.constant 0 : index
    %78 = vector.load %arg9[%c0_33, %c0_34, %c0_35] : memref<1x1x32xf32, #tpu.memory_space<vmem>>, vector<1x1x32xf32>
    %79 = vector.shape_cast %78 : vector<1x1x32xf32> to vector<1x32xf32>
    %cst_36 = arith.constant dense<0.000000e+00> : vector<8xf32>
    %80 = vector.multi_reduction <add>, %75, %cst_36 [1] : vector<8x32xf32> to vector<8xf32>
    %81 = vector.shape_cast %80 : vector<8xf32> to vector<8x1xf32>
    %cst_37 = arith.constant 3.200000e+01 : f32
    %82 = vector.broadcast %cst_37 : f32 to vector<8x1xf32>
    %83 = arith.divf %81, %82 : vector<8x1xf32>
    %84 = vector.broadcast %83 : vector<8x1xf32> to vector<8x32xf32>
    %85 = arith.subf %75, %84 : vector<8x32xf32>
    %86 = arith.mulf %85, %85 : vector<8x32xf32>
    %cst_38 = arith.constant dense<0.000000e+00> : vector<8xf32>
    %87 = vector.multi_reduction <add>, %86, %cst_38 [1] : vector<8x32xf32> to vector<8xf32>
    %88 = vector.shape_cast %87 : vector<8xf32> to vector<8x1xf32>
    %cst_39 = arith.constant 3.200000e+01 : f32
    %89 = vector.broadcast %cst_39 : f32 to vector<8x1xf32>
    %90 = arith.divf %88, %89 : vector<8x1xf32>
    %91 = vector.broadcast %83 : vector<8x1xf32> to vector<8x32xf32>
    %92 = arith.subf %75, %91 : vector<8x32xf32>
    %cst_40 = arith.constant 9.99999974E-6 : f32
    %93 = vector.broadcast %cst_40 : f32 to vector<8x1xf32>
    %94 = arith.addf %90, %93 : vector<8x1xf32>
    %95 = math.rsqrt %94 : vector<8x1xf32>
    %96 = vector.broadcast %95 : vector<8x1xf32> to vector<8x32xf32>
    %97 = arith.mulf %92, %96 : vector<8x32xf32>
    %98 = vector.broadcast %77 : vector<1x32xf32> to vector<8x32xf32>
    %99 = arith.mulf %97, %98 : vector<8x32xf32>
    %100 = vector.broadcast %79 : vector<1x32xf32> to vector<8x32xf32>
    %101 = arith.addf %99, %100 : vector<8x32xf32>
    %102 = vector.broadcast %12 : vector<8x1xf32> to vector<8x32xf32>
    %103 = arith.mulf %101, %102 : vector<8x32xf32>
    %c0_41 = arith.constant 0 : index
    %c0_42 = arith.constant 0 : index
    %c0_43 = arith.constant 0 : index
    %104 = vector.load %arg10[%c0_41, %c0_42, %c0_43] : memref<1x288x64xf32, #tpu.memory_space<vmem>>, vector<1x288x64xf32>
    %105 = vector.shape_cast %104 : vector<1x288x64xf32> to vector<288x64xf32>
    %c0_44 = arith.constant 0 : index
    %c0_45 = arith.constant 0 : index
    %c0_46 = arith.constant 0 : index
    %106 = vector.load %arg11[%c0_44, %c0_45, %c0_46] : memref<1x1x64xf32, #tpu.memory_space<vmem>>, vector<1x1x64xf32>
    %107 = vector.shape_cast %106 : vector<1x1x64xf32> to vector<1x64xf32>
    %108 = tpu.iota {dimensions = array<i32: 0>} : vector<8x1xi32>
    %c4_i32 = arith.constant 4 : i32
    %109 = tpu.dynamic_rotate %103 by %c4_i32 dim 0 : vector<8x32xf32>, i32 -> vector<8x32xf32>
    %c-4_i32 = arith.constant -4 : i32
    %110 = vector.broadcast %c-4_i32 : i32 to vector<8x1xi32>
    %111 = arith.addi %108, %110 : vector<8x1xi32>
    %c0_i32_47 = arith.constant 0 : i32
    %112 = vector.broadcast %c0_i32_47 : i32 to vector<8x1xi32>
    %113 = arith.cmpi sge, %111, %112 : vector<8x1xi32>
    %c8_i32 = arith.constant 8 : i32
    %114 = vector.broadcast %c8_i32 : i32 to vector<8x1xi32>
    %115 = arith.cmpi slt, %111, %114 : vector<8x1xi32>
    %116 = arith.andi %113, %115 : vector<8x1xi1>
    %cst_48 = arith.constant 0.000000e+00 : f32
    %117 = vector.shape_cast %116 : vector<8x1xi1> to vector<8x1xi1>
    %118 = vector.broadcast %117 : vector<8x1xi1> to vector<8x32xi1>
    %119 = vector.broadcast %cst_48 : f32 to vector<8x32xf32>
    %120 = arith.select %118, %109, %119 : vector<8x32xi1>, vector<8x32xf32>
    %c3_i32 = arith.constant 3 : i32
    %121 = tpu.dynamic_rotate %103 by %c3_i32 dim 0 : vector<8x32xf32>, i32 -> vector<8x32xf32>
    %c-3_i32 = arith.constant -3 : i32
    %122 = vector.broadcast %c-3_i32 : i32 to vector<8x1xi32>
    %123 = arith.addi %108, %122 : vector<8x1xi32>
    %c0_i32_49 = arith.constant 0 : i32
    %124 = vector.broadcast %c0_i32_49 : i32 to vector<8x1xi32>
    %125 = arith.cmpi sge, %123, %124 : vector<8x1xi32>
    %c8_i32_50 = arith.constant 8 : i32
    %126 = vector.broadcast %c8_i32_50 : i32 to vector<8x1xi32>
    %127 = arith.cmpi slt, %123, %126 : vector<8x1xi32>
    %128 = arith.andi %125, %127 : vector<8x1xi1>
    %cst_51 = arith.constant 0.000000e+00 : f32
    %129 = vector.shape_cast %128 : vector<8x1xi1> to vector<8x1xi1>
    %130 = vector.broadcast %129 : vector<8x1xi1> to vector<8x32xi1>
    %131 = vector.broadcast %cst_51 : f32 to vector<8x32xf32>
    %132 = arith.select %130, %121, %131 : vector<8x32xi1>, vector<8x32xf32>
    %c2_i32 = arith.constant 2 : i32
    %133 = tpu.dynamic_rotate %103 by %c2_i32 dim 0 : vector<8x32xf32>, i32 -> vector<8x32xf32>
    %c-2_i32 = arith.constant -2 : i32
    %134 = vector.broadcast %c-2_i32 : i32 to vector<8x1xi32>
    %135 = arith.addi %108, %134 : vector<8x1xi32>
    %c0_i32_52 = arith.constant 0 : i32
    %136 = vector.broadcast %c0_i32_52 : i32 to vector<8x1xi32>
    %137 = arith.cmpi sge, %135, %136 : vector<8x1xi32>
    %c8_i32_53 = arith.constant 8 : i32
    %138 = vector.broadcast %c8_i32_53 : i32 to vector<8x1xi32>
    %139 = arith.cmpi slt, %135, %138 : vector<8x1xi32>
    %140 = arith.andi %137, %139 : vector<8x1xi1>
    %cst_54 = arith.constant 0.000000e+00 : f32
    %141 = vector.shape_cast %140 : vector<8x1xi1> to vector<8x1xi1>
    %142 = vector.broadcast %141 : vector<8x1xi1> to vector<8x32xi1>
    %143 = vector.broadcast %cst_54 : f32 to vector<8x32xf32>
    %144 = arith.select %142, %133, %143 : vector<8x32xi1>, vector<8x32xf32>
    %c1_i32_55 = arith.constant 1 : i32
    %145 = tpu.dynamic_rotate %103 by %c1_i32_55 dim 0 : vector<8x32xf32>, i32 -> vector<8x32xf32>
    %c-1_i32 = arith.constant -1 : i32
    %146 = vector.broadcast %c-1_i32 : i32 to vector<8x1xi32>
    %147 = arith.addi %108, %146 : vector<8x1xi32>
    %c0_i32_56 = arith.constant 0 : i32
    %148 = vector.broadcast %c0_i32_56 : i32 to vector<8x1xi32>
    %149 = arith.cmpi sge, %147, %148 : vector<8x1xi32>
    %c8_i32_57 = arith.constant 8 : i32
    %150 = vector.broadcast %c8_i32_57 : i32 to vector<8x1xi32>
    %151 = arith.cmpi slt, %147, %150 : vector<8x1xi32>
    %152 = arith.andi %149, %151 : vector<8x1xi1>
    %cst_58 = arith.constant 0.000000e+00 : f32
    %153 = vector.shape_cast %152 : vector<8x1xi1> to vector<8x1xi1>
    %154 = vector.broadcast %153 : vector<8x1xi1> to vector<8x32xi1>
    %155 = vector.broadcast %cst_58 : f32 to vector<8x32xf32>
    %156 = arith.select %154, %145, %155 : vector<8x32xi1>, vector<8x32xf32>
    %c7_i32 = arith.constant 7 : i32
    %157 = tpu.dynamic_rotate %103 by %c7_i32 dim 0 : vector<8x32xf32>, i32 -> vector<8x32xf32>
    %c1_i32_59 = arith.constant 1 : i32
    %158 = vector.broadcast %c1_i32_59 : i32 to vector<8x1xi32>
    %159 = arith.addi %108, %158 : vector<8x1xi32>
    %c0_i32_60 = arith.constant 0 : i32
    %160 = vector.broadcast %c0_i32_60 : i32 to vector<8x1xi32>
    %161 = arith.cmpi sge, %159, %160 : vector<8x1xi32>
    %c8_i32_61 = arith.constant 8 : i32
    %162 = vector.broadcast %c8_i32_61 : i32 to vector<8x1xi32>
    %163 = arith.cmpi slt, %159, %162 : vector<8x1xi32>
    %164 = arith.andi %161, %163 : vector<8x1xi1>
    %cst_62 = arith.constant 0.000000e+00 : f32
    %165 = vector.shape_cast %164 : vector<8x1xi1> to vector<8x1xi1>
    %166 = vector.broadcast %165 : vector<8x1xi1> to vector<8x32xi1>
    %167 = vector.broadcast %cst_62 : f32 to vector<8x32xf32>
    %168 = arith.select %166, %157, %167 : vector<8x32xi1>, vector<8x32xf32>
    %c6_i32 = arith.constant 6 : i32
    %169 = tpu.dynamic_rotate %103 by %c6_i32 dim 0 : vector<8x32xf32>, i32 -> vector<8x32xf32>
    %c2_i32_63 = arith.constant 2 : i32
    %170 = vector.broadcast %c2_i32_63 : i32 to vector<8x1xi32>
    %171 = arith.addi %108, %170 : vector<8x1xi32>
    %c0_i32_64 = arith.constant 0 : i32
    %172 = vector.broadcast %c0_i32_64 : i32 to vector<8x1xi32>
    %173 = arith.cmpi sge, %171, %172 : vector<8x1xi32>
    %c8_i32_65 = arith.constant 8 : i32
    %174 = vector.broadcast %c8_i32_65 : i32 to vector<8x1xi32>
    %175 = arith.cmpi slt, %171, %174 : vector<8x1xi32>
    %176 = arith.andi %173, %175 : vector<8x1xi1>
    %cst_66 = arith.constant 0.000000e+00 : f32
    %177 = vector.shape_cast %176 : vector<8x1xi1> to vector<8x1xi1>
    %178 = vector.broadcast %177 : vector<8x1xi1> to vector<8x32xi1>
    %179 = vector.broadcast %cst_66 : f32 to vector<8x32xf32>
    %180 = arith.select %178, %169, %179 : vector<8x32xi1>, vector<8x32xf32>
    %c5_i32 = arith.constant 5 : i32
    %181 = tpu.dynamic_rotate %103 by %c5_i32 dim 0 : vector<8x32xf32>, i32 -> vector<8x32xf32>
    %c3_i32_67 = arith.constant 3 : i32
    %182 = vector.broadcast %c3_i32_67 : i32 to vector<8x1xi32>
    %183 = arith.addi %108, %182 : vector<8x1xi32>
    %c0_i32_68 = arith.constant 0 : i32
    %184 = vector.broadcast %c0_i32_68 : i32 to vector<8x1xi32>
    %185 = arith.cmpi sge, %183, %184 : vector<8x1xi32>
    %c8_i32_69 = arith.constant 8 : i32
    %186 = vector.broadcast %c8_i32_69 : i32 to vector<8x1xi32>
    %187 = arith.cmpi slt, %183, %186 : vector<8x1xi32>
    %188 = arith.andi %185, %187 : vector<8x1xi1>
    %cst_70 = arith.constant 0.000000e+00 : f32
    %189 = vector.shape_cast %188 : vector<8x1xi1> to vector<8x1xi1>
    %190 = vector.broadcast %189 : vector<8x1xi1> to vector<8x32xi1>
    %191 = vector.broadcast %cst_70 : f32 to vector<8x32xf32>
    %192 = arith.select %190, %181, %191 : vector<8x32xi1>, vector<8x32xf32>
    %c4_i32_71 = arith.constant 4 : i32
    %193 = tpu.dynamic_rotate %103 by %c4_i32_71 dim 0 : vector<8x32xf32>, i32 -> vector<8x32xf32>
    %c4_i32_72 = arith.constant 4 : i32
    %194 = vector.broadcast %c4_i32_72 : i32 to vector<8x1xi32>
    %195 = arith.addi %108, %194 : vector<8x1xi32>
    %c0_i32_73 = arith.constant 0 : i32
    %196 = vector.broadcast %c0_i32_73 : i32 to vector<8x1xi32>
    %197 = arith.cmpi sge, %195, %196 : vector<8x1xi32>
    %c8_i32_74 = arith.constant 8 : i32
    %198 = vector.broadcast %c8_i32_74 : i32 to vector<8x1xi32>
    %199 = arith.cmpi slt, %195, %198 : vector<8x1xi32>
    %200 = arith.andi %197, %199 : vector<8x1xi1>
    %cst_75 = arith.constant 0.000000e+00 : f32
    %201 = vector.shape_cast %200 : vector<8x1xi1> to vector<8x1xi1>
    %202 = vector.broadcast %201 : vector<8x1xi1> to vector<8x32xi1>
    %203 = vector.broadcast %cst_75 : f32 to vector<8x32xf32>
    %204 = arith.select %202, %193, %203 : vector<8x32xi1>, vector<8x32xf32>
    %205 = tpu.concatenate %120, %132, %144, %156, %103, %168, %180, %192, %204 in 1 : vector<8x32xf32>, vector<8x32xf32>, vector<8x32xf32>, vector<8x32xf32>, vector<8x32xf32>, vector<8x32xf32>, vector<8x32xf32>, vector<8x32xf32>, vector<8x32xf32> -> vector<8x288xf32>
    %cst_76 = arith.constant dense<0.000000e+00> : vector<8x64xf32>
    %206 = tpu.matmul %205, %105, %cst_76 {dimension_numbers = #tpu.dot_dimension_numbers<[1], [0], [0], [1], [0, 0, 1, 1], [], []>} : vector<8x288xf32>, vector<288x64xf32>, vector<8x64xf32> -> vector<8x64xf32>
    %207 = vector.broadcast %107 : vector<1x64xf32> to vector<8x64xf32>
    %208 = arith.addf %206, %207 : vector<8x64xf32>
    %cst_77 = arith.constant 0.000000e+00 : f32
    %209 = vector.broadcast %cst_77 : f32 to vector<8x64xf32>
    %210 = arith.maximumf %208, %209 : vector<8x64xf32>
    %c0_78 = arith.constant 0 : index
    %c0_79 = arith.constant 0 : index
    %c0_80 = arith.constant 0 : index
    %211 = vector.load %arg12[%c0_78, %c0_79, %c0_80] : memref<1x64x32xf32, #tpu.memory_space<vmem>>, vector<1x64x32xf32>
    %212 = vector.shape_cast %211 : vector<1x64x32xf32> to vector<64x32xf32>
    %c0_81 = arith.constant 0 : index
    %c0_82 = arith.constant 0 : index
    %c0_83 = arith.constant 0 : index
    %213 = vector.load %arg13[%c0_81, %c0_82, %c0_83] : memref<1x1x32xf32, #tpu.memory_space<vmem>>, vector<1x1x32xf32>
    %214 = vector.shape_cast %213 : vector<1x1x32xf32> to vector<1x32xf32>
    %cst_84 = arith.constant dense<0.000000e+00> : vector<8x32xf32>
    %215 = tpu.matmul %210, %212, %cst_84 {dimension_numbers = #tpu.dot_dimension_numbers<[1], [0], [0], [1], [0, 0, 1, 1], [], []>} : vector<8x64xf32>, vector<64x32xf32>, vector<8x32xf32> -> vector<8x32xf32>
    %216 = vector.broadcast %214 : vector<1x32xf32> to vector<8x32xf32>
    %217 = arith.addf %215, %216 : vector<8x32xf32>
    %218 = arith.addf %217, %103 : vector<8x32xf32>
    %c0_85 = arith.constant 0 : index
    %c0_86 = arith.constant 0 : index
    %c0_87 = arith.constant 0 : index
    %219 = vector.load %arg14[%c0_85, %c0_86, %c0_87] : memref<1x1x32xf32, #tpu.memory_space<vmem>>, vector<1x1x32xf32>
    %220 = vector.shape_cast %219 : vector<1x1x32xf32> to vector<1x32xf32>
    %c0_88 = arith.constant 0 : index
    %c0_89 = arith.constant 0 : index
    %c0_90 = arith.constant 0 : index
    %221 = vector.load %arg15[%c0_88, %c0_89, %c0_90] : memref<1x1x32xf32, #tpu.memory_space<vmem>>, vector<1x1x32xf32>
    %222 = vector.shape_cast %221 : vector<1x1x32xf32> to vector<1x32xf32>
    %cst_91 = arith.constant dense<0.000000e+00> : vector<8xf32>
    %223 = vector.multi_reduction <add>, %218, %cst_91 [1] : vector<8x32xf32> to vector<8xf32>
    %224 = vector.shape_cast %223 : vector<8xf32> to vector<8x1xf32>
    %cst_92 = arith.constant 3.200000e+01 : f32
    %225 = vector.broadcast %cst_92 : f32 to vector<8x1xf32>
    %226 = arith.divf %224, %225 : vector<8x1xf32>
    %227 = vector.broadcast %226 : vector<8x1xf32> to vector<8x32xf32>
    %228 = arith.subf %218, %227 : vector<8x32xf32>
    %229 = arith.mulf %228, %228 : vector<8x32xf32>
    %cst_93 = arith.constant dense<0.000000e+00> : vector<8xf32>
    %230 = vector.multi_reduction <add>, %229, %cst_93 [1] : vector<8x32xf32> to vector<8xf32>
    %231 = vector.shape_cast %230 : vector<8xf32> to vector<8x1xf32>
    %cst_94 = arith.constant 3.200000e+01 : f32
    %232 = vector.broadcast %cst_94 : f32 to vector<8x1xf32>
    %233 = arith.divf %231, %232 : vector<8x1xf32>
    %234 = vector.broadcast %226 : vector<8x1xf32> to vector<8x32xf32>
    %235 = arith.subf %218, %234 : vector<8x32xf32>
    %cst_95 = arith.constant 9.99999974E-6 : f32
    %236 = vector.broadcast %cst_95 : f32 to vector<8x1xf32>
    %237 = arith.addf %233, %236 : vector<8x1xf32>
    %238 = math.rsqrt %237 : vector<8x1xf32>
    %239 = vector.broadcast %238 : vector<8x1xf32> to vector<8x32xf32>
    %240 = arith.mulf %235, %239 : vector<8x32xf32>
    %241 = vector.broadcast %220 : vector<1x32xf32> to vector<8x32xf32>
    %242 = arith.mulf %240, %241 : vector<8x32xf32>
    %243 = vector.broadcast %222 : vector<1x32xf32> to vector<8x32xf32>
    %244 = arith.addf %242, %243 : vector<8x32xf32>
    %245 = vector.broadcast %12 : vector<8x1xf32> to vector<8x32xf32>
    %246 = arith.mulf %244, %245 : vector<8x32xf32>
    %c0_96 = arith.constant 0 : index
    %c0_97 = arith.constant 0 : index
    %247 = vector.load %arg17[%c0_96, %c0_97] : memref<8x32xf32, #tpu.memory_space<vmem>>, vector<8x32xf32>
    tpu.vector_store %arg17[%c0_96, %c0_97], %246 {strides = array<i32>} : memref<8x32xf32, #tpu.memory_space<vmem>>, vector<8x32xf32>,
    %c1_i32_98 = arith.constant 1 : i32
    %248 = arith.cmpi eq, %arg1, %c1_i32_98 : i32
    %249 = arith.extui %248 : i1 to i32
    %c0_i32_99 = arith.constant 0 : i32
    %250 = arith.cmpi ne, %249, %c0_i32_99 : i32
    scf.if %250 {
      %251 = vector.shape_cast %246 : vector<8x32xf32> to vector<1x8x32xf32>
      %c0_100 = arith.constant 0 : index
      %c0_101 = arith.constant 0 : index
      %c0_102 = arith.constant 0 : index
      %252 = vector.load %arg16[%c0_100, %c0_101, %c0_102] : memref<1x8x32xf32, #tpu.memory_space<vmem>>, vector<1x8x32xf32>
      tpu.vector_store %arg16[%c0_100, %c0_101, %c0_102], %251 {strides = array<i32>} : memref<1x8x32xf32, #tpu.memory_space<vmem>>, vector<1x8x32xf32>,
    } else {
    }
    return
  }
  func.func @transform_0(%arg0: i32, %arg1: i32, %arg2: memref<2xi32, #tpu.memory_space<smem>>) -> (i32, i32, i32) {
    %c0_i32 = arith.constant 0 : i32
    %c0_i32_0 = arith.constant 0 : i32
    %c0_i32_1 = arith.constant 0 : i32
    return %arg0, %c0_i32, %c0_i32_0 : i32, i32, i32
  }
  func.func @transform_1(%arg0: i32, %arg1: i32, %arg2: memref<2xi32, #tpu.memory_space<smem>>) -> (i32, i32, i32) {
    %c0_i32 = arith.constant 0 : i32
    %c0_i32_0 = arith.constant 0 : i32
    %c0_i32_1 = arith.constant 0 : i32
    return %arg1, %c0_i32, %c0_i32_0 : i32, i32, i32
  }
  func.func @transform_2(%arg0: i32, %arg1: i32, %arg2: memref<2xi32, #tpu.memory_space<smem>>) -> (i32, i32, i32) {
    %c0_i32 = arith.constant 0 : i32
    %c0_i32_0 = arith.constant 0 : i32
    %c0_i32_1 = arith.constant 0 : i32
    return %arg1, %c0_i32, %c0_i32_0 : i32, i32, i32
  }
  func.func @transform_3(%arg0: i32, %arg1: i32, %arg2: memref<2xi32, #tpu.memory_space<smem>>) -> (i32, i32, i32) {
    %c0_i32 = arith.constant 0 : i32
    %c0_i32_0 = arith.constant 0 : i32
    %c0_i32_1 = arith.constant 0 : i32
    return %arg1, %c0_i32, %c0_i32_0 : i32, i32, i32
  }
  func.func @transform_4(%arg0: i32, %arg1: i32, %arg2: memref<2xi32, #tpu.memory_space<smem>>) -> (i32, i32, i32) {
    %c0_i32 = arith.constant 0 : i32
    %c0_i32_0 = arith.constant 0 : i32
    %c0_i32_1 = arith.constant 0 : i32
    return %arg1, %c0_i32, %c0_i32_0 : i32, i32, i32
  }
  func.func @transform_5(%arg0: i32, %arg1: i32, %arg2: memref<2xi32, #tpu.memory_space<smem>>) -> (i32, i32, i32) {
    %c0_i32 = arith.constant 0 : i32
    %c0_i32_0 = arith.constant 0 : i32
    %c0_i32_1 = arith.constant 0 : i32
    return %arg1, %c0_i32, %c0_i32_0 : i32, i32, i32
  }
  func.func @transform_6(%arg0: i32, %arg1: i32, %arg2: memref<2xi32, #tpu.memory_space<smem>>) -> (i32, i32, i32) {
    %c0_i32 = arith.constant 0 : i32
    %c0_i32_0 = arith.constant 0 : i32
    %c0_i32_1 = arith.constant 0 : i32
    return %arg1, %c0_i32, %c0_i32_0 : i32, i32, i32
  }
  func.func @transform_7(%arg0: i32, %arg1: i32, %arg2: memref<2xi32, #tpu.memory_space<smem>>) -> (i32, i32, i32) {
    %c0_i32 = arith.constant 0 : i32
    %c0_i32_0 = arith.constant 0 : i32
    %c0_i32_1 = arith.constant 0 : i32
    return %arg1, %c0_i32, %c0_i32_0 : i32, i32, i32
  }
  func.func @transform_8(%arg0: i32, %arg1: i32, %arg2: memref<2xi32, #tpu.memory_space<smem>>) -> (i32, i32, i32) {
    %c0_i32 = arith.constant 0 : i32
    %c0_i32_0 = arith.constant 0 : i32
    %c0_i32_1 = arith.constant 0 : i32
    return %arg1, %c0_i32, %c0_i32_0 : i32, i32, i32
  }
  func.func @transform_9(%arg0: i32, %arg1: i32, %arg2: memref<2xi32, #tpu.memory_space<smem>>) -> (i32, i32, i32) {
    %c0_i32 = arith.constant 0 : i32
    %c0_i32_0 = arith.constant 0 : i32
    %c0_i32_1 = arith.constant 0 : i32
    return %arg1, %c0_i32, %c0_i32_0 : i32, i32, i32
  }
  func.func @transform_10(%arg0: i32, %arg1: i32, %arg2: memref<2xi32, #tpu.memory_space<smem>>) -> (i32, i32, i32) {
    %c0_i32 = arith.constant 0 : i32
    %c0_i32_0 = arith.constant 0 : i32
    %c0_i32_1 = arith.constant 0 : i32
    return %arg1, %c0_i32, %c0_i32_0 : i32, i32, i32
  }
  func.func @transform_11(%arg0: i32, %arg1: i32, %arg2: memref<2xi32, #tpu.memory_space<smem>>) -> (i32, i32, i32) {
    %c0_i32 = arith.constant 0 : i32
    %c0_i32_0 = arith.constant 0 : i32
    %c0_i32_1 = arith.constant 0 : i32
    return %arg1, %c0_i32, %c0_i32_0 : i32, i32, i32
  }
  func.func @transform_12(%arg0: i32, %arg1: i32, %arg2: memref<2xi32, #tpu.memory_space<smem>>) -> (i32, i32, i32) {
    %c0_i32 = arith.constant 0 : i32
    %c0_i32_0 = arith.constant 0 : i32
    %c0_i32_1 = arith.constant 0 : i32
    return %arg1, %c0_i32, %c0_i32_0 : i32, i32, i32
  }
  func.func @transform_13(%arg0: i32, %arg1: i32, %arg2: memref<2xi32, #tpu.memory_space<smem>>) -> (i32, i32, i32) {
    %c0_i32 = arith.constant 0 : i32
    %c0_i32_0 = arith.constant 0 : i32
    %c0_i32_1 = arith.constant 0 : i32
    return %arg0, %c0_i32, %c0_i32_0 : i32, i32, i32
  }
}

module attributes {stable_mosaic.version = 11 : i64} {
  func.func @_var_predictor_kernel(%arg0: i32, %arg1: memref<2xi32, #tpu.memory_space<smem>>, %arg2: memref<1x8x32xf32, #tpu.memory_space<vmem>>, %arg3: memref<1x96x32xf32, #tpu.memory_space<vmem>>, %arg4: memref<1x1x32xf32, #tpu.memory_space<vmem>>, %arg5: memref<1x1x32xf32, #tpu.memory_space<vmem>>, %arg6: memref<1x1x32xf32, #tpu.memory_space<vmem>>, %arg7: memref<1x96x32xf32, #tpu.memory_space<vmem>>, %arg8: memref<1x1x32xf32, #tpu.memory_space<vmem>>, %arg9: memref<1x1x32xf32, #tpu.memory_space<vmem>>, %arg10: memref<1x1x32xf32, #tpu.memory_space<vmem>>, %arg11: memref<1x1x32xf32, #tpu.memory_space<vmem>>, %arg12: memref<1x1x1xf32, #tpu.memory_space<vmem>>, %arg13: memref<1x1x8xf32, #tpu.memory_space<vmem>>) attributes {dimension_semantics = [#tpu.dimension_semantics<parallel>], iteration_bounds = array<i64: 2>, scalar_prefetch = 1 : i64, scratch_operands = 0 : i64, tpu.core_type = #tpu.core_type<tc>, window_params = [{transform_indices = @transform_0, window_bounds = array<i64: 1, 8, 32>}, {pipeline_mode = #tpu.pipeline_mode<synchronous>, transform_indices = @transform_1, window_bounds = array<i64: 1, 96, 32>}, {pipeline_mode = #tpu.pipeline_mode<synchronous>, transform_indices = @transform_2, window_bounds = array<i64: 1, 1, 32>}, {pipeline_mode = #tpu.pipeline_mode<synchronous>, transform_indices = @transform_3, window_bounds = array<i64: 1, 1, 32>}, {pipeline_mode = #tpu.pipeline_mode<synchronous>, transform_indices = @transform_4, window_bounds = array<i64: 1, 1, 32>}, {pipeline_mode = #tpu.pipeline_mode<synchronous>, transform_indices = @transform_5, window_bounds = array<i64: 1, 96, 32>}, {pipeline_mode = #tpu.pipeline_mode<synchronous>, transform_indices = @transform_6, window_bounds = array<i64: 1, 1, 32>}, {pipeline_mode = #tpu.pipeline_mode<synchronous>, transform_indices = @transform_7, window_bounds = array<i64: 1, 1, 32>}, {pipeline_mode = #tpu.pipeline_mode<synchronous>, transform_indices = @transform_8, window_bounds = array<i64: 1, 1, 32>}, {pipeline_mode = #tpu.pipeline_mode<synchronous>, transform_indices = @transform_9, window_bounds = array<i64: 1, 1, 32>}, {pipeline_mode = #tpu.pipeline_mode<synchronous>, transform_indices = @transform_10, window_bounds = array<i64: 1, 1, 1>}, {transform_indices = @transform_11, window_bounds = array<i64: 1, 1, 8>}]} {
    %c1_i32 = arith.constant 1 : i32
    %0 = arith.muli %arg0, %c1_i32 : i32
    %c0_i32 = arith.constant 0 : i32
    %1 = arith.addi %0, %c0_i32 : i32
    %2 = arith.index_cast %1 : i32 to index
    %3 = memref.load %arg1[%2] : memref<2xi32, #tpu.memory_space<smem>>
    %4 = tpu.iota {dimensions = array<i32: 1>} : vector<1x8xi32>
    %5 = vector.broadcast %3 : i32 to vector<1x8xi32>
    %6 = arith.cmpi slt, %4, %5 : vector<1x8xi32>
    %7 = arith.extui %6 : vector<1x8xi1> to vector<1x8xi32>
    %8 = arith.sitofp %7 : vector<1x8xi32> to vector<1x8xf32>
    %c0 = arith.constant 0 : index
    %c0_0 = arith.constant 0 : index
    %c0_1 = arith.constant 0 : index
    %9 = vector.load %arg2[%c0, %c0_0, %c0_1] : memref<1x8x32xf32, #tpu.memory_space<vmem>>, vector<1x8x32xf32>
    %10 = vector.shape_cast %9 : vector<1x8x32xf32> to vector<8x32xf32>
    %c0_2 = arith.constant 0 : index
    %c0_3 = arith.constant 0 : index
    %c0_4 = arith.constant 0 : index
    %11 = vector.load %arg3[%c0_2, %c0_3, %c0_4] : memref<1x96x32xf32, #tpu.memory_space<vmem>>, vector<1x96x32xf32>
    %12 = vector.shape_cast %11 : vector<1x96x32xf32> to vector<96x32xf32>
    %c0_5 = arith.constant 0 : index
    %c0_6 = arith.constant 0 : index
    %c0_7 = arith.constant 0 : index
    %13 = vector.load %arg4[%c0_5, %c0_6, %c0_7] : memref<1x1x32xf32, #tpu.memory_space<vmem>>, vector<1x1x32xf32>
    %14 = vector.shape_cast %13 : vector<1x1x32xf32> to vector<1x32xf32>
    %15 = tpu.iota {dimensions = array<i32: 0>} : vector<8x1xi32>
    %c1_i32_8 = arith.constant 1 : i32
    %16 = tpu.dynamic_rotate %10 by %c1_i32_8 dim 0 : vector<8x32xf32>, i32 -> vector<8x32xf32>
    %c-1_i32 = arith.constant -1 : i32
    %17 = vector.broadcast %c-1_i32 : i32 to vector<8x1xi32>
    %18 = arith.addi %15, %17 : vector<8x1xi32>
    %c0_i32_9 = arith.constant 0 : i32
    %19 = vector.broadcast %c0_i32_9 : i32 to vector<8x1xi32>
    %20 = arith.cmpi sge, %18, %19 : vector<8x1xi32>
    %c8_i32 = arith.constant 8 : i32
    %21 = vector.broadcast %c8_i32 : i32 to vector<8x1xi32>
    %22 = arith.cmpi slt, %18, %21 : vector<8x1xi32>
    %23 = arith.andi %20, %22 : vector<8x1xi1>
    %cst = arith.constant 0.000000e+00 : f32
    %24 = vector.shape_cast %23 : vector<8x1xi1> to vector<8x1xi1>
    %25 = vector.broadcast %24 : vector<8x1xi1> to vector<8x32xi1>
    %26 = vector.broadcast %cst : f32 to vector<8x32xf32>
    %27 = arith.select %25, %16, %26 : vector<8x32xi1>, vector<8x32xf32>
    %c7_i32 = arith.constant 7 : i32
    %28 = tpu.dynamic_rotate %10 by %c7_i32 dim 0 : vector<8x32xf32>, i32 -> vector<8x32xf32>
    %c1_i32_10 = arith.constant 1 : i32
    %29 = vector.broadcast %c1_i32_10 : i32 to vector<8x1xi32>
    %30 = arith.addi %15, %29 : vector<8x1xi32>
    %c0_i32_11 = arith.constant 0 : i32
    %31 = vector.broadcast %c0_i32_11 : i32 to vector<8x1xi32>
    %32 = arith.cmpi sge, %30, %31 : vector<8x1xi32>
    %c8_i32_12 = arith.constant 8 : i32
    %33 = vector.broadcast %c8_i32_12 : i32 to vector<8x1xi32>
    %34 = arith.cmpi slt, %30, %33 : vector<8x1xi32>
    %35 = arith.andi %32, %34 : vector<8x1xi1>
    %cst_13 = arith.constant 0.000000e+00 : f32
    %36 = vector.shape_cast %35 : vector<8x1xi1> to vector<8x1xi1>
    %37 = vector.broadcast %36 : vector<8x1xi1> to vector<8x32xi1>
    %38 = vector.broadcast %cst_13 : f32 to vector<8x32xf32>
    %39 = arith.select %37, %28, %38 : vector<8x32xi1>, vector<8x32xf32>
    %40 = tpu.concatenate %27, %10, %39 in 1 : vector<8x32xf32>, vector<8x32xf32>, vector<8x32xf32> -> vector<8x96xf32>
    %cst_14 = arith.constant dense<0.000000e+00> : vector<8x32xf32>
    %41 = tpu.matmul %40, %12, %cst_14 {dimension_numbers = #tpu.dot_dimension_numbers<[1], [0], [0], [1], [0, 0, 1, 1], [], []>} : vector<8x96xf32>, vector<96x32xf32>, vector<8x32xf32> -> vector<8x32xf32>
    %42 = vector.broadcast %14 : vector<1x32xf32> to vector<8x32xf32>
    %43 = arith.addf %41, %42 : vector<8x32xf32>
    %cst_15 = arith.constant 0.000000e+00 : f32
    %44 = vector.broadcast %cst_15 : f32 to vector<8x32xf32>
    %45 = arith.maximumf %43, %44 : vector<8x32xf32>
    %c0_16 = arith.constant 0 : index
    %c0_17 = arith.constant 0 : index
    %c0_18 = arith.constant 0 : index
    %46 = vector.load %arg5[%c0_16, %c0_17, %c0_18] : memref<1x1x32xf32, #tpu.memory_space<vmem>>, vector<1x1x32xf32>
    %47 = vector.shape_cast %46 : vector<1x1x32xf32> to vector<1x32xf32>
    %c0_19 = arith.constant 0 : index
    %c0_20 = arith.constant 0 : index
    %c0_21 = arith.constant 0 : index
    %48 = vector.load %arg6[%c0_19, %c0_20, %c0_21] : memref<1x1x32xf32, #tpu.memory_space<vmem>>, vector<1x1x32xf32>
    %49 = vector.shape_cast %48 : vector<1x1x32xf32> to vector<1x32xf32>
    %cst_22 = arith.constant dense<0.000000e+00> : vector<8xf32>
    %50 = vector.multi_reduction <add>, %45, %cst_22 [1] : vector<8x32xf32> to vector<8xf32>
    %51 = vector.shape_cast %50 : vector<8xf32> to vector<8x1xf32>
    %cst_23 = arith.constant 3.200000e+01 : f32
    %52 = vector.broadcast %cst_23 : f32 to vector<8x1xf32>
    %53 = arith.divf %51, %52 : vector<8x1xf32>
    %54 = vector.broadcast %53 : vector<8x1xf32> to vector<8x32xf32>
    %55 = arith.subf %45, %54 : vector<8x32xf32>
    %56 = arith.mulf %55, %55 : vector<8x32xf32>
    %cst_24 = arith.constant dense<0.000000e+00> : vector<8xf32>
    %57 = vector.multi_reduction <add>, %56, %cst_24 [1] : vector<8x32xf32> to vector<8xf32>
    %58 = vector.shape_cast %57 : vector<8xf32> to vector<8x1xf32>
    %cst_25 = arith.constant 3.200000e+01 : f32
    %59 = vector.broadcast %cst_25 : f32 to vector<8x1xf32>
    %60 = arith.divf %58, %59 : vector<8x1xf32>
    %61 = vector.broadcast %53 : vector<8x1xf32> to vector<8x32xf32>
    %62 = arith.subf %45, %61 : vector<8x32xf32>
    %cst_26 = arith.constant 9.99999974E-6 : f32
    %63 = vector.broadcast %cst_26 : f32 to vector<8x1xf32>
    %64 = arith.addf %60, %63 : vector<8x1xf32>
    %65 = math.rsqrt %64 : vector<8x1xf32>
    %66 = vector.broadcast %65 : vector<8x1xf32> to vector<8x32xf32>
    %67 = arith.mulf %62, %66 : vector<8x32xf32>
    %68 = vector.broadcast %47 : vector<1x32xf32> to vector<8x32xf32>
    %69 = arith.mulf %67, %68 : vector<8x32xf32>
    %70 = vector.broadcast %49 : vector<1x32xf32> to vector<8x32xf32>
    %71 = arith.addf %69, %70 : vector<8x32xf32>
    %c0_27 = arith.constant 0 : index
    %c0_28 = arith.constant 0 : index
    %c0_29 = arith.constant 0 : index
    %72 = vector.load %arg7[%c0_27, %c0_28, %c0_29] : memref<1x96x32xf32, #tpu.memory_space<vmem>>, vector<1x96x32xf32>
    %73 = vector.shape_cast %72 : vector<1x96x32xf32> to vector<96x32xf32>
    %c0_30 = arith.constant 0 : index
    %c0_31 = arith.constant 0 : index
    %c0_32 = arith.constant 0 : index
    %74 = vector.load %arg8[%c0_30, %c0_31, %c0_32] : memref<1x1x32xf32, #tpu.memory_space<vmem>>, vector<1x1x32xf32>
    %75 = vector.shape_cast %74 : vector<1x1x32xf32> to vector<1x32xf32>
    %76 = tpu.iota {dimensions = array<i32: 0>} : vector<8x1xi32>
    %c1_i32_33 = arith.constant 1 : i32
    %77 = tpu.dynamic_rotate %71 by %c1_i32_33 dim 0 : vector<8x32xf32>, i32 -> vector<8x32xf32>
    %c-1_i32_34 = arith.constant -1 : i32
    %78 = vector.broadcast %c-1_i32_34 : i32 to vector<8x1xi32>
    %79 = arith.addi %76, %78 : vector<8x1xi32>
    %c0_i32_35 = arith.constant 0 : i32
    %80 = vector.broadcast %c0_i32_35 : i32 to vector<8x1xi32>
    %81 = arith.cmpi sge, %79, %80 : vector<8x1xi32>
    %c8_i32_36 = arith.constant 8 : i32
    %82 = vector.broadcast %c8_i32_36 : i32 to vector<8x1xi32>
    %83 = arith.cmpi slt, %79, %82 : vector<8x1xi32>
    %84 = arith.andi %81, %83 : vector<8x1xi1>
    %cst_37 = arith.constant 0.000000e+00 : f32
    %85 = vector.shape_cast %84 : vector<8x1xi1> to vector<8x1xi1>
    %86 = vector.broadcast %85 : vector<8x1xi1> to vector<8x32xi1>
    %87 = vector.broadcast %cst_37 : f32 to vector<8x32xf32>
    %88 = arith.select %86, %77, %87 : vector<8x32xi1>, vector<8x32xf32>
    %c7_i32_38 = arith.constant 7 : i32
    %89 = tpu.dynamic_rotate %71 by %c7_i32_38 dim 0 : vector<8x32xf32>, i32 -> vector<8x32xf32>
    %c1_i32_39 = arith.constant 1 : i32
    %90 = vector.broadcast %c1_i32_39 : i32 to vector<8x1xi32>
    %91 = arith.addi %76, %90 : vector<8x1xi32>
    %c0_i32_40 = arith.constant 0 : i32
    %92 = vector.broadcast %c0_i32_40 : i32 to vector<8x1xi32>
    %93 = arith.cmpi sge, %91, %92 : vector<8x1xi32>
    %c8_i32_41 = arith.constant 8 : i32
    %94 = vector.broadcast %c8_i32_41 : i32 to vector<8x1xi32>
    %95 = arith.cmpi slt, %91, %94 : vector<8x1xi32>
    %96 = arith.andi %93, %95 : vector<8x1xi1>
    %cst_42 = arith.constant 0.000000e+00 : f32
    %97 = vector.shape_cast %96 : vector<8x1xi1> to vector<8x1xi1>
    %98 = vector.broadcast %97 : vector<8x1xi1> to vector<8x32xi1>
    %99 = vector.broadcast %cst_42 : f32 to vector<8x32xf32>
    %100 = arith.select %98, %89, %99 : vector<8x32xi1>, vector<8x32xf32>
    %101 = tpu.concatenate %88, %71, %100 in 1 : vector<8x32xf32>, vector<8x32xf32>, vector<8x32xf32> -> vector<8x96xf32>
    %cst_43 = arith.constant dense<0.000000e+00> : vector<8x32xf32>
    %102 = tpu.matmul %101, %73, %cst_43 {dimension_numbers = #tpu.dot_dimension_numbers<[1], [0], [0], [1], [0, 0, 1, 1], [], []>} : vector<8x96xf32>, vector<96x32xf32>, vector<8x32xf32> -> vector<8x32xf32>
    %103 = vector.broadcast %75 : vector<1x32xf32> to vector<8x32xf32>
    %104 = arith.addf %102, %103 : vector<8x32xf32>
    %cst_44 = arith.constant 0.000000e+00 : f32
    %105 = vector.broadcast %cst_44 : f32 to vector<8x32xf32>
    %106 = arith.maximumf %104, %105 : vector<8x32xf32>
    %c0_45 = arith.constant 0 : index
    %c0_46 = arith.constant 0 : index
    %c0_47 = arith.constant 0 : index
    %107 = vector.load %arg9[%c0_45, %c0_46, %c0_47] : memref<1x1x32xf32, #tpu.memory_space<vmem>>, vector<1x1x32xf32>
    %108 = vector.shape_cast %107 : vector<1x1x32xf32> to vector<1x32xf32>
    %c0_48 = arith.constant 0 : index
    %c0_49 = arith.constant 0 : index
    %c0_50 = arith.constant 0 : index
    %109 = vector.load %arg10[%c0_48, %c0_49, %c0_50] : memref<1x1x32xf32, #tpu.memory_space<vmem>>, vector<1x1x32xf32>
    %110 = vector.shape_cast %109 : vector<1x1x32xf32> to vector<1x32xf32>
    %cst_51 = arith.constant dense<0.000000e+00> : vector<8xf32>
    %111 = vector.multi_reduction <add>, %106, %cst_51 [1] : vector<8x32xf32> to vector<8xf32>
    %112 = vector.shape_cast %111 : vector<8xf32> to vector<8x1xf32>
    %cst_52 = arith.constant 3.200000e+01 : f32
    %113 = vector.broadcast %cst_52 : f32 to vector<8x1xf32>
    %114 = arith.divf %112, %113 : vector<8x1xf32>
    %115 = vector.broadcast %114 : vector<8x1xf32> to vector<8x32xf32>
    %116 = arith.subf %106, %115 : vector<8x32xf32>
    %117 = arith.mulf %116, %116 : vector<8x32xf32>
    %cst_53 = arith.constant dense<0.000000e+00> : vector<8xf32>
    %118 = vector.multi_reduction <add>, %117, %cst_53 [1] : vector<8x32xf32> to vector<8xf32>
    %119 = vector.shape_cast %118 : vector<8xf32> to vector<8x1xf32>
    %cst_54 = arith.constant 3.200000e+01 : f32
    %120 = vector.broadcast %cst_54 : f32 to vector<8x1xf32>
    %121 = arith.divf %119, %120 : vector<8x1xf32>
    %122 = vector.broadcast %114 : vector<8x1xf32> to vector<8x32xf32>
    %123 = arith.subf %106, %122 : vector<8x32xf32>
    %cst_55 = arith.constant 9.99999974E-6 : f32
    %124 = vector.broadcast %cst_55 : f32 to vector<8x1xf32>
    %125 = arith.addf %121, %124 : vector<8x1xf32>
    %126 = math.rsqrt %125 : vector<8x1xf32>
    %127 = vector.broadcast %126 : vector<8x1xf32> to vector<8x32xf32>
    %128 = arith.mulf %123, %127 : vector<8x32xf32>
    %129 = vector.broadcast %108 : vector<1x32xf32> to vector<8x32xf32>
    %130 = arith.mulf %128, %129 : vector<8x32xf32>
    %131 = vector.broadcast %110 : vector<1x32xf32> to vector<8x32xf32>
    %132 = arith.addf %130, %131 : vector<8x32xf32>
    %c0_56 = arith.constant 0 : index
    %c0_57 = arith.constant 0 : index
    %c0_58 = arith.constant 0 : index
    %133 = vector.load %arg11[%c0_56, %c0_57, %c0_58] : memref<1x1x32xf32, #tpu.memory_space<vmem>>, vector<1x1x32xf32>
    %134 = vector.shape_cast %133 : vector<1x1x32xf32> to vector<1x32xf32>
    %cst_59 = arith.constant dense<0.000000e+00> : vector<1x8xf32>
    %135 = tpu.matmul %134, %132, %cst_59 {dimension_numbers = #tpu.dot_dimension_numbers<[1], [1], [0], [0], [0, 0, 1, 0], [], []>} : vector<1x32xf32>, vector<8x32xf32>, vector<1x8xf32> -> vector<1x8xf32>
    %c0_60 = arith.constant 0 : index
    %c0_61 = arith.constant 0 : index
    %c0_62 = arith.constant 0 : index
    %136 = vector.load %arg12[%c0_60, %c0_61, %c0_62] : memref<1x1x1xf32, #tpu.memory_space<vmem>>, vector<1x1x1xf32>
    %137 = vector.shape_cast %136 : vector<1x1x1xf32> to vector<1x1xf32>
    %138 = vector.broadcast %137 : vector<1x1xf32> to vector<1x8xf32>
    %139 = arith.addf %135, %138 : vector<1x8xf32>
    %140 = arith.mulf %139, %8 : vector<1x8xf32>
    %141 = vector.shape_cast %140 : vector<1x8xf32> to vector<1x1x8xf32>
    %c0_63 = arith.constant 0 : index
    %c0_64 = arith.constant 0 : index
    %c0_65 = arith.constant 0 : index
    %142 = vector.load %arg13[%c0_63, %c0_64, %c0_65] : memref<1x1x8xf32, #tpu.memory_space<vmem>>, vector<1x1x8xf32>
    tpu.vector_store %arg13[%c0_63, %c0_64, %c0_65], %141 {strides = array<i32>} : memref<1x1x8xf32, #tpu.memory_space<vmem>>, vector<1x1x8xf32>,
    return
  }
  func.func @transform_0(%arg0: i32, %arg1: memref<2xi32, #tpu.memory_space<smem>>) -> (i32, i32, i32) {
    %c0_i32 = arith.constant 0 : i32
    %c0_i32_0 = arith.constant 0 : i32
    %c0_i32_1 = arith.constant 0 : i32
    return %arg0, %c0_i32, %c0_i32_0 : i32, i32, i32
  }
  func.func @transform_1(%arg0: i32, %arg1: memref<2xi32, #tpu.memory_space<smem>>) -> (i32, i32, i32) {
    %c0_i32 = arith.constant 0 : i32
    %c0_i32_0 = arith.constant 0 : i32
    %c0_i32_1 = arith.constant 0 : i32
    %c0_i32_2 = arith.constant 0 : i32
    return %c0_i32, %c0_i32_0, %c0_i32_1 : i32, i32, i32
  }
  func.func @transform_2(%arg0: i32, %arg1: memref<2xi32, #tpu.memory_space<smem>>) -> (i32, i32, i32) {
    %c0_i32 = arith.constant 0 : i32
    %c0_i32_0 = arith.constant 0 : i32
    %c0_i32_1 = arith.constant 0 : i32
    %c0_i32_2 = arith.constant 0 : i32
    return %c0_i32, %c0_i32_0, %c0_i32_1 : i32, i32, i32
  }
  func.func @transform_3(%arg0: i32, %arg1: memref<2xi32, #tpu.memory_space<smem>>) -> (i32, i32, i32) {
    %c0_i32 = arith.constant 0 : i32
    %c0_i32_0 = arith.constant 0 : i32
    %c0_i32_1 = arith.constant 0 : i32
    %c0_i32_2 = arith.constant 0 : i32
    return %c0_i32, %c0_i32_0, %c0_i32_1 : i32, i32, i32
  }
  func.func @transform_4(%arg0: i32, %arg1: memref<2xi32, #tpu.memory_space<smem>>) -> (i32, i32, i32) {
    %c0_i32 = arith.constant 0 : i32
    %c0_i32_0 = arith.constant 0 : i32
    %c0_i32_1 = arith.constant 0 : i32
    %c0_i32_2 = arith.constant 0 : i32
    return %c0_i32, %c0_i32_0, %c0_i32_1 : i32, i32, i32
  }
  func.func @transform_5(%arg0: i32, %arg1: memref<2xi32, #tpu.memory_space<smem>>) -> (i32, i32, i32) {
    %c0_i32 = arith.constant 0 : i32
    %c0_i32_0 = arith.constant 0 : i32
    %c0_i32_1 = arith.constant 0 : i32
    %c0_i32_2 = arith.constant 0 : i32
    return %c0_i32, %c0_i32_0, %c0_i32_1 : i32, i32, i32
  }
  func.func @transform_6(%arg0: i32, %arg1: memref<2xi32, #tpu.memory_space<smem>>) -> (i32, i32, i32) {
    %c0_i32 = arith.constant 0 : i32
    %c0_i32_0 = arith.constant 0 : i32
    %c0_i32_1 = arith.constant 0 : i32
    %c0_i32_2 = arith.constant 0 : i32
    return %c0_i32, %c0_i32_0, %c0_i32_1 : i32, i32, i32
  }
  func.func @transform_7(%arg0: i32, %arg1: memref<2xi32, #tpu.memory_space<smem>>) -> (i32, i32, i32) {
    %c0_i32 = arith.constant 0 : i32
    %c0_i32_0 = arith.constant 0 : i32
    %c0_i32_1 = arith.constant 0 : i32
    %c0_i32_2 = arith.constant 0 : i32
    return %c0_i32, %c0_i32_0, %c0_i32_1 : i32, i32, i32
  }
  func.func @transform_8(%arg0: i32, %arg1: memref<2xi32, #tpu.memory_space<smem>>) -> (i32, i32, i32) {
    %c0_i32 = arith.constant 0 : i32
    %c0_i32_0 = arith.constant 0 : i32
    %c0_i32_1 = arith.constant 0 : i32
    %c0_i32_2 = arith.constant 0 : i32
    return %c0_i32, %c0_i32_0, %c0_i32_1 : i32, i32, i32
  }
  func.func @transform_9(%arg0: i32, %arg1: memref<2xi32, #tpu.memory_space<smem>>) -> (i32, i32, i32) {
    %c0_i32 = arith.constant 0 : i32
    %c0_i32_0 = arith.constant 0 : i32
    %c0_i32_1 = arith.constant 0 : i32
    %c0_i32_2 = arith.constant 0 : i32
    return %c0_i32, %c0_i32_0, %c0_i32_1 : i32, i32, i32
  }
  func.func @transform_10(%arg0: i32, %arg1: memref<2xi32, #tpu.memory_space<smem>>) -> (i32, i32, i32) {
    %c0_i32 = arith.constant 0 : i32
    %c0_i32_0 = arith.constant 0 : i32
    %c0_i32_1 = arith.constant 0 : i32
    %c0_i32_2 = arith.constant 0 : i32
    return %c0_i32, %c0_i32_0, %c0_i32_1 : i32, i32, i32
  }
  func.func @transform_11(%arg0: i32, %arg1: memref<2xi32, #tpu.memory_space<smem>>) -> (i32, i32, i32) {
    %c0_i32 = arith.constant 0 : i32
    %c0_i32_0 = arith.constant 0 : i32
    %c0_i32_1 = arith.constant 0 : i32
    return %arg0, %c0_i32, %c0_i32_0 : i32, i32, i32
  }
}

module attributes {stable_mosaic.version = 11 : i64} {
  func.func @_var_predictor_kernel(%arg0: i32, %arg1: memref<2xi32, #tpu.memory_space<smem>>, %arg2: memref<1x8x32xf32, #tpu.memory_space<vmem>>, %arg3: memref<2x96x32xf32, #tpu.memory_space<vmem>>, %arg4: memref<2x1x32xf32, #tpu.memory_space<vmem>>, %arg5: memref<2x1x32xf32, #tpu.memory_space<vmem>>, %arg6: memref<2x1x32xf32, #tpu.memory_space<vmem>>, %arg7: memref<2x96x32xf32, #tpu.memory_space<vmem>>, %arg8: memref<2x1x32xf32, #tpu.memory_space<vmem>>, %arg9: memref<2x1x32xf32, #tpu.memory_space<vmem>>, %arg10: memref<2x1x32xf32, #tpu.memory_space<vmem>>, %arg11: memref<2x1x32xf32, #tpu.memory_space<vmem>>, %arg12: memref<2x1x1xf32, #tpu.memory_space<vmem>>, %arg13: memref<1x2x8xf32, #tpu.memory_space<vmem>>) attributes {dimension_semantics = [#tpu.dimension_semantics<parallel>], iteration_bounds = array<i64: 2>, scalar_prefetch = 1 : i64, scratch_operands = 0 : i64, tpu.core_type = #tpu.core_type<tc>, window_params = [{transform_indices = @transform_0, window_bounds = array<i64: 1, 8, 32>}, {pipeline_mode = #tpu.pipeline_mode<synchronous>, transform_indices = @transform_1, window_bounds = array<i64: 2, 96, 32>}, {pipeline_mode = #tpu.pipeline_mode<synchronous>, transform_indices = @transform_2, window_bounds = array<i64: 2, 1, 32>}, {pipeline_mode = #tpu.pipeline_mode<synchronous>, transform_indices = @transform_3, window_bounds = array<i64: 2, 1, 32>}, {pipeline_mode = #tpu.pipeline_mode<synchronous>, transform_indices = @transform_4, window_bounds = array<i64: 2, 1, 32>}, {pipeline_mode = #tpu.pipeline_mode<synchronous>, transform_indices = @transform_5, window_bounds = array<i64: 2, 96, 32>}, {pipeline_mode = #tpu.pipeline_mode<synchronous>, transform_indices = @transform_6, window_bounds = array<i64: 2, 1, 32>}, {pipeline_mode = #tpu.pipeline_mode<synchronous>, transform_indices = @transform_7, window_bounds = array<i64: 2, 1, 32>}, {pipeline_mode = #tpu.pipeline_mode<synchronous>, transform_indices = @transform_8, window_bounds = array<i64: 2, 1, 32>}, {pipeline_mode = #tpu.pipeline_mode<synchronous>, transform_indices = @transform_9, window_bounds = array<i64: 2, 1, 32>}, {pipeline_mode = #tpu.pipeline_mode<synchronous>, transform_indices = @transform_10, window_bounds = array<i64: 2, 1, 1>}, {transform_indices = @transform_11, window_bounds = array<i64: 1, 2, 8>}]} {
    %c1_i32 = arith.constant 1 : i32
    %0 = arith.muli %arg0, %c1_i32 : i32
    %c0_i32 = arith.constant 0 : i32
    %1 = arith.addi %0, %c0_i32 : i32
    %2 = arith.index_cast %1 : i32 to index
    %3 = memref.load %arg1[%2] : memref<2xi32, #tpu.memory_space<smem>>
    %4 = tpu.iota {dimensions = array<i32: 1>} : vector<1x8xi32>
    %5 = vector.broadcast %3 : i32 to vector<1x8xi32>
    %6 = arith.cmpi slt, %4, %5 : vector<1x8xi32>
    %7 = arith.extui %6 : vector<1x8xi1> to vector<1x8xi32>
    %8 = arith.sitofp %7 : vector<1x8xi32> to vector<1x8xf32>
    %c0 = arith.constant 0 : index
    %c0_0 = arith.constant 0 : index
    %c0_1 = arith.constant 0 : index
    %9 = vector.load %arg2[%c0, %c0_0, %c0_1] : memref<1x8x32xf32, #tpu.memory_space<vmem>>, vector<1x8x32xf32>
    %10 = vector.shape_cast %9 : vector<1x8x32xf32> to vector<8x32xf32>
    %c0_2 = arith.constant 0 : index
    %c0_3 = arith.constant 0 : index
    %c0_4 = arith.constant 0 : index
    %11 = vector.load %arg3[%c0_2, %c0_3, %c0_4] : memref<2x96x32xf32, #tpu.memory_space<vmem>>, vector<1x96x32xf32>
    %12 = vector.shape_cast %11 : vector<1x96x32xf32> to vector<96x32xf32>
    %c0_5 = arith.constant 0 : index
    %c0_6 = arith.constant 0 : index
    %c0_7 = arith.constant 0 : index
    %13 = vector.load %arg4[%c0_5, %c0_6, %c0_7] : memref<2x1x32xf32, #tpu.memory_space<vmem>>, vector<1x1x32xf32>
    %14 = vector.shape_cast %13 : vector<1x1x32xf32> to vector<1x32xf32>
    %15 = tpu.iota {dimensions = array<i32: 0>} : vector<8x1xi32>
    %c1_i32_8 = arith.constant 1 : i32
    %16 = tpu.dynamic_rotate %10 by %c1_i32_8 dim 0 : vector<8x32xf32>, i32 -> vector<8x32xf32>
    %c-1_i32 = arith.constant -1 : i32
    %17 = vector.broadcast %c-1_i32 : i32 to vector<8x1xi32>
    %18 = arith.addi %15, %17 : vector<8x1xi32>
    %c0_i32_9 = arith.constant 0 : i32
    %19 = vector.broadcast %c0_i32_9 : i32 to vector<8x1xi32>
    %20 = arith.cmpi sge, %18, %19 : vector<8x1xi32>
    %c8_i32 = arith.constant 8 : i32
    %21 = vector.broadcast %c8_i32 : i32 to vector<8x1xi32>
    %22 = arith.cmpi slt, %18, %21 : vector<8x1xi32>
    %23 = arith.andi %20, %22 : vector<8x1xi1>
    %cst = arith.constant 0.000000e+00 : f32
    %24 = vector.shape_cast %23 : vector<8x1xi1> to vector<8x1xi1>
    %25 = vector.broadcast %24 : vector<8x1xi1> to vector<8x32xi1>
    %26 = vector.broadcast %cst : f32 to vector<8x32xf32>
    %27 = arith.select %25, %16, %26 : vector<8x32xi1>, vector<8x32xf32>
    %c7_i32 = arith.constant 7 : i32
    %28 = tpu.dynamic_rotate %10 by %c7_i32 dim 0 : vector<8x32xf32>, i32 -> vector<8x32xf32>
    %c1_i32_10 = arith.constant 1 : i32
    %29 = vector.broadcast %c1_i32_10 : i32 to vector<8x1xi32>
    %30 = arith.addi %15, %29 : vector<8x1xi32>
    %c0_i32_11 = arith.constant 0 : i32
    %31 = vector.broadcast %c0_i32_11 : i32 to vector<8x1xi32>
    %32 = arith.cmpi sge, %30, %31 : vector<8x1xi32>
    %c8_i32_12 = arith.constant 8 : i32
    %33 = vector.broadcast %c8_i32_12 : i32 to vector<8x1xi32>
    %34 = arith.cmpi slt, %30, %33 : vector<8x1xi32>
    %35 = arith.andi %32, %34 : vector<8x1xi1>
    %cst_13 = arith.constant 0.000000e+00 : f32
    %36 = vector.shape_cast %35 : vector<8x1xi1> to vector<8x1xi1>
    %37 = vector.broadcast %36 : vector<8x1xi1> to vector<8x32xi1>
    %38 = vector.broadcast %cst_13 : f32 to vector<8x32xf32>
    %39 = arith.select %37, %28, %38 : vector<8x32xi1>, vector<8x32xf32>
    %40 = tpu.concatenate %27, %10, %39 in 1 : vector<8x32xf32>, vector<8x32xf32>, vector<8x32xf32> -> vector<8x96xf32>
    %cst_14 = arith.constant dense<0.000000e+00> : vector<8x32xf32>
    %41 = tpu.matmul %40, %12, %cst_14 {dimension_numbers = #tpu.dot_dimension_numbers<[1], [0], [0], [1], [0, 0, 1, 1], [], []>} : vector<8x96xf32>, vector<96x32xf32>, vector<8x32xf32> -> vector<8x32xf32>
    %42 = vector.broadcast %14 : vector<1x32xf32> to vector<8x32xf32>
    %43 = arith.addf %41, %42 : vector<8x32xf32>
    %cst_15 = arith.constant 0.000000e+00 : f32
    %44 = vector.broadcast %cst_15 : f32 to vector<8x32xf32>
    %45 = arith.maximumf %43, %44 : vector<8x32xf32>
    %c0_16 = arith.constant 0 : index
    %c0_17 = arith.constant 0 : index
    %c0_18 = arith.constant 0 : index
    %46 = vector.load %arg5[%c0_16, %c0_17, %c0_18] : memref<2x1x32xf32, #tpu.memory_space<vmem>>, vector<1x1x32xf32>
    %47 = vector.shape_cast %46 : vector<1x1x32xf32> to vector<1x32xf32>
    %c0_19 = arith.constant 0 : index
    %c0_20 = arith.constant 0 : index
    %c0_21 = arith.constant 0 : index
    %48 = vector.load %arg6[%c0_19, %c0_20, %c0_21] : memref<2x1x32xf32, #tpu.memory_space<vmem>>, vector<1x1x32xf32>
    %49 = vector.shape_cast %48 : vector<1x1x32xf32> to vector<1x32xf32>
    %cst_22 = arith.constant dense<0.000000e+00> : vector<8xf32>
    %50 = vector.multi_reduction <add>, %45, %cst_22 [1] : vector<8x32xf32> to vector<8xf32>
    %51 = vector.shape_cast %50 : vector<8xf32> to vector<8x1xf32>
    %cst_23 = arith.constant 3.200000e+01 : f32
    %52 = vector.broadcast %cst_23 : f32 to vector<8x1xf32>
    %53 = arith.divf %51, %52 : vector<8x1xf32>
    %54 = vector.broadcast %53 : vector<8x1xf32> to vector<8x32xf32>
    %55 = arith.subf %45, %54 : vector<8x32xf32>
    %56 = arith.mulf %55, %55 : vector<8x32xf32>
    %cst_24 = arith.constant dense<0.000000e+00> : vector<8xf32>
    %57 = vector.multi_reduction <add>, %56, %cst_24 [1] : vector<8x32xf32> to vector<8xf32>
    %58 = vector.shape_cast %57 : vector<8xf32> to vector<8x1xf32>
    %cst_25 = arith.constant 3.200000e+01 : f32
    %59 = vector.broadcast %cst_25 : f32 to vector<8x1xf32>
    %60 = arith.divf %58, %59 : vector<8x1xf32>
    %61 = vector.broadcast %53 : vector<8x1xf32> to vector<8x32xf32>
    %62 = arith.subf %45, %61 : vector<8x32xf32>
    %cst_26 = arith.constant 9.99999974E-6 : f32
    %63 = vector.broadcast %cst_26 : f32 to vector<8x1xf32>
    %64 = arith.addf %60, %63 : vector<8x1xf32>
    %65 = math.rsqrt %64 : vector<8x1xf32>
    %66 = vector.broadcast %65 : vector<8x1xf32> to vector<8x32xf32>
    %67 = arith.mulf %62, %66 : vector<8x32xf32>
    %68 = vector.broadcast %47 : vector<1x32xf32> to vector<8x32xf32>
    %69 = arith.mulf %67, %68 : vector<8x32xf32>
    %70 = vector.broadcast %49 : vector<1x32xf32> to vector<8x32xf32>
    %71 = arith.addf %69, %70 : vector<8x32xf32>
    %c0_27 = arith.constant 0 : index
    %c0_28 = arith.constant 0 : index
    %c0_29 = arith.constant 0 : index
    %72 = vector.load %arg7[%c0_27, %c0_28, %c0_29] : memref<2x96x32xf32, #tpu.memory_space<vmem>>, vector<1x96x32xf32>
    %73 = vector.shape_cast %72 : vector<1x96x32xf32> to vector<96x32xf32>
    %c0_30 = arith.constant 0 : index
    %c0_31 = arith.constant 0 : index
    %c0_32 = arith.constant 0 : index
    %74 = vector.load %arg8[%c0_30, %c0_31, %c0_32] : memref<2x1x32xf32, #tpu.memory_space<vmem>>, vector<1x1x32xf32>
    %75 = vector.shape_cast %74 : vector<1x1x32xf32> to vector<1x32xf32>
    %76 = tpu.iota {dimensions = array<i32: 0>} : vector<8x1xi32>
    %c1_i32_33 = arith.constant 1 : i32
    %77 = tpu.dynamic_rotate %71 by %c1_i32_33 dim 0 : vector<8x32xf32>, i32 -> vector<8x32xf32>
    %c-1_i32_34 = arith.constant -1 : i32
    %78 = vector.broadcast %c-1_i32_34 : i32 to vector<8x1xi32>
    %79 = arith.addi %76, %78 : vector<8x1xi32>
    %c0_i32_35 = arith.constant 0 : i32
    %80 = vector.broadcast %c0_i32_35 : i32 to vector<8x1xi32>
    %81 = arith.cmpi sge, %79, %80 : vector<8x1xi32>
    %c8_i32_36 = arith.constant 8 : i32
    %82 = vector.broadcast %c8_i32_36 : i32 to vector<8x1xi32>
    %83 = arith.cmpi slt, %79, %82 : vector<8x1xi32>
    %84 = arith.andi %81, %83 : vector<8x1xi1>
    %cst_37 = arith.constant 0.000000e+00 : f32
    %85 = vector.shape_cast %84 : vector<8x1xi1> to vector<8x1xi1>
    %86 = vector.broadcast %85 : vector<8x1xi1> to vector<8x32xi1>
    %87 = vector.broadcast %cst_37 : f32 to vector<8x32xf32>
    %88 = arith.select %86, %77, %87 : vector<8x32xi1>, vector<8x32xf32>
    %c7_i32_38 = arith.constant 7 : i32
    %89 = tpu.dynamic_rotate %71 by %c7_i32_38 dim 0 : vector<8x32xf32>, i32 -> vector<8x32xf32>
    %c1_i32_39 = arith.constant 1 : i32
    %90 = vector.broadcast %c1_i32_39 : i32 to vector<8x1xi32>
    %91 = arith.addi %76, %90 : vector<8x1xi32>
    %c0_i32_40 = arith.constant 0 : i32
    %92 = vector.broadcast %c0_i32_40 : i32 to vector<8x1xi32>
    %93 = arith.cmpi sge, %91, %92 : vector<8x1xi32>
    %c8_i32_41 = arith.constant 8 : i32
    %94 = vector.broadcast %c8_i32_41 : i32 to vector<8x1xi32>
    %95 = arith.cmpi slt, %91, %94 : vector<8x1xi32>
    %96 = arith.andi %93, %95 : vector<8x1xi1>
    %cst_42 = arith.constant 0.000000e+00 : f32
    %97 = vector.shape_cast %96 : vector<8x1xi1> to vector<8x1xi1>
    %98 = vector.broadcast %97 : vector<8x1xi1> to vector<8x32xi1>
    %99 = vector.broadcast %cst_42 : f32 to vector<8x32xf32>
    %100 = arith.select %98, %89, %99 : vector<8x32xi1>, vector<8x32xf32>
    %101 = tpu.concatenate %88, %71, %100 in 1 : vector<8x32xf32>, vector<8x32xf32>, vector<8x32xf32> -> vector<8x96xf32>
    %cst_43 = arith.constant dense<0.000000e+00> : vector<8x32xf32>
    %102 = tpu.matmul %101, %73, %cst_43 {dimension_numbers = #tpu.dot_dimension_numbers<[1], [0], [0], [1], [0, 0, 1, 1], [], []>} : vector<8x96xf32>, vector<96x32xf32>, vector<8x32xf32> -> vector<8x32xf32>
    %103 = vector.broadcast %75 : vector<1x32xf32> to vector<8x32xf32>
    %104 = arith.addf %102, %103 : vector<8x32xf32>
    %cst_44 = arith.constant 0.000000e+00 : f32
    %105 = vector.broadcast %cst_44 : f32 to vector<8x32xf32>
    %106 = arith.maximumf %104, %105 : vector<8x32xf32>
    %c0_45 = arith.constant 0 : index
    %c0_46 = arith.constant 0 : index
    %c0_47 = arith.constant 0 : index
    %107 = vector.load %arg9[%c0_45, %c0_46, %c0_47] : memref<2x1x32xf32, #tpu.memory_space<vmem>>, vector<1x1x32xf32>
    %108 = vector.shape_cast %107 : vector<1x1x32xf32> to vector<1x32xf32>
    %c0_48 = arith.constant 0 : index
    %c0_49 = arith.constant 0 : index
    %c0_50 = arith.constant 0 : index
    %109 = vector.load %arg10[%c0_48, %c0_49, %c0_50] : memref<2x1x32xf32, #tpu.memory_space<vmem>>, vector<1x1x32xf32>
    %110 = vector.shape_cast %109 : vector<1x1x32xf32> to vector<1x32xf32>
    %cst_51 = arith.constant dense<0.000000e+00> : vector<8xf32>
    %111 = vector.multi_reduction <add>, %106, %cst_51 [1] : vector<8x32xf32> to vector<8xf32>
    %112 = vector.shape_cast %111 : vector<8xf32> to vector<8x1xf32>
    %cst_52 = arith.constant 3.200000e+01 : f32
    %113 = vector.broadcast %cst_52 : f32 to vector<8x1xf32>
    %114 = arith.divf %112, %113 : vector<8x1xf32>
    %115 = vector.broadcast %114 : vector<8x1xf32> to vector<8x32xf32>
    %116 = arith.subf %106, %115 : vector<8x32xf32>
    %117 = arith.mulf %116, %116 : vector<8x32xf32>
    %cst_53 = arith.constant dense<0.000000e+00> : vector<8xf32>
    %118 = vector.multi_reduction <add>, %117, %cst_53 [1] : vector<8x32xf32> to vector<8xf32>
    %119 = vector.shape_cast %118 : vector<8xf32> to vector<8x1xf32>
    %cst_54 = arith.constant 3.200000e+01 : f32
    %120 = vector.broadcast %cst_54 : f32 to vector<8x1xf32>
    %121 = arith.divf %119, %120 : vector<8x1xf32>
    %122 = vector.broadcast %114 : vector<8x1xf32> to vector<8x32xf32>
    %123 = arith.subf %106, %122 : vector<8x32xf32>
    %cst_55 = arith.constant 9.99999974E-6 : f32
    %124 = vector.broadcast %cst_55 : f32 to vector<8x1xf32>
    %125 = arith.addf %121, %124 : vector<8x1xf32>
    %126 = math.rsqrt %125 : vector<8x1xf32>
    %127 = vector.broadcast %126 : vector<8x1xf32> to vector<8x32xf32>
    %128 = arith.mulf %123, %127 : vector<8x32xf32>
    %129 = vector.broadcast %108 : vector<1x32xf32> to vector<8x32xf32>
    %130 = arith.mulf %128, %129 : vector<8x32xf32>
    %131 = vector.broadcast %110 : vector<1x32xf32> to vector<8x32xf32>
    %132 = arith.addf %130, %131 : vector<8x32xf32>
    %c0_56 = arith.constant 0 : index
    %c0_57 = arith.constant 0 : index
    %c0_58 = arith.constant 0 : index
    %133 = vector.load %arg11[%c0_56, %c0_57, %c0_58] : memref<2x1x32xf32, #tpu.memory_space<vmem>>, vector<1x1x32xf32>
    %134 = vector.shape_cast %133 : vector<1x1x32xf32> to vector<1x32xf32>
    %cst_59 = arith.constant dense<0.000000e+00> : vector<1x8xf32>
    %135 = tpu.matmul %134, %132, %cst_59 {dimension_numbers = #tpu.dot_dimension_numbers<[1], [1], [0], [0], [0, 0, 1, 0], [], []>} : vector<1x32xf32>, vector<8x32xf32>, vector<1x8xf32> -> vector<1x8xf32>
    %c0_60 = arith.constant 0 : index
    %c0_61 = arith.constant 0 : index
    %c0_62 = arith.constant 0 : index
    %136 = vector.load %arg12[%c0_60, %c0_61, %c0_62] : memref<2x1x1xf32, #tpu.memory_space<vmem>>, vector<1x1x1xf32>
    %137 = vector.shape_cast %136 : vector<1x1x1xf32> to vector<1x1xf32>
    %138 = vector.broadcast %137 : vector<1x1xf32> to vector<1x8xf32>
    %139 = arith.addf %135, %138 : vector<1x8xf32>
    %140 = arith.mulf %139, %8 : vector<1x8xf32>
    %c1 = arith.constant 1 : index
    %c0_63 = arith.constant 0 : index
    %c0_64 = arith.constant 0 : index
    %141 = vector.load %arg3[%c1, %c0_63, %c0_64] : memref<2x96x32xf32, #tpu.memory_space<vmem>>, vector<1x96x32xf32>
    %142 = vector.shape_cast %141 : vector<1x96x32xf32> to vector<96x32xf32>
    %c1_65 = arith.constant 1 : index
    %c0_66 = arith.constant 0 : index
    %c0_67 = arith.constant 0 : index
    %143 = vector.load %arg4[%c1_65, %c0_66, %c0_67] : memref<2x1x32xf32, #tpu.memory_space<vmem>>, vector<1x1x32xf32>
    %144 = vector.shape_cast %143 : vector<1x1x32xf32> to vector<1x32xf32>
    %145 = tpu.iota {dimensions = array<i32: 0>} : vector<8x1xi32>
    %c1_i32_68 = arith.constant 1 : i32
    %146 = tpu.dynamic_rotate %10 by %c1_i32_68 dim 0 : vector<8x32xf32>, i32 -> vector<8x32xf32>
    %c-1_i32_69 = arith.constant -1 : i32
    %147 = vector.broadcast %c-1_i32_69 : i32 to vector<8x1xi32>
    %148 = arith.addi %145, %147 : vector<8x1xi32>
    %c0_i32_70 = arith.constant 0 : i32
    %149 = vector.broadcast %c0_i32_70 : i32 to vector<8x1xi32>
    %150 = arith.cmpi sge, %148, %149 : vector<8x1xi32>
    %c8_i32_71 = arith.constant 8 : i32
    %151 = vector.broadcast %c8_i32_71 : i32 to vector<8x1xi32>
    %152 = arith.cmpi slt, %148, %151 : vector<8x1xi32>
    %153 = arith.andi %150, %152 : vector<8x1xi1>
    %cst_72 = arith.constant 0.000000e+00 : f32
    %154 = vector.shape_cast %153 : vector<8x1xi1> to vector<8x1xi1>
    %155 = vector.broadcast %154 : vector<8x1xi1> to vector<8x32xi1>
    %156 = vector.broadcast %cst_72 : f32 to vector<8x32xf32>
    %157 = arith.select %155, %146, %156 : vector<8x32xi1>, vector<8x32xf32>
    %c7_i32_73 = arith.constant 7 : i32
    %158 = tpu.dynamic_rotate %10 by %c7_i32_73 dim 0 : vector<8x32xf32>, i32 -> vector<8x32xf32>
    %c1_i32_74 = arith.constant 1 : i32
    %159 = vector.broadcast %c1_i32_74 : i32 to vector<8x1xi32>
    %160 = arith.addi %145, %159 : vector<8x1xi32>
    %c0_i32_75 = arith.constant 0 : i32
    %161 = vector.broadcast %c0_i32_75 : i32 to vector<8x1xi32>
    %162 = arith.cmpi sge, %160, %161 : vector<8x1xi32>
    %c8_i32_76 = arith.constant 8 : i32
    %163 = vector.broadcast %c8_i32_76 : i32 to vector<8x1xi32>
    %164 = arith.cmpi slt, %160, %163 : vector<8x1xi32>
    %165 = arith.andi %162, %164 : vector<8x1xi1>
    %cst_77 = arith.constant 0.000000e+00 : f32
    %166 = vector.shape_cast %165 : vector<8x1xi1> to vector<8x1xi1>
    %167 = vector.broadcast %166 : vector<8x1xi1> to vector<8x32xi1>
    %168 = vector.broadcast %cst_77 : f32 to vector<8x32xf32>
    %169 = arith.select %167, %158, %168 : vector<8x32xi1>, vector<8x32xf32>
    %170 = tpu.concatenate %157, %10, %169 in 1 : vector<8x32xf32>, vector<8x32xf32>, vector<8x32xf32> -> vector<8x96xf32>
    %cst_78 = arith.constant dense<0.000000e+00> : vector<8x32xf32>
    %171 = tpu.matmul %170, %142, %cst_78 {dimension_numbers = #tpu.dot_dimension_numbers<[1], [0], [0], [1], [0, 0, 1, 1], [], []>} : vector<8x96xf32>, vector<96x32xf32>, vector<8x32xf32> -> vector<8x32xf32>
    %172 = vector.broadcast %144 : vector<1x32xf32> to vector<8x32xf32>
    %173 = arith.addf %171, %172 : vector<8x32xf32>
    %cst_79 = arith.constant 0.000000e+00 : f32
    %174 = vector.broadcast %cst_79 : f32 to vector<8x32xf32>
    %175 = arith.maximumf %173, %174 : vector<8x32xf32>
    %c1_80 = arith.constant 1 : index
    %c0_81 = arith.constant 0 : index
    %c0_82 = arith.constant 0 : index
    %176 = vector.load %arg5[%c1_80, %c0_81, %c0_82] : memref<2x1x32xf32, #tpu.memory_space<vmem>>, vector<1x1x32xf32>
    %177 = vector.shape_cast %176 : vector<1x1x32xf32> to vector<1x32xf32>
    %c1_83 = arith.constant 1 : index
    %c0_84 = arith.constant 0 : index
    %c0_85 = arith.constant 0 : index
    %178 = vector.load %arg6[%c1_83, %c0_84, %c0_85] : memref<2x1x32xf32, #tpu.memory_space<vmem>>, vector<1x1x32xf32>
    %179 = vector.shape_cast %178 : vector<1x1x32xf32> to vector<1x32xf32>
    %cst_86 = arith.constant dense<0.000000e+00> : vector<8xf32>
    %180 = vector.multi_reduction <add>, %175, %cst_86 [1] : vector<8x32xf32> to vector<8xf32>
    %181 = vector.shape_cast %180 : vector<8xf32> to vector<8x1xf32>
    %cst_87 = arith.constant 3.200000e+01 : f32
    %182 = vector.broadcast %cst_87 : f32 to vector<8x1xf32>
    %183 = arith.divf %181, %182 : vector<8x1xf32>
    %184 = vector.broadcast %183 : vector<8x1xf32> to vector<8x32xf32>
    %185 = arith.subf %175, %184 : vector<8x32xf32>
    %186 = arith.mulf %185, %185 : vector<8x32xf32>
    %cst_88 = arith.constant dense<0.000000e+00> : vector<8xf32>
    %187 = vector.multi_reduction <add>, %186, %cst_88 [1] : vector<8x32xf32> to vector<8xf32>
    %188 = vector.shape_cast %187 : vector<8xf32> to vector<8x1xf32>
    %cst_89 = arith.constant 3.200000e+01 : f32
    %189 = vector.broadcast %cst_89 : f32 to vector<8x1xf32>
    %190 = arith.divf %188, %189 : vector<8x1xf32>
    %191 = vector.broadcast %183 : vector<8x1xf32> to vector<8x32xf32>
    %192 = arith.subf %175, %191 : vector<8x32xf32>
    %cst_90 = arith.constant 9.99999974E-6 : f32
    %193 = vector.broadcast %cst_90 : f32 to vector<8x1xf32>
    %194 = arith.addf %190, %193 : vector<8x1xf32>
    %195 = math.rsqrt %194 : vector<8x1xf32>
    %196 = vector.broadcast %195 : vector<8x1xf32> to vector<8x32xf32>
    %197 = arith.mulf %192, %196 : vector<8x32xf32>
    %198 = vector.broadcast %177 : vector<1x32xf32> to vector<8x32xf32>
    %199 = arith.mulf %197, %198 : vector<8x32xf32>
    %200 = vector.broadcast %179 : vector<1x32xf32> to vector<8x32xf32>
    %201 = arith.addf %199, %200 : vector<8x32xf32>
    %c1_91 = arith.constant 1 : index
    %c0_92 = arith.constant 0 : index
    %c0_93 = arith.constant 0 : index
    %202 = vector.load %arg7[%c1_91, %c0_92, %c0_93] : memref<2x96x32xf32, #tpu.memory_space<vmem>>, vector<1x96x32xf32>
    %203 = vector.shape_cast %202 : vector<1x96x32xf32> to vector<96x32xf32>
    %c1_94 = arith.constant 1 : index
    %c0_95 = arith.constant 0 : index
    %c0_96 = arith.constant 0 : index
    %204 = vector.load %arg8[%c1_94, %c0_95, %c0_96] : memref<2x1x32xf32, #tpu.memory_space<vmem>>, vector<1x1x32xf32>
    %205 = vector.shape_cast %204 : vector<1x1x32xf32> to vector<1x32xf32>
    %206 = tpu.iota {dimensions = array<i32: 0>} : vector<8x1xi32>
    %c1_i32_97 = arith.constant 1 : i32
    %207 = tpu.dynamic_rotate %201 by %c1_i32_97 dim 0 : vector<8x32xf32>, i32 -> vector<8x32xf32>
    %c-1_i32_98 = arith.constant -1 : i32
    %208 = vector.broadcast %c-1_i32_98 : i32 to vector<8x1xi32>
    %209 = arith.addi %206, %208 : vector<8x1xi32>
    %c0_i32_99 = arith.constant 0 : i32
    %210 = vector.broadcast %c0_i32_99 : i32 to vector<8x1xi32>
    %211 = arith.cmpi sge, %209, %210 : vector<8x1xi32>
    %c8_i32_100 = arith.constant 8 : i32
    %212 = vector.broadcast %c8_i32_100 : i32 to vector<8x1xi32>
    %213 = arith.cmpi slt, %209, %212 : vector<8x1xi32>
    %214 = arith.andi %211, %213 : vector<8x1xi1>
    %cst_101 = arith.constant 0.000000e+00 : f32
    %215 = vector.shape_cast %214 : vector<8x1xi1> to vector<8x1xi1>
    %216 = vector.broadcast %215 : vector<8x1xi1> to vector<8x32xi1>
    %217 = vector.broadcast %cst_101 : f32 to vector<8x32xf32>
    %218 = arith.select %216, %207, %217 : vector<8x32xi1>, vector<8x32xf32>
    %c7_i32_102 = arith.constant 7 : i32
    %219 = tpu.dynamic_rotate %201 by %c7_i32_102 dim 0 : vector<8x32xf32>, i32 -> vector<8x32xf32>
    %c1_i32_103 = arith.constant 1 : i32
    %220 = vector.broadcast %c1_i32_103 : i32 to vector<8x1xi32>
    %221 = arith.addi %206, %220 : vector<8x1xi32>
    %c0_i32_104 = arith.constant 0 : i32
    %222 = vector.broadcast %c0_i32_104 : i32 to vector<8x1xi32>
    %223 = arith.cmpi sge, %221, %222 : vector<8x1xi32>
    %c8_i32_105 = arith.constant 8 : i32
    %224 = vector.broadcast %c8_i32_105 : i32 to vector<8x1xi32>
    %225 = arith.cmpi slt, %221, %224 : vector<8x1xi32>
    %226 = arith.andi %223, %225 : vector<8x1xi1>
    %cst_106 = arith.constant 0.000000e+00 : f32
    %227 = vector.shape_cast %226 : vector<8x1xi1> to vector<8x1xi1>
    %228 = vector.broadcast %227 : vector<8x1xi1> to vector<8x32xi1>
    %229 = vector.broadcast %cst_106 : f32 to vector<8x32xf32>
    %230 = arith.select %228, %219, %229 : vector<8x32xi1>, vector<8x32xf32>
    %231 = tpu.concatenate %218, %201, %230 in 1 : vector<8x32xf32>, vector<8x32xf32>, vector<8x32xf32> -> vector<8x96xf32>
    %cst_107 = arith.constant dense<0.000000e+00> : vector<8x32xf32>
    %232 = tpu.matmul %231, %203, %cst_107 {dimension_numbers = #tpu.dot_dimension_numbers<[1], [0], [0], [1], [0, 0, 1, 1], [], []>} : vector<8x96xf32>, vector<96x32xf32>, vector<8x32xf32> -> vector<8x32xf32>
    %233 = vector.broadcast %205 : vector<1x32xf32> to vector<8x32xf32>
    %234 = arith.addf %232, %233 : vector<8x32xf32>
    %cst_108 = arith.constant 0.000000e+00 : f32
    %235 = vector.broadcast %cst_108 : f32 to vector<8x32xf32>
    %236 = arith.maximumf %234, %235 : vector<8x32xf32>
    %c1_109 = arith.constant 1 : index
    %c0_110 = arith.constant 0 : index
    %c0_111 = arith.constant 0 : index
    %237 = vector.load %arg9[%c1_109, %c0_110, %c0_111] : memref<2x1x32xf32, #tpu.memory_space<vmem>>, vector<1x1x32xf32>
    %238 = vector.shape_cast %237 : vector<1x1x32xf32> to vector<1x32xf32>
    %c1_112 = arith.constant 1 : index
    %c0_113 = arith.constant 0 : index
    %c0_114 = arith.constant 0 : index
    %239 = vector.load %arg10[%c1_112, %c0_113, %c0_114] : memref<2x1x32xf32, #tpu.memory_space<vmem>>, vector<1x1x32xf32>
    %240 = vector.shape_cast %239 : vector<1x1x32xf32> to vector<1x32xf32>
    %cst_115 = arith.constant dense<0.000000e+00> : vector<8xf32>
    %241 = vector.multi_reduction <add>, %236, %cst_115 [1] : vector<8x32xf32> to vector<8xf32>
    %242 = vector.shape_cast %241 : vector<8xf32> to vector<8x1xf32>
    %cst_116 = arith.constant 3.200000e+01 : f32
    %243 = vector.broadcast %cst_116 : f32 to vector<8x1xf32>
    %244 = arith.divf %242, %243 : vector<8x1xf32>
    %245 = vector.broadcast %244 : vector<8x1xf32> to vector<8x32xf32>
    %246 = arith.subf %236, %245 : vector<8x32xf32>
    %247 = arith.mulf %246, %246 : vector<8x32xf32>
    %cst_117 = arith.constant dense<0.000000e+00> : vector<8xf32>
    %248 = vector.multi_reduction <add>, %247, %cst_117 [1] : vector<8x32xf32> to vector<8xf32>
    %249 = vector.shape_cast %248 : vector<8xf32> to vector<8x1xf32>
    %cst_118 = arith.constant 3.200000e+01 : f32
    %250 = vector.broadcast %cst_118 : f32 to vector<8x1xf32>
    %251 = arith.divf %249, %250 : vector<8x1xf32>
    %252 = vector.broadcast %244 : vector<8x1xf32> to vector<8x32xf32>
    %253 = arith.subf %236, %252 : vector<8x32xf32>
    %cst_119 = arith.constant 9.99999974E-6 : f32
    %254 = vector.broadcast %cst_119 : f32 to vector<8x1xf32>
    %255 = arith.addf %251, %254 : vector<8x1xf32>
    %256 = math.rsqrt %255 : vector<8x1xf32>
    %257 = vector.broadcast %256 : vector<8x1xf32> to vector<8x32xf32>
    %258 = arith.mulf %253, %257 : vector<8x32xf32>
    %259 = vector.broadcast %238 : vector<1x32xf32> to vector<8x32xf32>
    %260 = arith.mulf %258, %259 : vector<8x32xf32>
    %261 = vector.broadcast %240 : vector<1x32xf32> to vector<8x32xf32>
    %262 = arith.addf %260, %261 : vector<8x32xf32>
    %c1_120 = arith.constant 1 : index
    %c0_121 = arith.constant 0 : index
    %c0_122 = arith.constant 0 : index
    %263 = vector.load %arg11[%c1_120, %c0_121, %c0_122] : memref<2x1x32xf32, #tpu.memory_space<vmem>>, vector<1x1x32xf32>
    %264 = vector.shape_cast %263 : vector<1x1x32xf32> to vector<1x32xf32>
    %cst_123 = arith.constant dense<0.000000e+00> : vector<1x8xf32>
    %265 = tpu.matmul %264, %262, %cst_123 {dimension_numbers = #tpu.dot_dimension_numbers<[1], [1], [0], [0], [0, 0, 1, 0], [], []>} : vector<1x32xf32>, vector<8x32xf32>, vector<1x8xf32> -> vector<1x8xf32>
    %c1_124 = arith.constant 1 : index
    %c0_125 = arith.constant 0 : index
    %c0_126 = arith.constant 0 : index
    %266 = vector.load %arg12[%c1_124, %c0_125, %c0_126] : memref<2x1x1xf32, #tpu.memory_space<vmem>>, vector<1x1x1xf32>
    %267 = vector.shape_cast %266 : vector<1x1x1xf32> to vector<1x1xf32>
    %268 = vector.broadcast %267 : vector<1x1xf32> to vector<1x8xf32>
    %269 = arith.addf %265, %268 : vector<1x8xf32>
    %270 = arith.mulf %269, %8 : vector<1x8xf32>
    %271 = tpu.concatenate %140, %270 in 0 : vector<1x8xf32>, vector<1x8xf32> -> vector<2x8xf32>
    %272 = vector.shape_cast %271 : vector<2x8xf32> to vector<1x2x8xf32>
    %c0_127 = arith.constant 0 : index
    %c0_128 = arith.constant 0 : index
    %c0_129 = arith.constant 0 : index
    %273 = vector.load %arg13[%c0_127, %c0_128, %c0_129] : memref<1x2x8xf32, #tpu.memory_space<vmem>>, vector<1x2x8xf32>
    tpu.vector_store %arg13[%c0_127, %c0_128, %c0_129], %272 {strides = array<i32>} : memref<1x2x8xf32, #tpu.memory_space<vmem>>, vector<1x2x8xf32>,
    return
  }
  func.func @transform_0(%arg0: i32, %arg1: memref<2xi32, #tpu.memory_space<smem>>) -> (i32, i32, i32) {
    %c0_i32 = arith.constant 0 : i32
    %c0_i32_0 = arith.constant 0 : i32
    %c0_i32_1 = arith.constant 0 : i32
    return %arg0, %c0_i32, %c0_i32_0 : i32, i32, i32
  }
  func.func @transform_1(%arg0: i32, %arg1: memref<2xi32, #tpu.memory_space<smem>>) -> (i32, i32, i32) {
    %c0_i32 = arith.constant 0 : i32
    %c0_i32_0 = arith.constant 0 : i32
    %c0_i32_1 = arith.constant 0 : i32
    %c0_i32_2 = arith.constant 0 : i32
    return %c0_i32, %c0_i32_0, %c0_i32_1 : i32, i32, i32
  }
  func.func @transform_2(%arg0: i32, %arg1: memref<2xi32, #tpu.memory_space<smem>>) -> (i32, i32, i32) {
    %c0_i32 = arith.constant 0 : i32
    %c0_i32_0 = arith.constant 0 : i32
    %c0_i32_1 = arith.constant 0 : i32
    %c0_i32_2 = arith.constant 0 : i32
    return %c0_i32, %c0_i32_0, %c0_i32_1 : i32, i32, i32
  }
  func.func @transform_3(%arg0: i32, %arg1: memref<2xi32, #tpu.memory_space<smem>>) -> (i32, i32, i32) {
    %c0_i32 = arith.constant 0 : i32
    %c0_i32_0 = arith.constant 0 : i32
    %c0_i32_1 = arith.constant 0 : i32
    %c0_i32_2 = arith.constant 0 : i32
    return %c0_i32, %c0_i32_0, %c0_i32_1 : i32, i32, i32
  }
  func.func @transform_4(%arg0: i32, %arg1: memref<2xi32, #tpu.memory_space<smem>>) -> (i32, i32, i32) {
    %c0_i32 = arith.constant 0 : i32
    %c0_i32_0 = arith.constant 0 : i32
    %c0_i32_1 = arith.constant 0 : i32
    %c0_i32_2 = arith.constant 0 : i32
    return %c0_i32, %c0_i32_0, %c0_i32_1 : i32, i32, i32
  }
  func.func @transform_5(%arg0: i32, %arg1: memref<2xi32, #tpu.memory_space<smem>>) -> (i32, i32, i32) {
    %c0_i32 = arith.constant 0 : i32
    %c0_i32_0 = arith.constant 0 : i32
    %c0_i32_1 = arith.constant 0 : i32
    %c0_i32_2 = arith.constant 0 : i32
    return %c0_i32, %c0_i32_0, %c0_i32_1 : i32, i32, i32
  }
  func.func @transform_6(%arg0: i32, %arg1: memref<2xi32, #tpu.memory_space<smem>>) -> (i32, i32, i32) {
    %c0_i32 = arith.constant 0 : i32
    %c0_i32_0 = arith.constant 0 : i32
    %c0_i32_1 = arith.constant 0 : i32
    %c0_i32_2 = arith.constant 0 : i32
    return %c0_i32, %c0_i32_0, %c0_i32_1 : i32, i32, i32
  }
  func.func @transform_7(%arg0: i32, %arg1: memref<2xi32, #tpu.memory_space<smem>>) -> (i32, i32, i32) {
    %c0_i32 = arith.constant 0 : i32
    %c0_i32_0 = arith.constant 0 : i32
    %c0_i32_1 = arith.constant 0 : i32
    %c0_i32_2 = arith.constant 0 : i32
    return %c0_i32, %c0_i32_0, %c0_i32_1 : i32, i32, i32
  }
  func.func @transform_8(%arg0: i32, %arg1: memref<2xi32, #tpu.memory_space<smem>>) -> (i32, i32, i32) {
    %c0_i32 = arith.constant 0 : i32
    %c0_i32_0 = arith.constant 0 : i32
    %c0_i32_1 = arith.constant 0 : i32
    %c0_i32_2 = arith.constant 0 : i32
    return %c0_i32, %c0_i32_0, %c0_i32_1 : i32, i32, i32
  }
  func.func @transform_9(%arg0: i32, %arg1: memref<2xi32, #tpu.memory_space<smem>>) -> (i32, i32, i32) {
    %c0_i32 = arith.constant 0 : i32
    %c0_i32_0 = arith.constant 0 : i32
    %c0_i32_1 = arith.constant 0 : i32
    %c0_i32_2 = arith.constant 0 : i32
    return %c0_i32, %c0_i32_0, %c0_i32_1 : i32, i32, i32
  }
  func.func @transform_10(%arg0: i32, %arg1: memref<2xi32, #tpu.memory_space<smem>>) -> (i32, i32, i32) {
    %c0_i32 = arith.constant 0 : i32
    %c0_i32_0 = arith.constant 0 : i32
    %c0_i32_1 = arith.constant 0 : i32
    %c0_i32_2 = arith.constant 0 : i32
    return %c0_i32, %c0_i32_0, %c0_i32_1 : i32, i32, i32
  }
  func.func @transform_11(%arg0: i32, %arg1: memref<2xi32, #tpu.memory_space<smem>>) -> (i32, i32, i32) {
    %c0_i32 = arith.constant 0 : i32
    %c0_i32_0 = arith.constant 0 : i32
    %c0_i32_1 = arith.constant 0 : i32
    return %arg0, %c0_i32, %c0_i32_0 : i32, i32, i32
  }
}

module attributes {stable_mosaic.version = 11 : i64} {
  func.func @_fft_stack_kernel(%arg0: i32, %arg1: i32, %arg2: memref<2xi32, #tpu.memory_space<smem>>, %arg3: memref<1x16x32xf32, #tpu.memory_space<vmem>>, %arg4: memref<1x32x96xf32, #tpu.memory_space<vmem>>, %arg5: memref<1x1x96xf32, #tpu.memory_space<vmem>>, %arg6: memref<1x32x32xf32, #tpu.memory_space<vmem>>, %arg7: memref<1x1x32xf32, #tpu.memory_space<vmem>>, %arg8: memref<1x1x32xf32, #tpu.memory_space<vmem>>, %arg9: memref<1x1x32xf32, #tpu.memory_space<vmem>>, %arg10: memref<1x288x64xf32, #tpu.memory_space<vmem>>, %arg11: memref<1x1x64xf32, #tpu.memory_space<vmem>>, %arg12: memref<1x64x32xf32, #tpu.memory_space<vmem>>, %arg13: memref<1x1x32xf32, #tpu.memory_space<vmem>>, %arg14: memref<1x1x32xf32, #tpu.memory_space<vmem>>, %arg15: memref<1x1x32xf32, #tpu.memory_space<vmem>>, %arg16: memref<32x8xf32, #tpu.memory_space<vmem>>, %arg17: memref<1x8xf32, #tpu.memory_space<vmem>>, %arg18: memref<1x16x8xf32, #tpu.memory_space<vmem>>, %arg19: memref<16x32xf32, #tpu.memory_space<vmem>>) attributes {dimension_semantics = [#tpu.dimension_semantics<parallel>, #tpu.dimension_semantics<arbitrary>], iteration_bounds = array<i64: 2, 2>, scalar_prefetch = 1 : i64, scratch_operands = 1 : i64, tpu.core_type = #tpu.core_type<tc>, window_params = [{transform_indices = @transform_0, window_bounds = array<i64: 1, 16, 32>}, {transform_indices = @transform_1, window_bounds = array<i64: 1, 32, 96>}, {transform_indices = @transform_2, window_bounds = array<i64: 1, 1, 96>}, {transform_indices = @transform_3, window_bounds = array<i64: 1, 32, 32>}, {transform_indices = @transform_4, window_bounds = array<i64: 1, 1, 32>}, {transform_indices = @transform_5, window_bounds = array<i64: 1, 1, 32>}, {transform_indices = @transform_6, window_bounds = array<i64: 1, 1, 32>}, {transform_indices = @transform_7, window_bounds = array<i64: 1, 288, 64>}, {transform_indices = @transform_8, window_bounds = array<i64: 1, 1, 64>}, {transform_indices = @transform_9, window_bounds = array<i64: 1, 64, 32>}, {transform_indices = @transform_10, window_bounds = array<i64: 1, 1, 32>}, {transform_indices = @transform_11, window_bounds = array<i64: 1, 1, 32>}, {transform_indices = @transform_12, window_bounds = array<i64: 1, 1, 32>}, {pipeline_mode = #tpu.pipeline_mode<synchronous>, transform_indices = @transform_13, window_bounds = array<i64: 32, 8>}, {pipeline_mode = #tpu.pipeline_mode<synchronous>, transform_indices = @transform_14, window_bounds = array<i64: 1, 8>}, {transform_indices = @transform_15, window_bounds = array<i64: 1, 16, 8>}]} {
    %c0_i32 = arith.constant 0 : i32
    %0 = arith.cmpi eq, %arg1, %c0_i32 : i32
    %1 = arith.extui %0 : i1 to i32
    %c0_i32_0 = arith.constant 0 : i32
    %2 = arith.cmpi ne, %1, %c0_i32_0 : i32
    scf.if %2 {
      %c0_99 = arith.constant 0 : index
      %c0_100 = arith.constant 0 : index
      %c0_101 = arith.constant 0 : index
      %251 = vector.load %arg3[%c0_99, %c0_100, %c0_101] : memref<1x16x32xf32, #tpu.memory_space<vmem>>, vector<1x16x32xf32>
      %252 = vector.shape_cast %251 : vector<1x16x32xf32> to vector<16x32xf32>
      %c0_102 = arith.constant 0 : index
      %c0_103 = arith.constant 0 : index
      %253 = vector.load %arg19[%c0_102, %c0_103] : memref<16x32xf32, #tpu.memory_space<vmem>>, vector<16x32xf32>
      tpu.vector_store %arg19[%c0_102, %c0_103], %252 {strides = array<i32>} : memref<16x32xf32, #tpu.memory_space<vmem>>, vector<16x32xf32>,
    } else {
    }
    %c0 = arith.constant 0 : index
    %c0_1 = arith.constant 0 : index
    %3 = vector.load %arg19[%c0, %c0_1] : memref<16x32xf32, #tpu.memory_space<vmem>>, vector<16x32xf32>
    %4 = tpu.iota {dimensions = array<i32: 0>} : vector<16x1xi32>
    %c1_i32 = arith.constant 1 : i32
    %5 = arith.muli %arg0, %c1_i32 : i32
    %c0_i32_2 = arith.constant 0 : i32
    %6 = arith.addi %5, %c0_i32_2 : i32
    %7 = arith.index_cast %6 : i32 to index
    %8 = memref.load %arg2[%7] : memref<2xi32, #tpu.memory_space<smem>>
    %9 = vector.broadcast %8 : i32 to vector<16x1xi32>
    %10 = arith.cmpi slt, %4, %9 : vector<16x1xi32>
    %11 = arith.extui %10 : vector<16x1xi1> to vector<16x1xi32>
    %12 = arith.sitofp %11 : vector<16x1xi32> to vector<16x1xf32>
    %c0_3 = arith.constant 0 : index
    %c0_4 = arith.constant 0 : index
    %c0_5 = arith.constant 0 : index
    %13 = vector.load %arg4[%c0_3, %c0_4, %c0_5] : memref<1x32x96xf32, #tpu.memory_space<vmem>>, vector<1x32x96xf32>
    %14 = vector.shape_cast %13 : vector<1x32x96xf32> to vector<32x96xf32>
    %cst = arith.constant dense<0.000000e+00> : vector<16x96xf32>
    %15 = tpu.matmul %3, %14, %cst {dimension_numbers = #tpu.dot_dimension_numbers<[1], [0], [0], [1], [0, 0, 1, 1], [], []>} : vector<16x32xf32>, vector<32x96xf32>, vector<16x96xf32> -> vector<16x96xf32>
    %c0_6 = arith.constant 0 : index
    %c0_7 = arith.constant 0 : index
    %c0_8 = arith.constant 0 : index
    %16 = vector.load %arg5[%c0_6, %c0_7, %c0_8] : memref<1x1x96xf32, #tpu.memory_space<vmem>>, vector<1x1x96xf32>
    %17 = vector.shape_cast %16 : vector<1x1x96xf32> to vector<1x96xf32>
    %18 = vector.broadcast %17 : vector<1x96xf32> to vector<16x96xf32>
    %19 = arith.addf %15, %18 : vector<16x96xf32>
    %20 = tpu.iota {dimensions = array<i32: 1>} : vector<16x16xi32>
    %c1_i32_9 = arith.constant 1 : i32
    %21 = arith.muli %arg0, %c1_i32_9 : i32
    %c0_i32_10 = arith.constant 0 : i32
    %22 = arith.addi %21, %c0_i32_10 : i32
    %23 = arith.index_cast %22 : i32 to index
    %24 = memref.load %arg2[%23] : memref<2xi32, #tpu.memory_space<smem>>
    %25 = vector.extract_strided_slice %19 {offsets = [0, 0], sizes = [16, 16], strides = [1, 1]} : vector<16x96xf32> to vector<16x16xf32>
    %26 = vector.extract_strided_slice %19 {offsets = [0, 32], sizes = [16, 16], strides = [1, 1]} : vector<16x96xf32> to vector<16x16xf32>
    %27 = vector.extract_strided_slice %19 {offsets = [0, 64], sizes = [16, 16], strides = [1, 1]} : vector<16x96xf32> to vector<16x16xf32>
    %cst_11 = arith.constant dense<0.000000e+00> : vector<16x16xf32>
    %28 = tpu.matmul %25, %26, %cst_11 {dimension_numbers = #tpu.dot_dimension_numbers<[1], [1], [0], [0], [0, 0, 1, 0], [], []>} : vector<16x16xf32>, vector<16x16xf32>, vector<16x16xf32> -> vector<16x16xf32>
    %cst_12 = arith.constant 2.500000e-01 : f32
    %29 = vector.broadcast %cst_12 : f32 to vector<16x16xf32>
    %30 = arith.mulf %28, %29 : vector<16x16xf32>
    %31 = vector.broadcast %24 : i32 to vector<16x16xi32>
    %32 = arith.cmpi slt, %20, %31 : vector<16x16xi32>
    %cst_13 = arith.constant -1.000000e+09 : f32
    %33 = vector.broadcast %cst_13 : f32 to vector<16x16xf32>
    %34 = arith.select %32, %30, %33 : vector<16x16xi1>, vector<16x16xf32>
    %cst_14 = arith.constant dense<0xFF800000> : vector<16xf32>
    %35 = vector.multi_reduction <maximumf>, %34, %cst_14 [1] : vector<16x16xf32> to vector<16xf32>
    %36 = vector.shape_cast %35 : vector<16xf32> to vector<16x1xf32>
    %37 = vector.broadcast %36 : vector<16x1xf32> to vector<16x16xf32>
    %38 = arith.subf %34, %37 : vector<16x16xf32>
    %39 = math.exp %38 : vector<16x16xf32>
    %cst_15 = arith.constant dense<0.000000e+00> : vector<16xf32>
    %40 = vector.multi_reduction <add>, %39, %cst_15 [1] : vector<16x16xf32> to vector<16xf32>
    %41 = vector.shape_cast %40 : vector<16xf32> to vector<16x1xf32>
    %42 = tpu.reciprocal %41 {approx = true} : vector<16x1xf32> -> vector<16x1xf32>
    %43 = vector.broadcast %42 : vector<16x1xf32> to vector<16x16xf32>
    %44 = arith.mulf %39, %43 : vector<16x16xf32>
    %cst_16 = arith.constant dense<0.000000e+00> : vector<16x16xf32>
    %45 = tpu.matmul %44, %27, %cst_16 {dimension_numbers = #tpu.dot_dimension_numbers<[1], [0], [0], [1], [0, 0, 1, 1], [], []>} : vector<16x16xf32>, vector<16x16xf32>, vector<16x16xf32> -> vector<16x16xf32>
    %46 = vector.extract_strided_slice %19 {offsets = [0, 16], sizes = [16, 16], strides = [1, 1]} : vector<16x96xf32> to vector<16x16xf32>
    %47 = vector.extract_strided_slice %19 {offsets = [0, 48], sizes = [16, 16], strides = [1, 1]} : vector<16x96xf32> to vector<16x16xf32>
    %48 = vector.extract_strided_slice %19 {offsets = [0, 80], sizes = [16, 16], strides = [1, 1]} : vector<16x96xf32> to vector<16x16xf32>
    %cst_17 = arith.constant dense<0.000000e+00> : vector<16x16xf32>
    %49 = tpu.matmul %46, %47, %cst_17 {dimension_numbers = #tpu.dot_dimension_numbers<[1], [1], [0], [0], [0, 0, 1, 0], [], []>} : vector<16x16xf32>, vector<16x16xf32>, vector<16x16xf32> -> vector<16x16xf32>
    %cst_18 = arith.constant 2.500000e-01 : f32
    %50 = vector.broadcast %cst_18 : f32 to vector<16x16xf32>
    %51 = arith.mulf %49, %50 : vector<16x16xf32>
    %52 = vector.broadcast %24 : i32 to vector<16x16xi32>
    %53 = arith.cmpi slt, %20, %52 : vector<16x16xi32>
    %cst_19 = arith.constant -1.000000e+09 : f32
    %54 = vector.broadcast %cst_19 : f32 to vector<16x16xf32>
    %55 = arith.select %53, %51, %54 : vector<16x16xi1>, vector<16x16xf32>
    %cst_20 = arith.constant dense<0xFF800000> : vector<16xf32>
    %56 = vector.multi_reduction <maximumf>, %55, %cst_20 [1] : vector<16x16xf32> to vector<16xf32>
    %57 = vector.shape_cast %56 : vector<16xf32> to vector<16x1xf32>
    %58 = vector.broadcast %57 : vector<16x1xf32> to vector<16x16xf32>
    %59 = arith.subf %55, %58 : vector<16x16xf32>
    %60 = math.exp %59 : vector<16x16xf32>
    %cst_21 = arith.constant dense<0.000000e+00> : vector<16xf32>
    %61 = vector.multi_reduction <add>, %60, %cst_21 [1] : vector<16x16xf32> to vector<16xf32>
    %62 = vector.shape_cast %61 : vector<16xf32> to vector<16x1xf32>
    %63 = tpu.reciprocal %62 {approx = true} : vector<16x1xf32> -> vector<16x1xf32>
    %64 = vector.broadcast %63 : vector<16x1xf32> to vector<16x16xf32>
    %65 = arith.mulf %60, %64 : vector<16x16xf32>
    %cst_22 = arith.constant dense<0.000000e+00> : vector<16x16xf32>
    %66 = tpu.matmul %65, %48, %cst_22 {dimension_numbers = #tpu.dot_dimension_numbers<[1], [0], [0], [1], [0, 0, 1, 1], [], []>} : vector<16x16xf32>, vector<16x16xf32>, vector<16x16xf32> -> vector<16x16xf32>
    %67 = tpu.concatenate %45, %66 in 1 : vector<16x16xf32>, vector<16x16xf32> -> vector<16x32xf32>
    %c0_23 = arith.constant 0 : index
    %c0_24 = arith.constant 0 : index
    %c0_25 = arith.constant 0 : index
    %68 = vector.load %arg6[%c0_23, %c0_24, %c0_25] : memref<1x32x32xf32, #tpu.memory_space<vmem>>, vector<1x32x32xf32>
    %69 = vector.shape_cast %68 : vector<1x32x32xf32> to vector<32x32xf32>
    %cst_26 = arith.constant dense<0.000000e+00> : vector<16x32xf32>
    %70 = tpu.matmul %67, %69, %cst_26 {dimension_numbers = #tpu.dot_dimension_numbers<[1], [0], [0], [1], [0, 0, 1, 1], [], []>} : vector<16x32xf32>, vector<32x32xf32>, vector<16x32xf32> -> vector<16x32xf32>
    %c0_27 = arith.constant 0 : index
    %c0_28 = arith.constant 0 : index
    %c0_29 = arith.constant 0 : index
    %71 = vector.load %arg7[%c0_27, %c0_28, %c0_29] : memref<1x1x32xf32, #tpu.memory_space<vmem>>, vector<1x1x32xf32>
    %72 = vector.shape_cast %71 : vector<1x1x32xf32> to vector<1x32xf32>
    %73 = vector.broadcast %72 : vector<1x32xf32> to vector<16x32xf32>
    %74 = arith.addf %70, %73 : vector<16x32xf32>
    %75 = arith.addf %74, %3 : vector<16x32xf32>
    %c0_30 = arith.constant 0 : index
    %c0_31 = arith.constant 0 : index
    %c0_32 = arith.constant 0 : index
    %76 = vector.load %arg8[%c0_30, %c0_31, %c0_32] : memref<1x1x32xf32, #tpu.memory_space<vmem>>, vector<1x1x32xf32>
    %77 = vector.shape_cast %76 : vector<1x1x32xf32> to vector<1x32xf32>
    %c0_33 = arith.constant 0 : index
    %c0_34 = arith.constant 0 : index
    %c0_35 = arith.constant 0 : index
    %78 = vector.load %arg9[%c0_33, %c0_34, %c0_35] : memref<1x1x32xf32, #tpu.memory_space<vmem>>, vector<1x1x32xf32>
    %79 = vector.shape_cast %78 : vector<1x1x32xf32> to vector<1x32xf32>
    %cst_36 = arith.constant dense<0.000000e+00> : vector<16xf32>
    %80 = vector.multi_reduction <add>, %75, %cst_36 [1] : vector<16x32xf32> to vector<16xf32>
    %81 = vector.shape_cast %80 : vector<16xf32> to vector<16x1xf32>
    %cst_37 = arith.constant 3.200000e+01 : f32
    %82 = vector.broadcast %cst_37 : f32 to vector<16x1xf32>
    %83 = arith.divf %81, %82 : vector<16x1xf32>
    %84 = vector.broadcast %83 : vector<16x1xf32> to vector<16x32xf32>
    %85 = arith.subf %75, %84 : vector<16x32xf32>
    %86 = arith.mulf %85, %85 : vector<16x32xf32>
    %cst_38 = arith.constant dense<0.000000e+00> : vector<16xf32>
    %87 = vector.multi_reduction <add>, %86, %cst_38 [1] : vector<16x32xf32> to vector<16xf32>
    %88 = vector.shape_cast %87 : vector<16xf32> to vector<16x1xf32>
    %cst_39 = arith.constant 3.200000e+01 : f32
    %89 = vector.broadcast %cst_39 : f32 to vector<16x1xf32>
    %90 = arith.divf %88, %89 : vector<16x1xf32>
    %91 = vector.broadcast %83 : vector<16x1xf32> to vector<16x32xf32>
    %92 = arith.subf %75, %91 : vector<16x32xf32>
    %cst_40 = arith.constant 9.99999974E-6 : f32
    %93 = vector.broadcast %cst_40 : f32 to vector<16x1xf32>
    %94 = arith.addf %90, %93 : vector<16x1xf32>
    %95 = math.rsqrt %94 : vector<16x1xf32>
    %96 = vector.broadcast %95 : vector<16x1xf32> to vector<16x32xf32>
    %97 = arith.mulf %92, %96 : vector<16x32xf32>
    %98 = vector.broadcast %77 : vector<1x32xf32> to vector<16x32xf32>
    %99 = arith.mulf %97, %98 : vector<16x32xf32>
    %100 = vector.broadcast %79 : vector<1x32xf32> to vector<16x32xf32>
    %101 = arith.addf %99, %100 : vector<16x32xf32>
    %102 = vector.broadcast %12 : vector<16x1xf32> to vector<16x32xf32>
    %103 = arith.mulf %101, %102 : vector<16x32xf32>
    %c0_41 = arith.constant 0 : index
    %c0_42 = arith.constant 0 : index
    %c0_43 = arith.constant 0 : index
    %104 = vector.load %arg10[%c0_41, %c0_42, %c0_43] : memref<1x288x64xf32, #tpu.memory_space<vmem>>, vector<1x288x64xf32>
    %105 = vector.shape_cast %104 : vector<1x288x64xf32> to vector<288x64xf32>
    %c0_44 = arith.constant 0 : index
    %c0_45 = arith.constant 0 : index
    %c0_46 = arith.constant 0 : index
    %106 = vector.load %arg11[%c0_44, %c0_45, %c0_46] : memref<1x1x64xf32, #tpu.memory_space<vmem>>, vector<1x1x64xf32>
    %107 = vector.shape_cast %106 : vector<1x1x64xf32> to vector<1x64xf32>
    %108 = tpu.iota {dimensions = array<i32: 0>} : vector<16x1xi32>
    %c4_i32 = arith.constant 4 : i32
    %109 = tpu.dynamic_rotate %103 by %c4_i32 dim 0 : vector<16x32xf32>, i32 -> vector<16x32xf32>
    %c-4_i32 = arith.constant -4 : i32
    %110 = vector.broadcast %c-4_i32 : i32 to vector<16x1xi32>
    %111 = arith.addi %108, %110 : vector<16x1xi32>
    %c0_i32_47 = arith.constant 0 : i32
    %112 = vector.broadcast %c0_i32_47 : i32 to vector<16x1xi32>
    %113 = arith.cmpi sge, %111, %112 : vector<16x1xi32>
    %c16_i32 = arith.constant 16 : i32
    %114 = vector.broadcast %c16_i32 : i32 to vector<16x1xi32>
    %115 = arith.cmpi slt, %111, %114 : vector<16x1xi32>
    %116 = arith.andi %113, %115 : vector<16x1xi1>
    %cst_48 = arith.constant 0.000000e+00 : f32
    %117 = vector.shape_cast %116 : vector<16x1xi1> to vector<16x1xi1>
    %118 = vector.broadcast %117 : vector<16x1xi1> to vector<16x32xi1>
    %119 = vector.broadcast %cst_48 : f32 to vector<16x32xf32>
    %120 = arith.select %118, %109, %119 : vector<16x32xi1>, vector<16x32xf32>
    %c3_i32 = arith.constant 3 : i32
    %121 = tpu.dynamic_rotate %103 by %c3_i32 dim 0 : vector<16x32xf32>, i32 -> vector<16x32xf32>
    %c-3_i32 = arith.constant -3 : i32
    %122 = vector.broadcast %c-3_i32 : i32 to vector<16x1xi32>
    %123 = arith.addi %108, %122 : vector<16x1xi32>
    %c0_i32_49 = arith.constant 0 : i32
    %124 = vector.broadcast %c0_i32_49 : i32 to vector<16x1xi32>
    %125 = arith.cmpi sge, %123, %124 : vector<16x1xi32>
    %c16_i32_50 = arith.constant 16 : i32
    %126 = vector.broadcast %c16_i32_50 : i32 to vector<16x1xi32>
    %127 = arith.cmpi slt, %123, %126 : vector<16x1xi32>
    %128 = arith.andi %125, %127 : vector<16x1xi1>
    %cst_51 = arith.constant 0.000000e+00 : f32
    %129 = vector.shape_cast %128 : vector<16x1xi1> to vector<16x1xi1>
    %130 = vector.broadcast %129 : vector<16x1xi1> to vector<16x32xi1>
    %131 = vector.broadcast %cst_51 : f32 to vector<16x32xf32>
    %132 = arith.select %130, %121, %131 : vector<16x32xi1>, vector<16x32xf32>
    %c2_i32 = arith.constant 2 : i32
    %133 = tpu.dynamic_rotate %103 by %c2_i32 dim 0 : vector<16x32xf32>, i32 -> vector<16x32xf32>
    %c-2_i32 = arith.constant -2 : i32
    %134 = vector.broadcast %c-2_i32 : i32 to vector<16x1xi32>
    %135 = arith.addi %108, %134 : vector<16x1xi32>
    %c0_i32_52 = arith.constant 0 : i32
    %136 = vector.broadcast %c0_i32_52 : i32 to vector<16x1xi32>
    %137 = arith.cmpi sge, %135, %136 : vector<16x1xi32>
    %c16_i32_53 = arith.constant 16 : i32
    %138 = vector.broadcast %c16_i32_53 : i32 to vector<16x1xi32>
    %139 = arith.cmpi slt, %135, %138 : vector<16x1xi32>
    %140 = arith.andi %137, %139 : vector<16x1xi1>
    %cst_54 = arith.constant 0.000000e+00 : f32
    %141 = vector.shape_cast %140 : vector<16x1xi1> to vector<16x1xi1>
    %142 = vector.broadcast %141 : vector<16x1xi1> to vector<16x32xi1>
    %143 = vector.broadcast %cst_54 : f32 to vector<16x32xf32>
    %144 = arith.select %142, %133, %143 : vector<16x32xi1>, vector<16x32xf32>
    %c1_i32_55 = arith.constant 1 : i32
    %145 = tpu.dynamic_rotate %103 by %c1_i32_55 dim 0 : vector<16x32xf32>, i32 -> vector<16x32xf32>
    %c-1_i32 = arith.constant -1 : i32
    %146 = vector.broadcast %c-1_i32 : i32 to vector<16x1xi32>
    %147 = arith.addi %108, %146 : vector<16x1xi32>
    %c0_i32_56 = arith.constant 0 : i32
    %148 = vector.broadcast %c0_i32_56 : i32 to vector<16x1xi32>
    %149 = arith.cmpi sge, %147, %148 : vector<16x1xi32>
    %c16_i32_57 = arith.constant 16 : i32
    %150 = vector.broadcast %c16_i32_57 : i32 to vector<16x1xi32>
    %151 = arith.cmpi slt, %147, %150 : vector<16x1xi32>
    %152 = arith.andi %149, %151 : vector<16x1xi1>
    %cst_58 = arith.constant 0.000000e+00 : f32
    %153 = vector.shape_cast %152 : vector<16x1xi1> to vector<16x1xi1>
    %154 = vector.broadcast %153 : vector<16x1xi1> to vector<16x32xi1>
    %155 = vector.broadcast %cst_58 : f32 to vector<16x32xf32>
    %156 = arith.select %154, %145, %155 : vector<16x32xi1>, vector<16x32xf32>
    %c15_i32 = arith.constant 15 : i32
    %157 = tpu.dynamic_rotate %103 by %c15_i32 dim 0 : vector<16x32xf32>, i32 -> vector<16x32xf32>
    %c1_i32_59 = arith.constant 1 : i32
    %158 = vector.broadcast %c1_i32_59 : i32 to vector<16x1xi32>
    %159 = arith.addi %108, %158 : vector<16x1xi32>
    %c0_i32_60 = arith.constant 0 : i32
    %160 = vector.broadcast %c0_i32_60 : i32 to vector<16x1xi32>
    %161 = arith.cmpi sge, %159, %160 : vector<16x1xi32>
    %c16_i32_61 = arith.constant 16 : i32
    %162 = vector.broadcast %c16_i32_61 : i32 to vector<16x1xi32>
    %163 = arith.cmpi slt, %159, %162 : vector<16x1xi32>
    %164 = arith.andi %161, %163 : vector<16x1xi1>
    %cst_62 = arith.constant 0.000000e+00 : f32
    %165 = vector.shape_cast %164 : vector<16x1xi1> to vector<16x1xi1>
    %166 = vector.broadcast %165 : vector<16x1xi1> to vector<16x32xi1>
    %167 = vector.broadcast %cst_62 : f32 to vector<16x32xf32>
    %168 = arith.select %166, %157, %167 : vector<16x32xi1>, vector<16x32xf32>
    %c14_i32 = arith.constant 14 : i32
    %169 = tpu.dynamic_rotate %103 by %c14_i32 dim 0 : vector<16x32xf32>, i32 -> vector<16x32xf32>
    %c2_i32_63 = arith.constant 2 : i32
    %170 = vector.broadcast %c2_i32_63 : i32 to vector<16x1xi32>
    %171 = arith.addi %108, %170 : vector<16x1xi32>
    %c0_i32_64 = arith.constant 0 : i32
    %172 = vector.broadcast %c0_i32_64 : i32 to vector<16x1xi32>
    %173 = arith.cmpi sge, %171, %172 : vector<16x1xi32>
    %c16_i32_65 = arith.constant 16 : i32
    %174 = vector.broadcast %c16_i32_65 : i32 to vector<16x1xi32>
    %175 = arith.cmpi slt, %171, %174 : vector<16x1xi32>
    %176 = arith.andi %173, %175 : vector<16x1xi1>
    %cst_66 = arith.constant 0.000000e+00 : f32
    %177 = vector.shape_cast %176 : vector<16x1xi1> to vector<16x1xi1>
    %178 = vector.broadcast %177 : vector<16x1xi1> to vector<16x32xi1>
    %179 = vector.broadcast %cst_66 : f32 to vector<16x32xf32>
    %180 = arith.select %178, %169, %179 : vector<16x32xi1>, vector<16x32xf32>
    %c13_i32 = arith.constant 13 : i32
    %181 = tpu.dynamic_rotate %103 by %c13_i32 dim 0 : vector<16x32xf32>, i32 -> vector<16x32xf32>
    %c3_i32_67 = arith.constant 3 : i32
    %182 = vector.broadcast %c3_i32_67 : i32 to vector<16x1xi32>
    %183 = arith.addi %108, %182 : vector<16x1xi32>
    %c0_i32_68 = arith.constant 0 : i32
    %184 = vector.broadcast %c0_i32_68 : i32 to vector<16x1xi32>
    %185 = arith.cmpi sge, %183, %184 : vector<16x1xi32>
    %c16_i32_69 = arith.constant 16 : i32
    %186 = vector.broadcast %c16_i32_69 : i32 to vector<16x1xi32>
    %187 = arith.cmpi slt, %183, %186 : vector<16x1xi32>
    %188 = arith.andi %185, %187 : vector<16x1xi1>
    %cst_70 = arith.constant 0.000000e+00 : f32
    %189 = vector.shape_cast %188 : vector<16x1xi1> to vector<16x1xi1>
    %190 = vector.broadcast %189 : vector<16x1xi1> to vector<16x32xi1>
    %191 = vector.broadcast %cst_70 : f32 to vector<16x32xf32>
    %192 = arith.select %190, %181, %191 : vector<16x32xi1>, vector<16x32xf32>
    %c12_i32 = arith.constant 12 : i32
    %193 = tpu.dynamic_rotate %103 by %c12_i32 dim 0 : vector<16x32xf32>, i32 -> vector<16x32xf32>
    %c4_i32_71 = arith.constant 4 : i32
    %194 = vector.broadcast %c4_i32_71 : i32 to vector<16x1xi32>
    %195 = arith.addi %108, %194 : vector<16x1xi32>
    %c0_i32_72 = arith.constant 0 : i32
    %196 = vector.broadcast %c0_i32_72 : i32 to vector<16x1xi32>
    %197 = arith.cmpi sge, %195, %196 : vector<16x1xi32>
    %c16_i32_73 = arith.constant 16 : i32
    %198 = vector.broadcast %c16_i32_73 : i32 to vector<16x1xi32>
    %199 = arith.cmpi slt, %195, %198 : vector<16x1xi32>
    %200 = arith.andi %197, %199 : vector<16x1xi1>
    %cst_74 = arith.constant 0.000000e+00 : f32
    %201 = vector.shape_cast %200 : vector<16x1xi1> to vector<16x1xi1>
    %202 = vector.broadcast %201 : vector<16x1xi1> to vector<16x32xi1>
    %203 = vector.broadcast %cst_74 : f32 to vector<16x32xf32>
    %204 = arith.select %202, %193, %203 : vector<16x32xi1>, vector<16x32xf32>
    %205 = tpu.concatenate %120, %132, %144, %156, %103, %168, %180, %192, %204 in 1 : vector<16x32xf32>, vector<16x32xf32>, vector<16x32xf32>, vector<16x32xf32>, vector<16x32xf32>, vector<16x32xf32>, vector<16x32xf32>, vector<16x32xf32>, vector<16x32xf32> -> vector<16x288xf32>
    %cst_75 = arith.constant dense<0.000000e+00> : vector<16x64xf32>
    %206 = tpu.matmul %205, %105, %cst_75 {dimension_numbers = #tpu.dot_dimension_numbers<[1], [0], [0], [1], [0, 0, 1, 1], [], []>} : vector<16x288xf32>, vector<288x64xf32>, vector<16x64xf32> -> vector<16x64xf32>
    %207 = vector.broadcast %107 : vector<1x64xf32> to vector<16x64xf32>
    %208 = arith.addf %206, %207 : vector<16x64xf32>
    %cst_76 = arith.constant 0.000000e+00 : f32
    %209 = vector.broadcast %cst_76 : f32 to vector<16x64xf32>
    %210 = arith.maximumf %208, %209 : vector<16x64xf32>
    %c0_77 = arith.constant 0 : index
    %c0_78 = arith.constant 0 : index
    %c0_79 = arith.constant 0 : index
    %211 = vector.load %arg12[%c0_77, %c0_78, %c0_79] : memref<1x64x32xf32, #tpu.memory_space<vmem>>, vector<1x64x32xf32>
    %212 = vector.shape_cast %211 : vector<1x64x32xf32> to vector<64x32xf32>
    %c0_80 = arith.constant 0 : index
    %c0_81 = arith.constant 0 : index
    %c0_82 = arith.constant 0 : index
    %213 = vector.load %arg13[%c0_80, %c0_81, %c0_82] : memref<1x1x32xf32, #tpu.memory_space<vmem>>, vector<1x1x32xf32>
    %214 = vector.shape_cast %213 : vector<1x1x32xf32> to vector<1x32xf32>
    %cst_83 = arith.constant dense<0.000000e+00> : vector<16x32xf32>
    %215 = tpu.matmul %210, %212, %cst_83 {dimension_numbers = #tpu.dot_dimension_numbers<[1], [0], [0], [1], [0, 0, 1, 1], [], []>} : vector<16x64xf32>, vector<64x32xf32>, vector<16x32xf32> -> vector<16x32xf32>
    %216 = vector.broadcast %214 : vector<1x32xf32> to vector<16x32xf32>
    %217 = arith.addf %215, %216 : vector<16x32xf32>
    %218 = arith.addf %217, %103 : vector<16x32xf32>
    %c0_84 = arith.constant 0 : index
    %c0_85 = arith.constant 0 : index
    %c0_86 = arith.constant 0 : index
    %219 = vector.load %arg14[%c0_84, %c0_85, %c0_86] : memref<1x1x32xf32, #tpu.memory_space<vmem>>, vector<1x1x32xf32>
    %220 = vector.shape_cast %219 : vector<1x1x32xf32> to vector<1x32xf32>
    %c0_87 = arith.constant 0 : index
    %c0_88 = arith.constant 0 : index
    %c0_89 = arith.constant 0 : index
    %221 = vector.load %arg15[%c0_87, %c0_88, %c0_89] : memref<1x1x32xf32, #tpu.memory_space<vmem>>, vector<1x1x32xf32>
    %222 = vector.shape_cast %221 : vector<1x1x32xf32> to vector<1x32xf32>
    %cst_90 = arith.constant dense<0.000000e+00> : vector<16xf32>
    %223 = vector.multi_reduction <add>, %218, %cst_90 [1] : vector<16x32xf32> to vector<16xf32>
    %224 = vector.shape_cast %223 : vector<16xf32> to vector<16x1xf32>
    %cst_91 = arith.constant 3.200000e+01 : f32
    %225 = vector.broadcast %cst_91 : f32 to vector<16x1xf32>
    %226 = arith.divf %224, %225 : vector<16x1xf32>
    %227 = vector.broadcast %226 : vector<16x1xf32> to vector<16x32xf32>
    %228 = arith.subf %218, %227 : vector<16x32xf32>
    %229 = arith.mulf %228, %228 : vector<16x32xf32>
    %cst_92 = arith.constant dense<0.000000e+00> : vector<16xf32>
    %230 = vector.multi_reduction <add>, %229, %cst_92 [1] : vector<16x32xf32> to vector<16xf32>
    %231 = vector.shape_cast %230 : vector<16xf32> to vector<16x1xf32>
    %cst_93 = arith.constant 3.200000e+01 : f32
    %232 = vector.broadcast %cst_93 : f32 to vector<16x1xf32>
    %233 = arith.divf %231, %232 : vector<16x1xf32>
    %234 = vector.broadcast %226 : vector<16x1xf32> to vector<16x32xf32>
    %235 = arith.subf %218, %234 : vector<16x32xf32>
    %cst_94 = arith.constant 9.99999974E-6 : f32
    %236 = vector.broadcast %cst_94 : f32 to vector<16x1xf32>
    %237 = arith.addf %233, %236 : vector<16x1xf32>
    %238 = math.rsqrt %237 : vector<16x1xf32>
    %239 = vector.broadcast %238 : vector<16x1xf32> to vector<16x32xf32>
    %240 = arith.mulf %235, %239 : vector<16x32xf32>
    %241 = vector.broadcast %220 : vector<1x32xf32> to vector<16x32xf32>
    %242 = arith.mulf %240, %241 : vector<16x32xf32>
    %243 = vector.broadcast %222 : vector<1x32xf32> to vector<16x32xf32>
    %244 = arith.addf %242, %243 : vector<16x32xf32>
    %245 = vector.broadcast %12 : vector<16x1xf32> to vector<16x32xf32>
    %246 = arith.mulf %244, %245 : vector<16x32xf32>
    %c0_95 = arith.constant 0 : index
    %c0_96 = arith.constant 0 : index
    %247 = vector.load %arg19[%c0_95, %c0_96] : memref<16x32xf32, #tpu.memory_space<vmem>>, vector<16x32xf32>
    tpu.vector_store %arg19[%c0_95, %c0_96], %246 {strides = array<i32>} : memref<16x32xf32, #tpu.memory_space<vmem>>, vector<16x32xf32>,
    %c1_i32_97 = arith.constant 1 : i32
    %248 = arith.cmpi eq, %arg1, %c1_i32_97 : i32
    %249 = arith.extui %248 : i1 to i32
    %c0_i32_98 = arith.constant 0 : i32
    %250 = arith.cmpi ne, %249, %c0_i32_98 : i32
    scf.if %250 {
      %c0_99 = arith.constant 0 : index
      %c0_100 = arith.constant 0 : index
      %251 = vector.load %arg16[%c0_99, %c0_100] : memref<32x8xf32, #tpu.memory_space<vmem>>, vector<32x8xf32>
      %cst_101 = arith.constant dense<0.000000e+00> : vector<16x8xf32>
      %252 = tpu.matmul %246, %251, %cst_101 {dimension_numbers = #tpu.dot_dimension_numbers<[1], [0], [0], [1], [0, 0, 1, 1], [], []>} : vector<16x32xf32>, vector<32x8xf32>, vector<16x8xf32> -> vector<16x8xf32>
      %c0_102 = arith.constant 0 : index
      %c0_103 = arith.constant 0 : index
      %253 = vector.load %arg17[%c0_102, %c0_103] : memref<1x8xf32, #tpu.memory_space<vmem>>, vector<1x8xf32>
      %254 = vector.broadcast %253 : vector<1x8xf32> to vector<16x8xf32>
      %255 = arith.addf %252, %254 : vector<16x8xf32>
      %256 = vector.shape_cast %255 : vector<16x8xf32> to vector<1x16x8xf32>
      %c0_104 = arith.constant 0 : index
      %c0_105 = arith.constant 0 : index
      %c0_106 = arith.constant 0 : index
      %257 = vector.load %arg18[%c0_104, %c0_105, %c0_106] : memref<1x16x8xf32, #tpu.memory_space<vmem>>, vector<1x16x8xf32>
      tpu.vector_store %arg18[%c0_104, %c0_105, %c0_106], %256 {strides = array<i32>} : memref<1x16x8xf32, #tpu.memory_space<vmem>>, vector<1x16x8xf32>,
    } else {
    }
    return
  }
  func.func @transform_0(%arg0: i32, %arg1: i32, %arg2: memref<2xi32, #tpu.memory_space<smem>>) -> (i32, i32, i32) {
    %c0_i32 = arith.constant 0 : i32
    %c0_i32_0 = arith.constant 0 : i32
    %c0_i32_1 = arith.constant 0 : i32
    return %arg0, %c0_i32, %c0_i32_0 : i32, i32, i32
  }
  func.func @transform_1(%arg0: i32, %arg1: i32, %arg2: memref<2xi32, #tpu.memory_space<smem>>) -> (i32, i32, i32) {
    %c0_i32 = arith.constant 0 : i32
    %c0_i32_0 = arith.constant 0 : i32
    %c0_i32_1 = arith.constant 0 : i32
    return %arg1, %c0_i32, %c0_i32_0 : i32, i32, i32
  }
  func.func @transform_2(%arg0: i32, %arg1: i32, %arg2: memref<2xi32, #tpu.memory_space<smem>>) -> (i32, i32, i32) {
    %c0_i32 = arith.constant 0 : i32
    %c0_i32_0 = arith.constant 0 : i32
    %c0_i32_1 = arith.constant 0 : i32
    return %arg1, %c0_i32, %c0_i32_0 : i32, i32, i32
  }
  func.func @transform_3(%arg0: i32, %arg1: i32, %arg2: memref<2xi32, #tpu.memory_space<smem>>) -> (i32, i32, i32) {
    %c0_i32 = arith.constant 0 : i32
    %c0_i32_0 = arith.constant 0 : i32
    %c0_i32_1 = arith.constant 0 : i32
    return %arg1, %c0_i32, %c0_i32_0 : i32, i32, i32
  }
  func.func @transform_4(%arg0: i32, %arg1: i32, %arg2: memref<2xi32, #tpu.memory_space<smem>>) -> (i32, i32, i32) {
    %c0_i32 = arith.constant 0 : i32
    %c0_i32_0 = arith.constant 0 : i32
    %c0_i32_1 = arith.constant 0 : i32
    return %arg1, %c0_i32, %c0_i32_0 : i32, i32, i32
  }
  func.func @transform_5(%arg0: i32, %arg1: i32, %arg2: memref<2xi32, #tpu.memory_space<smem>>) -> (i32, i32, i32) {
    %c0_i32 = arith.constant 0 : i32
    %c0_i32_0 = arith.constant 0 : i32
    %c0_i32_1 = arith.constant 0 : i32
    return %arg1, %c0_i32, %c0_i32_0 : i32, i32, i32
  }
  func.func @transform_6(%arg0: i32, %arg1: i32, %arg2: memref<2xi32, #tpu.memory_space<smem>>) -> (i32, i32, i32) {
    %c0_i32 = arith.constant 0 : i32
    %c0_i32_0 = arith.constant 0 : i32
    %c0_i32_1 = arith.constant 0 : i32
    return %arg1, %c0_i32, %c0_i32_0 : i32, i32, i32
  }
  func.func @transform_7(%arg0: i32, %arg1: i32, %arg2: memref<2xi32, #tpu.memory_space<smem>>) -> (i32, i32, i32) {
    %c0_i32 = arith.constant 0 : i32
    %c0_i32_0 = arith.constant 0 : i32
    %c0_i32_1 = arith.constant 0 : i32
    return %arg1, %c0_i32, %c0_i32_0 : i32, i32, i32
  }
  func.func @transform_8(%arg0: i32, %arg1: i32, %arg2: memref<2xi32, #tpu.memory_space<smem>>) -> (i32, i32, i32) {
    %c0_i32 = arith.constant 0 : i32
    %c0_i32_0 = arith.constant 0 : i32
    %c0_i32_1 = arith.constant 0 : i32
    return %arg1, %c0_i32, %c0_i32_0 : i32, i32, i32
  }
  func.func @transform_9(%arg0: i32, %arg1: i32, %arg2: memref<2xi32, #tpu.memory_space<smem>>) -> (i32, i32, i32) {
    %c0_i32 = arith.constant 0 : i32
    %c0_i32_0 = arith.constant 0 : i32
    %c0_i32_1 = arith.constant 0 : i32
    return %arg1, %c0_i32, %c0_i32_0 : i32, i32, i32
  }
  func.func @transform_10(%arg0: i32, %arg1: i32, %arg2: memref<2xi32, #tpu.memory_space<smem>>) -> (i32, i32, i32) {
    %c0_i32 = arith.constant 0 : i32
    %c0_i32_0 = arith.constant 0 : i32
    %c0_i32_1 = arith.constant 0 : i32
    return %arg1, %c0_i32, %c0_i32_0 : i32, i32, i32
  }
  func.func @transform_11(%arg0: i32, %arg1: i32, %arg2: memref<2xi32, #tpu.memory_space<smem>>) -> (i32, i32, i32) {
    %c0_i32 = arith.constant 0 : i32
    %c0_i32_0 = arith.constant 0 : i32
    %c0_i32_1 = arith.constant 0 : i32
    return %arg1, %c0_i32, %c0_i32_0 : i32, i32, i32
  }
  func.func @transform_12(%arg0: i32, %arg1: i32, %arg2: memref<2xi32, #tpu.memory_space<smem>>) -> (i32, i32, i32) {
    %c0_i32 = arith.constant 0 : i32
    %c0_i32_0 = arith.constant 0 : i32
    %c0_i32_1 = arith.constant 0 : i32
    return %arg1, %c0_i32, %c0_i32_0 : i32, i32, i32
  }
  func.func @transform_13(%arg0: i32, %arg1: i32, %arg2: memref<2xi32, #tpu.memory_space<smem>>) -> (i32, i32) {
    %c0_i32 = arith.constant 0 : i32
    %c0_i32_0 = arith.constant 0 : i32
    %c0_i32_1 = arith.constant 0 : i32
    return %c0_i32, %c0_i32_0 : i32, i32
  }
  func.func @transform_14(%arg0: i32, %arg1: i32, %arg2: memref<2xi32, #tpu.memory_space<smem>>) -> (i32, i32) {
    %c0_i32 = arith.constant 0 : i32
    %c0_i32_0 = arith.constant 0 : i32
    %c0_i32_1 = arith.constant 0 : i32
    return %c0_i32, %c0_i32_0 : i32, i32
  }
  func.func @transform_15(%arg0: i32, %arg1: i32, %arg2: memref<2xi32, #tpu.memory_space<smem>>) -> (i32, i32, i32) {
    %c0_i32 = arith.constant 0 : i32
    %c0_i32_0 = arith.constant 0 : i32
    %c0_i32_1 = arith.constant 0 : i32
    return %arg0, %c0_i32, %c0_i32_0 : i32, i32, i32
  }
}

</mosaic_0001>

<bundles_post_ra>
// kernel: ne.8
= control target key start
LH: loop header
LB: loop body
LE: loop exit
PB: predicated region body
PF: predicated region fallthrough
CT: control target
= control target key end

     0   :  { %v16_v2 = vmov 0   ;;  %s41_s0 = inlined_call_operand.vmem [shape: f32[2,8], index: 0, kind: input, shape index: {}, may-alias: {0,1}]   ;;  %s42_s1 = inlined_call_operand.vmem [shape: f32[2,8], index: 1, kind: input, shape index: {}, may-alias: {0,1}]   ;;  %s43_s2 = inlined_call_operand.vmem [shape: pred[2,8], index: 2, kind: output, shape index: {}]  }
   0x1   :  { %v3_v0 = vld [vmem:[%s41_s0] sm:$0x3] }
   0x2   :  { %v4_v1 = vld [vmem:[%s42_s1] sm:$0x3] }
   0x3   :  { %vm7_vm0 = vcmp.ne.f32.partialorder %v3_v0, %v4_v1 }
   0x4   :  { %v8_v3 = vsel %vm7_vm0, 1, %v16_v2 }
   0x5   :  { %v10_v4 = vpack.c.b16 %v16_v2, %v8_v3 }
   0x7   :  { %v11_v5 = vpack.c.b8 %v16_v2, %v10_v4 }
   0x9   :  { %14 = vst [vmem:[%s43_s2] sm:$0x1] %v11_v5 }

// kernel: custom-call.5
= control target key start
LH: loop header
LB: loop body
LE: loop exit
PB: predicated region body
PF: predicated region fallthrough
CT: control target
= control target key end

     0   :  { %s6_s0 = inlined_call_operand.vmem [shape: u32[2,8], index: 0, kind: output, shape index: {}]  }

// kernel: squeeze.18
= control target key start
LH: loop header
LB: loop body
LE: loop exit
PB: predicated region body
PF: predicated region fallthrough
CT: control target
= control target key end

     0   :  { %vm8_vm0 = vcmask 64512   ;;  %s42_s0 = inlined_call_operand.vmem [shape: f32[16], index: 0, kind: input, shape index: {}]   ;;  %s43_s1 = inlined_call_operand.vmem [shape: f32[2,8], index: 1, kind: output, shape index: {}]  }
   0x1   :  { %v5_v0 = vld [vmem:[%s42_s0] sm:$0x1]  ;;  %s25_s0 = smov 120  }
   0x2   :  { %6 = vst [vmem:[#allocation1] sm:$0x1] %v5_v0 }
   0x9   :  { %v10_v1 = vld [vmem:[#allocation1] sm:$0x1]  }
   0xa   :  { %v7_v2 = vld [vmem:[#allocation1] sm:$0x1]   ;;  %11 = vrot.lane.b32.xlu0 %v10_v1, %s25_s0 }
   0xb   :  { %9 = vst.msk [vmem:[#allocation0] sm:$0x1] %vm8_vm0, %v7_v2  }
  0x7c   :  { %v12_v3 = vpop.permute.xlu0 %11  }
  0x7d   :  { %15 = vst.msk [vmem:[#allocation0 + $0x1] sm:$0x1] %vm8_vm0, %v12_v3  }
  0x84   :  { %v20_v4 = vld [vmem:[#allocation0] sm:$0x3] }
  0x85   :  { %23 = vst [vmem:[%s43_s1] sm:$0x3] %v20_v4 }

// kernel: fastspeech2_forward.6
= control target key start
LH: loop header
LB: loop body
LE: loop exit
PB: predicated region body
PF: predicated region fallthrough
CT: control target
= control target key end

     0   :  { %s1406_s0 = inlined_call_operand.vmem [shape: s32[2], index: 0, kind: input, shape index: {}]   ;;  %s1407_s1 = inlined_call_operand.vmem [shape: f32[2,8,32], index: 1, kind: input, shape index: {}]   ;;  %s1408_s2 = inlined_call_operand.vmem [shape: f32[1,96,32], index: 2, kind: input, shape index: {}]   ;;  %s1409_s3 = inlined_call_operand.vmem [shape: f32[1,1,32], index: 3, kind: input, shape index: {}, may-alias: {3,5,7,9}]   ;;  %s1410_s4 = inlined_call_operand.vmem [shape: f32[1,1,32], index: 4, kind: input, shape index: {}, may-alias: {4,8}]   ;;  %s1411_s5 = inlined_call_operand.vmem [shape: f32[1,1,32], index: 5, kind: input, shape index: {}, may-alias: {3,5,7,9}]   ;;  %s1412_s6 = inlined_call_operand.vmem [shape: f32[1,96,32], index: 6, kind: input, shape index: {}]   ;;  %s1413_s7 = inlined_call_operand.vmem [shape: f32[1,1,32], index: 7, kind: input, shape index: {}, may-alias: {3,5,7,9}]   ;;  %s1414_s8 = inlined_call_operand.vmem [shape: f32[1,1,32], index: 8, kind: input, shape index: {}, may-alias: {4,8}]   ;;  %s1415_s9 = inlined_call_operand.vmem [shape: f32[1,1,32], index: 9, kind: input, shape index: {}, may-alias: {3,5,7,9}]   ;;  %s1416_s10 = inlined_call_operand.vmem [shape: f32[1,1,32], index: 10, kind: input, shape index: {}]   ;;  %s1417_s12 = inlined_call_operand.hbm [shape: f32[2,1,8], index: 12, kind: output, shape index: {}]   ;;  %s1418_s11 = inlined_call_operand.<no memory space> [shape: f32[1,1,1], index: 11, kind: input, shape index: {}]  }
   0x1   :  { %1419 = sst [smem:[#allocation9_spill]] %s1407_s1  ;;  %s17_s23 = sshll.u32 %s1406_s0, 4  ;;  %v21_v0 = vstv %s1418_s11  ;;  %s18_s23 = int_to_ptr.vmem [resolvable:$true] %s17_s23 }
   0x2   :  { %22 = vst [vmem:[#allocation4] sm:$0x1] %v21_v0  ;;  %s1002_s26 = scalar_lea.vmem %s18_s23, 16  ;;  %p1007_p1 = scmp.lt.s32.totalorder %s18_s23, %s18_s23 }
   0x3   :  { %p1003_p0 = scmp.ne.s32.totalorder %s18_s23, %s1002_s26  ;;  %p1008_p2 = scmp.lt.s32.totalorder %s1002_s26, %s1002_s26 }
   0x5   :  { %p1009_p3 = por %p1008_p2, %p1007_p1 }
   0x7   :  { %p1010_p4 = pnand %p1009_p3, %p1003_p0 }
   0x9   :  { %1013 = shalt.err (!%p1010_p4)  }
   0xa   :  { %s1078_s27 = smov [#allocation3]  }
   0xb   :  { %20 = dma.vmem_to_smem %s18_s23, 16, %s1078_s27, [#allocation2] }
   0xc   :  { %1056 = dma.done.wait [#allocation2], 16 }
   0xd   :  { %1057 = vsyncadd [#allocation2], 4294967280 }
   0xe   :  { %24 = sfence }
   0xf   :  { %25 = vsyncpa [#allocation6], 0 }
  0x10   :  { %27 = vsyncpa [#allocation6 + $0x1], 0  ;;  %s1156_s0 = smov 0   ;;  %s1158_s28 = smov 0  }
  0x11   :  { %s1160_s11 = smov 0   ;;  %s1162_s29 = smov 0  }
  0x12 LB: > { %s1177_s30 = sadd.s32 4294967295, %s1076_s29   ;;  %s846_s13 = sadd.s32 4294967294, %s1076_s29   ;;  %s1076_s29 = sphi %s1162_s29, %s1426_s29   ;;  %s1072_s11 = sphi %s1160_s11, %s1425_s11   ;;  %s1068_s28 = sphi %s1158_s28, %s1424_s28   ;;  %s1064_s0 = sphi %s1156_s0, %s1423_s0  }
  0x13   : > { %s1181_s14 = sadd.s32 1, %s1076_s29   ;;  %s276_s15 = sadd.s32 1, %s1072_s11 }
  0x14   : > { %s273_s16 = ssub.s32 %s1076_s29, %s1181_s14  ;;  %p286_p5 = scmp.ne.s32.totalorder %s1072_s11, %s1068_s28 }
  0x15   : > { %p274_p6 = scmp.eq.s32.totalorder %s273_s16, 0  ;;  %p287_p7 = scmp.eq.s32.totalorder %s1177_s30, 1 }
  0x16   : > { %p292_p8 = scmp.ne.s32.totalorder %s1068_s28, %s1064_s0  ;;  %p293_p9 = scmp.eq.s32.totalorder %s846_s13, 1 }
  0x17   : > { %s1192_s17 = scalar_select %p274_p6, %s1072_s11, %s276_s15  }
  0x18   : > { %p1194_p10 = por %p287_p7, %p286_p5  ;;  %p1198_p11 = por %p293_p9, %p292_p8 }
  0x19   : > { %p849_p12 = scmp.ge.s32.totalorder %s1076_s29, 1  ;;  %p348_p13 = scmp.lt.s32.totalorder %s1076_s29, 3 }
  0x1b   : > { %p349_p0 = pnand %p849_p12, %p348_p13 }
  0x1c   : > { %p386_p1 = scmp.lt.s32.totalorder (!%p349_p0), %s1177_s30, 1  ;;  %s1422_s1 = sld [smem:[#allocation9_spill]] (!%p349_p0) }
  0x1d   : > { %352 = sbr.rel (%p349_p0) target bundleno = 1501 (0x5dd), region = 64  ;;  %s1081_s22 = smov (!%p349_p0), 32  }
  0x1e   : > { %s390_s20 = sld [smem:[#allocation3 + %s1177_s30]] (!%p349_p0)  ;;  %s384_s21 = sand.u32 (!%p349_p0), 1, %s1068_s28  }
  0x1f   : > { %s862_s23 = sshll.u32 (!%p349_p0), %s1177_s30, 4  ;;  %s779_s13 = scalar_lea.sflag (!%p349_p0), [#allocation6], %s384_s21 }
  0x20   : > { %s789_s26 = scalar_lea.hbm (!%p349_p0), %s1417_s12, %s862_s23 }
  0x22   : > { %v391_v1 = vlaneseq  ;;  %v409_v2 = vld [vmem:[%s1408_s2 + $0x58] sm:$0xff]  ;;  %v1079_v3 = vmov 0.0   ;;  %v408_v4 = vld [vmem:[%s1408_s2 + $0x50] sm:$0xff]  ;;  %s387_s24 = scalar_select %p386_p1, %s1177_s30, 1  ;;  %v407_v6 = vld [vmem:[%s1408_s2 + $0x48] sm:$0xff]  ;;  %vm1080_vm0 = vmmov 0  }
  0x23   : > { %893 = vmatprep.subr.mxu0 %v1079_v3  ;;  %920 = vmatprep.subr.mxu1 %v1079_v3  ;;  %v406_v8 = vld [vmem:[%s1408_s2 + $0x40] sm:$0xff]  ;;  %v405_v11 = vld [vmem:[%s1408_s2 + $0x38] sm:$0xff]  ;;  %v404_v13 = vld [vmem:[%s1408_s2 + $0x30] sm:$0xff]  ;;  %vm437_vm3 = vcmask 261120   ;;  %vm439_vm4 = vcmask 523264   ;;  %vm447_vm5 = vcmask 785408  }
  0x24   : > { %v1215_v5 = vshrl.u32 %v391_v1, 7  ;;  %894 = vmatpush3.msra.mxu0 %v409_v2  ;;  %917 = vmatprep.mubr.msk.f32.mxu0 %vm1080_vm0, %v1079_v3  ;;  %s850_s27 = sshll.u32 %s387_s24, 3  ;;  %v403_v14 = vld [vmem:[%s1408_s2 + $0x28] sm:$0xff]  ;;  %v402_v15 = vld [vmem:[%s1408_s2 + $0x20] sm:$0xff]  ;;  %v401_v16 = vld [vmem:[%s1408_s2 + $0x18] sm:$0xff]  ;;  %s385_s24 = scalar_lea.vmem [#allocation5], %s384_s21 }
  0x25   : > { %895 = vmatprep.subr.mxu0 %v1079_v3  ;;  %944 = vmatprep.mubr.msk.f32.mxu1 %vm1080_vm0, %v1079_v3  ;;  %s389_s16 = scalar_lea.vmem %s1422_s1, %s850_s27  ;;  %s1082_s27 = smov 64   ;;  %v400_v17 = vld [vmem:[%s1408_s2 + $0x10] sm:$0xff]  ;;  %v399_v18 = vld [vmem:[%s1408_s2 + $0x8] sm:$0xff]  ;;  %v398_v19 = vld [vmem:[%s1408_s2] sm:$0xff]  ;;  %vm776_vm7 = vcmask 57344  }
  0x26   : > { %v1224_v7 = vadd.s32 1, %v1215_v5  ;;  %896 = vmatpush3.msra.mxu0 %v408_v4  ;;  %v397_v9 = vld [vmem:[%s389_s16] sm:$0xff]  ;;  %v1275_v20 = vadd.s32 4294967295, %v1215_v5  ;;  %v563_v38 = vld [vmem:[%s1412_s6 + $0x58] sm:$0xff]  ;;  %v562_v39 = vld [vmem:[%s1412_s6 + $0x50] sm:$0xff]  ;;  %s1084_s16 = smov [#allocation5]  }
  0x27   : > { %897 = vmatprep.subr.mxu0 %v1079_v3  ;;  %430 = vrot.lane.b32.xlu0 %v397_v9, %s1081_s22  ;;  %v421_v10 = vrot.slane %v397_v9, 1  ;;  %v413_v21 = vrot.slane %v397_v9, 7  ;;  %v852_v27 = vld [vmem:[%s1409_s3] ss:$0 sm:$0xff]  ;;  %v561_v40 = vld [vmem:[%s1412_s6 + $0x48] sm:$0xff]  ;;  %v559_v42 = vld [vmem:[%s1412_s6 + $0x38] sm:$0xff] }
  0x28   : > { %vm424_vm1 = vcmp.lt.s32.totalorder %v1224_v7, 8  ;;  %898 = vmatpush3.msra.mxu0 %v407_v6  ;;  %vm415_vm2 = vcmp.ge.s32.totalorder %v1275_v20, 0  ;;  %921 = vmatpush3.msra.mxu1 %v563_v38  ;;  %v560_v41 = vld [vmem:[%s1412_s6 + $0x40] sm:$0xff]  ;;  %v558_v43 = vld [vmem:[%s1412_s6 + $0x30] sm:$0xff]  ;;  %v557_v44 = vld [vmem:[%s1412_s6 + $0x28] sm:$0xff]  ;;  %s1018_s30 = sshll.u32 %s1084_s16, 4  ;;  %s1019_s30 = int_to_ptr.vmem [resolvable:$false] %s1018_s30 }
  0x29   : > { %899 = vmatprep.subr.mxu0 %v1079_v3  ;;  %v428_v12 = vsel %vm424_vm1, %v421_v10, 0.0  ;;  %v420_v23 = vsel %vm415_vm2, %v413_v21, 0.0  ;;  %922 = vmatprep.subr.mxu1 %v1079_v3  ;;  %v556_v45 = vld [vmem:[%s1412_s6 + $0x20] sm:$0xff]  ;;  %v555_v46 = vld [vmem:[%s1412_s6 + $0x18] sm:$0xff]  ;;  %v554_v47 = vld [vmem:[%s1412_s6 + $0x10] sm:$0xff] }
  0x2a   : > { %900 = vmatpush3.msra.mxu0 %v406_v8  ;;  %923 = vmatpush3.msra.mxu1 %v562_v39  ;;  %v553_v51 = vld [vmem:[%s1412_s6 + $0x8] sm:$0xff]  ;;  %v552_v52 = vld [vmem:[%s1412_s6] sm:$0xff] }
  0x2b   : > { %901 = vmatprep.subr.mxu0 %v1079_v3  ;;  %434 = vrot.lane.b32.xlu0 %v428_v12, %s1082_s27  ;;  %v854_v54 = vld [vmem:[%s1410_s4] ss:$0 sm:$0xff] }
  0x2c   : > { %902 = vmatpush3.msra.mxu0 %v405_v11  ;;  %924 = vmatprep.subr.mxu1 %v1079_v3  ;;  %v855_v56 = vld [vmem:[%s1411_s5] ss:$0 sm:$0xff] }
  0x2d   : > { %903 = vmatprep.subr.mxu0 %v1079_v3  ;;  %925 = vmatpush3.msra.mxu1 %v561_v40  ;;  %v856_v6 = vld [vmem:[%s1413_s7] ss:$0 sm:$0xff] }
  0x2e   : > { %904 = vmatpush3.msra.mxu0 %v404_v13  ;;  %926 = vmatprep.subr.mxu1 %v1079_v3 }
  0x2f   : > { %905 = vmatprep.subr.mxu0 %v1079_v3  ;;  %927 = vmatpush3.msra.mxu1 %v560_v41 }
  0x30   : > { %906 = vmatpush3.msra.mxu0 %v403_v14  ;;  %928 = vmatprep.subr.mxu1 %v1079_v3 }
  0x31   : > { %907 = vmatprep.subr.mxu0 %v1079_v3  ;;  %929 = vmatpush3.msra.mxu1 %v559_v42 }
  0x32   : > { %908 = vmatpush3.msra.mxu0 %v402_v15  ;;  %930 = vmatprep.subr.mxu1 %v1079_v3 }
  0x33   : > { %909 = vmatprep.subr.mxu0 %v1079_v3  ;;  %931 = vmatpush3.msra.mxu1 %v558_v43 }
  0x34   : > { %910 = vmatpush3.msra.mxu0 %v401_v16  ;;  %932 = vmatprep.subr.mxu1 %v1079_v3 }
  0x35   : > { %911 = vmatprep.subr.mxu0 %v1079_v3  ;;  %933 = vmatpush3.msra.mxu1 %v557_v44 }
  0x36   : > { %912 = vmatpush3.msra.mxu0 %v400_v17  ;;  %934 = vmatprep.subr.mxu1 %v1079_v3  ;;  %v689_v17 = vld [vmem:[#allocation4] sm:$0x1] }
  0x37   : > { %913 = vmatprep.subr.mxu0 %v1079_v3  ;;  %935 = vmatpush3.msra.mxu1 %v556_v45 }
  0x38   : > { %914 = vmatpush3.msra.mxu0 %v399_v18  ;;  %936 = vmatprep.subr.mxu1 %v1079_v3  ;;  %v1083_v18 = vmov 0  }
  0x39   : > { %915 = vmatprep.subr.mxu0 %v1079_v3  ;;  %937 = vmatpush3.msra.mxu1 %v555_v46 }
  0x3a   : > { %916 = vmatpush3.msra.mxu0 %v398_v19  ;;  %938 = vmatprep.subr.mxu1 %v1079_v3 }
  0x3b   : > { %947 = vmatprep.subr.mxu0 %v1079_v3  ;;  %939 = vmatpush3.msra.mxu1 %v554_v47 }
  0x3c   : > { %940 = vmatprep.subr.mxu1 %v1079_v3  ;;  %997 = vset.pattern.permute.xlu0 %v1083_v18 }
  0x3d   : > { %941 = vmatpush3.msra.mxu1 %v553_v51 }
  0x3e   : > { %942 = vmatprep.subr.mxu1 %v1079_v3 }
  0x3f   : > { %943 = vmatpush3.msra.mxu1 %v552_v52 }
  0x99   : > { %v431_v22 = vpop.permute.xlu0 %430 }
  0x9a   : > { %v438_v24 = vsel %vm437_vm3, %v420_v23, %v431_v22  ;;  %v858_v23 = vld [vmem:[%s1414_s8] ss:$0 sm:$0xff] }
  0x9d   : > { %v435_v25 = vpop.permute.xlu0 %434 }
  0x9e   : > { %v440_v26 = vsel %vm439_vm4, %v438_v24, %v435_v25  ;;  %v859_v25 = vld [vmem:[%s1415_s9] ss:$0 sm:$0xff] }
  0x9f   : > { %918 = vmatmul.mubr.msk.f32.vlgmr.msra.gmra.mxu0 %vm447_vm5, %v440_v26 }
  0xa0   : > { %949 = vmatprep.mubr.msk.f32.mxu0 %vm1080_vm0, %v1079_v3 }
 0x15f   : > { %v517_v28 = vpop.f32.mrf.mxu0 }
 0x160   : > { %v518_v29 = vadd.f32 %v852_v27, %v517_v28  ;;  %v688_v28 = vld [vmem:[%s1416_s10] sm:$0x1] }
 0x161   : > { %v919_v30 = vpop.f32.mrf.mxu0 }
 0x162   : > { %v521_v31 = vmax.f32 %v518_v29, 0.0  ;;  %v697_v29 = vsub.s32 0, %v1215_v5  ;;  %v392_v30 = vand.u32 127, %v391_v1 }
 0x164   : > { %v524_v32 = vsel %vm437_vm3, %v521_v31, 0.0 }
 0x165   : > { %525 = vadd.xlane.f32.xlu1 %v524_v32  ;;  %v393_v32 = vstv %s390_s20  ;;  %s1020_s20 = scalar_lea.vmem %s1019_s30, 32 }
 0x166   : > { %vm394_vm6 = vcmp.lt.s32.totalorder %v392_v30, %v393_v32 }
 0x1ee   : > { %v526_v33 = vpop.xlane.xlu1 %525 }
 0x1ef   : > { %v528_v34 = vmul.f32 0.03125, %v526_v33 }
 0x1f1   : > { %v529_v35 = vsub.f32 %v521_v31, %v528_v34  ;;  %v851_v34 = vsel %vm394_vm6, 1.0, %v1079_v3 }
 0x1f3   : > { %v530_v36 = vmul.f32 %v529_v35, %v529_v35 }
 0x1f5   : > { %v531_v37 = vsel %vm437_vm3, %v530_v36, 0.0 }
 0x1f6   : > { %532 = vadd.xlane.f32.xlu1 %v531_v37 }
 0x27f   : > { %v533_v48 = vpop.xlane.xlu1 %532 }
 0x280   : > { %v534_v49 = vmul.f32 0.03125, %v533_v48 }
 0x282   : > { %v535_v50 = vadd.f32 1e-05, %v534_v49 }
 0x284   : > { %998 = vrsqrt.f32 %v535_v50 }
 0x291   : > { %v999_v53 = vpop.eup %998 }
 0x292   : > { %v537_v55 = vmul.f32 %v999_v53, %v529_v35 }
 0x294   : > { %v544_v57 = vmul.f32 %v854_v54, %v537_v55 }
 0x296   : > { %v551_v58 = vadd.f32 %v855_v56, %v544_v57 }
 0x298   : > { %570 = vrot.lane.b32.xlu0 %v551_v58, %s1081_s22  ;;  %v567_v59 = vrot.slane %v551_v58, 1  ;;  %v565_v61 = vrot.slane %v551_v58, 7  ;;  %s791_s22 = sshll.u32 %s385_s24, 4  ;;  %s792_s22 = int_to_ptr.vmem [resolvable:$true] %s791_s22 }
 0x299   : > { %s1014_s15 = scalar_lea.vmem %s792_s22, 16  ;;  %p1021_p5 = scmp.lt.s32.totalorder %s792_s22, %s1019_s30 }
 0x29a   : > { %v568_v60 = vsel %vm424_vm1, %v567_v59, 0.0  ;;  %v566_v63 = vsel %vm415_vm2, %v565_v61, 0.0  ;;  %p1015_p2 = scmp.ne.s32.totalorder %s792_s22, %s1014_s15  ;;  %p1022_p6 = scmp.lt.s32.totalorder %s1020_s20, %s1014_s15 }
 0x29b   : > { %574 = vrot.lane.b32.xlu1 %v568_v60, %s1082_s27 }
 0x29c   : > { %p1016_p3 = pnand %p1015_p2, %p1194_p10  ;;  %p1023_p7 = por %p1022_p6, %p1021_p5 }
 0x29e   : > { %p1017_p4 = pneg %p1016_p3 }
 0x2a0   : > { %p1024_p8 = pnand %p1023_p7, %p1017_p4 }
 0x30a   : > { %v571_v62 = vpop.permute.xlu0 %570 }
 0x30b   : > { %v577_v0 = vsel %vm437_vm3, %v566_v63, %v571_v62 }
 0x30d   : > { %v575_v2 = vpop.permute.xlu1 %574 }
 0x30e   : > { %v578_v4 = vsel %vm439_vm4, %v577_v0, %v575_v2 }
 0x30f   : > { %945 = vmatmul.mubr.msk.f32.vlgmr.msra.gmra.mxu1 %vm447_vm5, %v578_v4 }
 0x3cf   : > { %v654_v7 = vpop.f32.mrf.mxu1 }
 0x3d0   : > { %v655_v8 = vadd.f32 %v856_v6, %v654_v7 }
 0x3d1   : > { %v946_v9 = vpop.f32.mrf.mxu1 }
 0x3d2   : > { %v658_v10 = vmax.f32 %v655_v8, 0.0 }
 0x3d4   : > { %v661_v11 = vsel %vm437_vm3, %v658_v10, 0.0 }
 0x3d5   : > { %662 = vadd.xlane.f32.xlu0 %v661_v11 }
 0x3eb   : > { %692 = vperm.xlu0 %997, %v689_v17  }
 0x45e   : > { %v663_v12 = vpop.xlane.xlu0 %662 }
 0x45f   : > { %v664_v13 = vmul.f32 0.03125, %v663_v12 }
 0x461   : > { %v665_v14 = vsub.f32 %v658_v10, %v664_v13 }
 0x463   : > { %v666_v15 = vmul.f32 %v665_v14, %v665_v14 }
 0x465   : > { %v667_v16 = vsel %vm437_vm3, %v666_v15, 0.0 }
 0x466   : > { %668 = vadd.xlane.f32.xlu1 %v667_v16  ;;  %v693_v31 = vpop.permute.xlu0 %692 }
 0x467   : > { %v698_v33 = vrot.slane %v693_v31, %v697_v29 }
 0x4ef   : > { %v669_v19 = vpop.xlane.xlu1 %668 }
 0x4f0   : > { %v670_v20 = vmul.f32 0.03125, %v669_v19 }
 0x4f2   : > { %v671_v21 = vadd.f32 1e-05, %v670_v20 }
 0x4f4   : > { %1000 = vrsqrt.f32 %v671_v21 }
 0x501   : > { %v1001_v22 = vpop.eup %1000 }
 0x502   : > { %v673_v24 = vmul.f32 %v1001_v22, %v665_v14 }
 0x504   : > { %v680_v26 = vmul.f32 %v858_v23, %v673_v24 }
 0x506   : > { %v687_v27 = vadd.f32 %v859_v25, %v680_v26 }
 0x508   : > { %948 = vmatpush3.xpose.msk.msra.mxu0 %vm437_vm3, %v687_v27 }
 0x50b   : > { %950 = vmatmul.mubr.msk.f32.vlgmr.msra.gmra.mxu0 %vm437_vm3, %v688_v28 }
 0x5cb   : > { %v771_v35 = vpop.f32.mrf.mxu0 }
 0x5cc   : > { %v772_v36 = vadd.f32 %v771_v35, %v698_v33 }
 0x5cd   : > { %v951_v37 = vpop.f32.mrf.mxu0 }
 0x5ce   : > { %v775_v38 = vmul.f32 %v851_v34, %v772_v36 }
 0x5d0   : > { %777 = vst.msk [vmem:[%s385_s24] sm:$0x1] %vm776_vm7, %v775_v38 }
 0x5d1   : > { %1027 = shalt.err (!%p1024_p8)
}
 0x5d2   : > { %s1028_s1 = scalar_lea.hbm %s789_s26, 16  ;;  %s1032_s24 = scalar_lea.hbm %s1417_s12, 32 }
 0x5d3   : > { %p1029_p9 = scmp.ne.s32.totalorder %s789_s26, %s1028_s1  ;;  %p1033_p0 = scmp.lt.s32.totalorder %s789_s26, %s1417_s12 }
 0x5d4   : > { %p1034_p1 = scmp.lt.s32.totalorder %s1032_s24, %s1028_s1 }
 0x5d5   : > { %p1030_p12 = pnand %p1029_p9, %p1194_p10 }
 0x5d6   : > { %p1035_p2 = por %p1034_p1, %p1033_p0 }
 0x5d7   : > { %p1031_p13 = pneg %p1030_p12 }
 0x5d9   : > { %p1036_p3 = pnand %p1035_p2, %p1031_p13 }
 0x5db   : > { %1039 = shalt.err (!%p1036_p3)
}
 0x5dc   : > { %952 = dma.vmem_to_hbm [thread:$0]  (%p1194_p10), %s792_s22, 16, %s789_s26, %s779_s13  }
 0x5dd PF: > { %p958_p4 = scmp.ge.s32.totalorder %s1076_s29, 2  ;;  %s803_s15 = sand.u32 1, %s1064_s0  }
 0x5de   : > { %s804_s16 = scalar_lea.sflag [#allocation6], %s803_s15 }
 0x5df   : > { %p955_p5 = pnand %p958_p4, %p1198_p11 }
 0x5e1   : > { %p956_p6 = pneg %p955_p5 }
 0x5e3   : > { %1059 = dma.done.wait (%p956_p6), %s804_s16, 16  }
 0x5e4   : > { %1061 = vsyncadd (%p956_p6), %s804_s16, 4294967280  ;;  %p30_p7 = scmp.ge.s32.totalorder %s1181_s14, 4   ;;  %s1423_s0 = smov %s1068_s28 }
 0x5e5   : > { %s1424_s28 = smov %s1072_s11  ;;  %s1425_s11 = smov %s1192_s17 }
 0x5e6   : > { %s1426_s29 = smov %s1181_s14  ;;  %32 = sbr.rel (!%p30_p7) target bundleno = 18 (0x12), region = 99 }
 0x5eb   :  { %808 = vsyncpa [#allocation6], 1 }
 0x5ec   :  { %810 = vsyncpa [#allocation6 + $0x1], 1 }

// kernel: fastspeech2_forward.5
= control target key start
LH: loop header
LB: loop body
LE: loop exit
PB: predicated region body
PF: predicated region fallthrough
CT: control target
= control target key end

     0   :  { %s1882_s0 = inlined_call_operand.vmem [shape: s32[2], index: 0, kind: input, shape index: {}]   ;;  %s1883_s1 = inlined_call_operand.vmem [shape: f32[2,8,32], index: 1, kind: input, shape index: {}]   ;;  %s1884_s2 = inlined_call_operand.vmem [shape: f32[2,96,32], index: 2, kind: input, shape index: {}]   ;;  %s1885_s3 = inlined_call_operand.vmem [shape: f32[2,1,32], index: 3, kind: input, shape index: {}, may-alias: {3,5,7,9}]   ;;  %s1886_s4 = inlined_call_operand.vmem [shape: f32[2,1,32], index: 4, kind: input, shape index: {}, may-alias: {4,8}]   ;;  %s1887_s5 = inlined_call_operand.vmem [shape: f32[2,1,32], index: 5, kind: input, shape index: {}, may-alias: {3,5,7,9}]   ;;  %s1888_s6 = inlined_call_operand.vmem [shape: f32[2,96,32], index: 6, kind: input, shape index: {}]   ;;  %s1889_s7 = inlined_call_operand.vmem [shape: f32[2,1,32], index: 7, kind: input, shape index: {}, may-alias: {3,5,7,9}]   ;;  %s1890_s8 = inlined_call_operand.vmem [shape: f32[2,1,32], index: 8, kind: input, shape index: {}, may-alias: {4,8}]   ;;  %s1891_s9 = inlined_call_operand.vmem [shape: f32[2,1,32], index: 9, kind: input, shape index: {}, may-alias: {3,5,7,9}]   ;;  %s1892_s10 = inlined_call_operand.vmem [shape: f32[2,1,32], index: 10, kind: input, shape index: {}]   ;;  %s1893_s11 = inlined_call_operand.vmem [shape: f32[2,1,1], index: 11, kind: input, shape index: {}]   ;;  %s1894_s12 = inlined_call_operand.vmem [shape: f32[2,2,8], index: 12, kind: output, shape index: {}]  }
   0x1   :  { %s17_s23 = sshll.u32 %s1882_s0, 4  ;;  %s18_s23 = int_to_ptr.vmem [resolvable:$true] %s17_s23 }
   0x2   :  { %s1448_s24 = scalar_lea.vmem %s18_s23, 16  ;;  %p1453_p1 = scmp.lt.s32.totalorder %s18_s23, %s18_s23 }
   0x3   :  { %p1449_p0 = scmp.ne.s32.totalorder %s18_s23, %s1448_s24  ;;  %p1454_p2 = scmp.lt.s32.totalorder %s1448_s24, %s1448_s24 }
   0x5   :  { %p1455_p3 = por %p1454_p2, %p1453_p1 }
   0x7   :  { %p1456_p4 = pnand %p1455_p3, %p1449_p0 }
   0x9   :  { %1459 = shalt.err (!%p1456_p4)  }
   0xa   :  { %s1470_s25 = smov [#allocation3]  }
   0xb   :  { %20 = dma.vmem_to_smem %s18_s23, 16, %s1470_s25, [#allocation2] }
   0xc   :  { %1464 = dma.done.wait [#allocation2], 16 }
   0xd   :  { %1465 = vsyncadd [#allocation2], 4294967280 }
   0xe   :  { %22 = sfence }
   0xf   :  { %s1544_s26 = smov 0  }
  0x10 LB: > { %s1550_s0 = sadd.s32 4294967295, %s1468_s26   ;;  %p1192_p5 = scmp.ge.s32.totalorder %s1468_s26, 1  ;;  %s1468_s26 = sphi %s1544_s26, %s28_s26  }
  0x11   : > { %p343_p6 = scmp.lt.s32.totalorder %s1468_s26, 3 }
  0x13   : > { %p344_p7 = pnand %p1192_p5, %p343_p6 }
  0x14   : > { %p381_p8 = scmp.lt.s32.totalorder (!%p344_p7), %s1550_s0, 1  ;;  %s1473_s22 = smov (!%p344_p7), 32  }
  0x15   : > { %347 = sbr.rel (%p344_p7) target bundleno = 2132 (0x854), region = 64  ;;  %s1474_s28 = smov (!%p344_p7), 64  }
  0x1a   : > { %v390_v0 = vlaneseq  ;;  %v408_v1 = vld [vmem:[%s1884_s2 + $0x58] sm:$0xff]  ;;  %v1471_v2 = vmov 0.0   ;;  %v407_v3 = vld [vmem:[%s1884_s2 + $0x50] sm:$0xff]  ;;  %s1564_s13 = scalar_select %p381_p8, %s1550_s0, 1  ;;  %v406_v5 = vld [vmem:[%s1884_s2 + $0x48] sm:$0xff]  ;;  %vm1472_vm0 = vmmov 0  }
  0x1b   : > { %1306 = vmatprep.subr.mxu0 %v1471_v2  ;;  %1333 = vmatprep.subr.mxu1 %v1471_v2  ;;  %v405_v7 = vld [vmem:[%s1884_s2 + $0x40] sm:$0xff]  ;;  %v404_v10 = vld [vmem:[%s1884_s2 + $0x38] sm:$0xff]  ;;  %v403_v12 = vld [vmem:[%s1884_s2 + $0x30] sm:$0xff]  ;;  %vm436_vm3 = vcmask 261120   ;;  %vm438_vm4 = vcmask 523264   ;;  %vm446_vm5 = vcmask 785408  }
  0x1c   : > { %v1567_v4 = vshrl.u32 %v390_v0, 7  ;;  %1307 = vmatpush3.msra.mxu0 %v408_v1  ;;  %1330 = vmatprep.mubr.msk.f32.mxu0 %vm1472_vm0, %v1471_v2  ;;  %s1193_s16 = sshll.u32 %s1564_s13, 3  ;;  %v402_v13 = vld [vmem:[%s1884_s2 + $0x28] sm:$0xff]  ;;  %v401_v14 = vld [vmem:[%s1884_s2 + $0x20] sm:$0xff]  ;;  %v400_v15 = vld [vmem:[%s1884_s2 + $0x18] sm:$0xff]  ;;  %s1194_s27 = sshll.u32 %s1564_s13, 1 }
  0x1d   : > { %1308 = vmatprep.subr.mxu0 %v1471_v2  ;;  %1357 = vmatprep.mubr.msk.f32.mxu1 %vm1472_vm0, %v1471_v2  ;;  %s384_s19 = scalar_lea.vmem %s1883_s1, %s1193_s16  ;;  %v399_v16 = vld [vmem:[%s1884_s2 + $0x10] sm:$0xff]  ;;  %v398_v17 = vld [vmem:[%s1884_s2 + $0x8] sm:$0xff]  ;;  %v397_v18 = vld [vmem:[%s1884_s2] sm:$0xff]  ;;  %vm1131_vm7 = vcmask 1040384   ;;  %s388_s30 = scalar_lea.vmem %s1894_s12, %s1194_s27  ;;  %vm1133_vm8 = vcmask 58368  }
  0x1e   : > { %v1577_v6 = vadd.s32 1, %v1567_v4  ;;  %1309 = vmatpush3.msra.mxu0 %v407_v3  ;;  %v396_v8 = vld [vmem:[%s384_s19] sm:$0xff]  ;;  %v1628_v19 = vadd.s32 4294967295, %v1567_v4  ;;  %v562_v37 = vld [vmem:[%s1888_s6 + $0x58] sm:$0xff]  ;;  %v561_v38 = vld [vmem:[%s1888_s6 + $0x50] sm:$0xff] }
  0x1f   : > { %1310 = vmatprep.subr.mxu0 %v1471_v2  ;;  %429 = vrot.lane.b32.xlu0 %v396_v8, %s1473_s22  ;;  %v420_v9 = vrot.slane %v396_v8, 1  ;;  %v412_v20 = vrot.slane %v396_v8, 7  ;;  %v1196_v26 = vld [vmem:[%s1885_s3] ss:$0 sm:$0xff]  ;;  %v560_v39 = vld [vmem:[%s1888_s6 + $0x48] sm:$0xff]  ;;  %v558_v41 = vld [vmem:[%s1888_s6 + $0x38] sm:$0xff] }
  0x20   : > { %vm423_vm1 = vcmp.lt.s32.totalorder %v1577_v6, 8  ;;  %1311 = vmatpush3.msra.mxu0 %v406_v5  ;;  %vm414_vm2 = vcmp.ge.s32.totalorder %v1628_v19, 0  ;;  %1334 = vmatpush3.msra.mxu1 %v562_v37  ;;  %v559_v40 = vld [vmem:[%s1888_s6 + $0x40] sm:$0xff]  ;;  %v557_v42 = vld [vmem:[%s1888_s6 + $0x30] sm:$0xff]  ;;  %v556_v43 = vld [vmem:[%s1888_s6 + $0x28] sm:$0xff] }
  0x21   : > { %1312 = vmatprep.subr.mxu0 %v1471_v2  ;;  %v427_v11 = vsel %vm423_vm1, %v420_v9, 0.0  ;;  %v419_v22 = vsel %vm414_vm2, %v412_v20, 0.0  ;;  %1335 = vmatprep.subr.mxu1 %v1471_v2  ;;  %v555_v44 = vld [vmem:[%s1888_s6 + $0x20] sm:$0xff]  ;;  %v554_v45 = vld [vmem:[%s1888_s6 + $0x18] sm:$0xff]  ;;  %v553_v46 = vld [vmem:[%s1888_s6 + $0x10] sm:$0xff] }
  0x22   : > { %1313 = vmatpush3.msra.mxu0 %v405_v7  ;;  %1336 = vmatpush3.msra.mxu1 %v561_v38  ;;  %v552_v50 = vld [vmem:[%s1888_s6 + $0x8] sm:$0xff]  ;;  %v551_v51 = vld [vmem:[%s1888_s6] sm:$0xff]  ;;  %v1217_v3 = vld [vmem:[%s1884_s2 + $0xb8] sm:$0xff] }
  0x23   : > { %1314 = vmatprep.subr.mxu0 %v1471_v2  ;;  %433 = vrot.lane.b32.xlu0 %v427_v11, %s1474_s28  ;;  %v1198_v53 = vld [vmem:[%s1886_s4] ss:$0 sm:$0xff]  ;;  %v1216_v7 = vld [vmem:[%s1884_s2 + $0xb0] sm:$0xff]  ;;  %v1215_v8 = vld [vmem:[%s1884_s2 + $0xa8] sm:$0xff] }
  0x24   : > { %1315 = vmatpush3.msra.mxu0 %v404_v10  ;;  %1337 = vmatprep.subr.mxu1 %v1471_v2  ;;  %v1199_v55 = vld [vmem:[%s1887_s5] ss:$0 sm:$0xff]  ;;  %v1213_v10 = vld [vmem:[%s1884_s2 + $0x98] sm:$0xff]  ;;  %v1212_v11 = vld [vmem:[%s1884_s2 + $0x90] sm:$0xff] }
  0x25   : > { %1316 = vmatprep.subr.mxu0 %v1471_v2  ;;  %1338 = vmatpush3.msra.mxu1 %v560_v39  ;;  %v1214_v9 = vld [vmem:[%s1884_s2 + $0xa0] sm:$0xff]  ;;  %v1235_v6 = vld [vmem:[%s1888_s6 + $0xb0] sm:$0xff] }
  0x26   : > { %1317 = vmatpush3.msra.mxu0 %v403_v12  ;;  %1339 = vmatprep.subr.mxu1 %v1471_v2  ;;  %v1211_v12 = vld [vmem:[%s1884_s2 + $0x88] sm:$0xff] }
  0x27   : > { %1318 = vmatprep.subr.mxu0 %v1471_v2  ;;  %1340 = vmatpush3.msra.mxu1 %v559_v40 }
  0x28   : > { %1319 = vmatpush3.msra.mxu0 %v402_v13  ;;  %1341 = vmatprep.subr.mxu1 %v1471_v2  ;;  %v1210_v13 = vld [vmem:[%s1884_s2 + $0x80] sm:$0xff] }
  0x29   : > { %1320 = vmatprep.subr.mxu0 %v1471_v2  ;;  %1342 = vmatpush3.msra.mxu1 %v558_v41 }
  0x2a   : > { %1321 = vmatpush3.msra.mxu0 %v401_v14  ;;  %1343 = vmatprep.subr.mxu1 %v1471_v2  ;;  %v1209_v14 = vld [vmem:[%s1884_s2 + $0x78] sm:$0xff] }
  0x2b   : > { %1322 = vmatprep.subr.mxu0 %v1471_v2  ;;  %1344 = vmatpush3.msra.mxu1 %v557_v42 }
  0x2c   : > { %1323 = vmatpush3.msra.mxu0 %v400_v15  ;;  %1345 = vmatprep.subr.mxu1 %v1471_v2  ;;  %v1208_v15 = vld [vmem:[%s1884_s2 + $0x70] sm:$0xff] }
  0x2d   : > { %1324 = vmatprep.subr.mxu0 %v1471_v2  ;;  %1346 = vmatpush3.msra.mxu1 %v556_v43 }
  0x2e   : > { %1325 = vmatpush3.msra.mxu0 %v399_v16  ;;  %1347 = vmatprep.subr.mxu1 %v1471_v2  ;;  %v1207_v16 = vld [vmem:[%s1884_s2 + $0x68] sm:$0xff] }
  0x2f   : > { %1326 = vmatprep.subr.mxu0 %v1471_v2  ;;  %1348 = vmatpush3.msra.mxu1 %v555_v44 }
  0x30   : > { %1327 = vmatpush3.msra.mxu0 %v398_v17  ;;  %1349 = vmatprep.subr.mxu1 %v1471_v2  ;;  %v1206_v17 = vld [vmem:[%s1884_s2 + $0x60] sm:$0xff] }
  0x31   : > { %1328 = vmatprep.subr.mxu0 %v1471_v2  ;;  %1350 = vmatpush3.msra.mxu1 %v554_v45 }
  0x32   : > { %1329 = vmatpush3.msra.mxu0 %v397_v18  ;;  %1351 = vmatprep.subr.mxu1 %v1471_v2  ;;  %v1200_v18 = vld [vmem:[%s1889_s7] ss:$0 sm:$0xff] }
  0x33   : > { %1360 = vmatprep.subr.mxu0 %v1471_v2  ;;  %1352 = vmatpush3.msra.mxu1 %v553_v46 }
  0x34   : > { %1353 = vmatprep.subr.mxu1 %v1471_v2 }
  0x35   : > { %1354 = vmatpush3.msra.mxu1 %v552_v50  ;;  %v1224_v50 = vld [vmem:[%s1887_s5 + $0x1] ss:$0 sm:$0xff] }
  0x36   : > { %1355 = vmatprep.subr.mxu1 %v1471_v2 }
  0x37   : > { %1356 = vmatpush3.msra.mxu1 %v551_v51 }
  0x38   : > { %1365 = vmatprep.subr.mxu1 %v1471_v2 }
  0x91   : > { %v430_v21 = vpop.permute.xlu0 %429 }
  0x92   : > { %v437_v23 = vsel %vm436_vm3, %v419_v22, %v430_v21 }
  0x95   : > { %v434_v24 = vpop.permute.xlu0 %433 }
  0x96   : > { %v1635_v25 = vsel %vm438_vm4, %v437_v23, %v434_v24 }
  0x97   : > { %1331 = vmatmul.mubr.msk.f32.vlgmr.msra.gmra.mxu0 %vm446_vm5, %v1635_v25 }
  0x98   : > { %1362 = vmatprep.mubr.msk.f32.mxu0 %vm1472_vm0, %v1471_v2 }
 0x157   : > { %v516_v27 = vpop.f32.mrf.mxu0 }
 0x158   : > { %v517_v28 = vadd.f32 %v1196_v26, %v516_v27 }
 0x159   : > { %v1332_v29 = vpop.f32.mrf.mxu0 }
 0x15a   : > { %v520_v30 = vmax.f32 %v517_v28, 0.0 }
 0x15c   : > { %v523_v31 = vsel %vm436_vm3, %v520_v30, 0.0 }
 0x15d   : > { %524 = vadd.xlane.f32.xlu1 %v523_v31 }
 0x1e6   : > { %v525_v32 = vpop.xlane.xlu1 %524 }
 0x1e7   : > { %v527_v33 = vmul.f32 0.03125, %v525_v32 }
 0x1e9   : > { %v528_v34 = vsub.f32 %v520_v30, %v527_v33 }
 0x1eb   : > { %v529_v35 = vmul.f32 %v528_v34, %v528_v34 }
 0x1ed   : > { %v530_v36 = vsel %vm436_vm3, %v529_v35, 0.0 }
 0x1ee   : > { %531 = vadd.xlane.f32.xlu1 %v530_v36 }
 0x277   : > { %v532_v47 = vpop.xlane.xlu1 %531 }
 0x278   : > { %v533_v48 = vmul.f32 0.03125, %v532_v47 }
 0x27a   : > { %v534_v49 = vadd.f32 1e-05, %v533_v48  ;;  %v1223_v48 = vld [vmem:[%s1886_s4 + $0x1] ss:$0 sm:$0xff] }
 0x27c   : > { %1440 = vrsqrt.f32 %v534_v49 }
 0x289   : > { %v1441_v52 = vpop.eup %1440 }
 0x28a   : > { %v536_v54 = vmul.f32 %v1441_v52, %v528_v34 }
 0x28c   : > { %v543_v56 = vmul.f32 %v1198_v53, %v536_v54  ;;  %v1202_v53 = vld [vmem:[%s1890_s8] ss:$0 sm:$0xff] }
 0x28e   : > { %v550_v57 = vadd.f32 %v1199_v55, %v543_v56  ;;  %v1203_v56 = vld [vmem:[%s1891_s9] ss:$0 sm:$0xff] }
 0x290   : > { %569 = vrot.lane.b32.xlu0 %v550_v57, %s1473_s22  ;;  %v566_v58 = vrot.slane %v550_v57, 1  ;;  %v564_v60 = vrot.slane %v550_v57, 7 }
 0x292   : > { %v567_v59 = vsel %vm423_vm1, %v566_v58, 0.0  ;;  %v565_v62 = vsel %vm414_vm2, %v564_v60, 0.0 }
 0x293   : > { %573 = vrot.lane.b32.xlu1 %v567_v59, %s1474_s28 }
 0x302   : > { %v570_v61 = vpop.permute.xlu0 %569 }
 0x303   : > { %v576_v63 = vsel %vm436_vm3, %v565_v62, %v570_v61  ;;  %v687_v61 = vld [vmem:[%s1892_s10] sm:$0x1]  ;;  %v1236_v62 = vld [vmem:[%s1888_s6 + $0xb8] sm:$0xff] }
 0x305   : > { %v574_v1 = vpop.permute.xlu1 %573 }
 0x306   : > { %v577_v5 = vsel %vm438_vm4, %v576_v63, %v574_v1  ;;  %v1234_v63 = vld [vmem:[%s1888_s6 + $0xa8] sm:$0xff]  ;;  %v1233_v1 = vld [vmem:[%s1888_s6 + $0xa0] sm:$0xff] }
 0x307   : > { %1358 = vmatmul.mubr.msk.f32.vlgmr.msra.gmra.mxu1 %vm446_vm5, %v577_v5  ;;  %v1231_v5 = vld [vmem:[%s1888_s6 + $0x90] sm:$0xff] }
 0x308   : > { %1366 = vmatpush3.msra.mxu1 %v1217_v3  ;;  %1389 = vmatprep.mubr.msk.f32.mxu1 %vm1472_vm0, %v1471_v2  ;;  %v1232_v3 = vld [vmem:[%s1888_s6 + $0x98] sm:$0xff] }
 0x309   : > { %1367 = vmatprep.subr.mxu1 %v1471_v2 }
 0x30a   : > { %1368 = vmatpush3.msra.mxu1 %v1216_v7  ;;  %v1230_v7 = vld [vmem:[%s1888_s6 + $0x88] sm:$0xff] }
 0x30b   : > { %1369 = vmatprep.subr.mxu1 %v1471_v2 }
 0x30c   : > { %1370 = vmatpush3.msra.mxu1 %v1215_v8  ;;  %v1229_v8 = vld [vmem:[%s1888_s6 + $0x80] sm:$0xff] }
 0x30d   : > { %1371 = vmatprep.subr.mxu1 %v1471_v2 }
 0x30e   : > { %1372 = vmatpush3.msra.mxu1 %v1214_v9  ;;  %v1228_v9 = vld [vmem:[%s1888_s6 + $0x78] sm:$0xff] }
 0x30f   : > { %1373 = vmatprep.subr.mxu1 %v1471_v2 }
 0x310   : > { %1374 = vmatpush3.msra.mxu1 %v1213_v10  ;;  %v1227_v10 = vld [vmem:[%s1888_s6 + $0x70] sm:$0xff] }
 0x311   : > { %1375 = vmatprep.subr.mxu1 %v1471_v2 }
 0x312   : > { %1376 = vmatpush3.msra.mxu1 %v1212_v11  ;;  %v1226_v11 = vld [vmem:[%s1888_s6 + $0x68] sm:$0xff] }
 0x313   : > { %1377 = vmatprep.subr.mxu1 %v1471_v2 }
 0x314   : > { %1378 = vmatpush3.msra.mxu1 %v1211_v12  ;;  %v1225_v12 = vld [vmem:[%s1888_s6 + $0x60] sm:$0xff] }
 0x315   : > { %1379 = vmatprep.subr.mxu1 %v1471_v2 }
 0x316   : > { %1380 = vmatpush3.msra.mxu1 %v1210_v13 }
 0x317   : > { %1381 = vmatprep.subr.mxu1 %v1471_v2 }
 0x318   : > { %1382 = vmatpush3.msra.mxu1 %v1209_v14 }
 0x319   : > { %1383 = vmatprep.subr.mxu1 %v1471_v2 }
 0x31a   : > { %1384 = vmatpush3.msra.mxu1 %v1208_v15 }
 0x31b   : > { %1385 = vmatprep.subr.mxu1 %v1471_v2 }
 0x31c   : > { %1386 = vmatpush3.msra.mxu1 %v1207_v16 }
 0x31d   : > { %1387 = vmatprep.subr.mxu1 %v1471_v2 }
 0x31e   : > { %1388 = vmatpush3.msra.mxu1 %v1206_v17 }
 0x31f   : > { %1390 = vmatmul.mubr.msk.f32.vlgmr.msra.gmra.mxu1 %vm446_vm5, %v1635_v25  ;;  %1419 = vmatprep.subr.mxu1 %v1471_v2  ;;  %v1219_v25 = vld [vmem:[%s1885_s3 + $0x1] ss:$0 sm:$0xff] }
 0x320   : > { %1421 = vmatprep.mubr.msk.f32.mxu1 %vm1472_vm0, %v1471_v2 }
 0x3c7   : > { %v653_v20 = vpop.f32.mrf.mxu1 }
 0x3c8   : > { %v654_v21 = vadd.f32 %v1200_v18, %v653_v20 }
 0x3c9   : > { %v1359_v22 = vpop.f32.mrf.mxu1 }
 0x3ca   : > { %v657_v23 = vmax.f32 %v654_v21, 0.0  ;;  %v1238_v22 = vld [vmem:[%s1889_s7 + $0x1] ss:$0 sm:$0xff] }
 0x3cc   : > { %v660_v24 = vsel %vm436_vm3, %v657_v23, 0.0 }
 0x3cd   : > { %661 = vadd.xlane.f32.xlu1 %v660_v24 }
 0x3df   : > { %v862_v26 = vpop.f32.mrf.mxu1 }
 0x3e0   : > { %v863_v27 = vadd.f32 %v1219_v25, %v862_v26 }
 0x3e1   : > { %v1391_v28 = vpop.f32.mrf.mxu1 }
 0x3e2   : > { %v866_v29 = vmax.f32 %v863_v27, 0.0  ;;  %v1475_v27 = vmov 0  }
 0x3e3   : > { %1439 = vset.pattern.permute.xlu1 %v1475_v27  ;;  %1438 = vset.pattern.permute.xlu0 %v1475_v27 }
 0x3e4   : > { %v871_v30 = vsel %vm436_vm3, %v866_v29, 0.0 }
 0x3e5   : > { %872 = vadd.xlane.f32.xlu0 %v871_v30 }
 0x456   : > { %v662_v31 = vpop.xlane.xlu1 %661 }
 0x457   : > { %v663_v32 = vmul.f32 0.03125, %v662_v31 }
 0x459   : > { %v664_v35 = vsub.f32 %v657_v23, %v663_v32 }
 0x45b   : > { %v665_v39 = vmul.f32 %v664_v35, %v664_v35 }
 0x45d   : > { %v666_v40 = vsel %vm436_vm3, %v665_v39, 0.0  ;;  %v1242_v39 = vld [vmem:[%s1890_s8 + $0x1] ss:$0 sm:$0xff] }
 0x46e   : > { %v873_v33 = vpop.xlane.xlu0 %872 }
 0x46f   : > { %v874_v34 = vmul.f32 0.03125, %v873_v33  ;;  %v688_v33 = vld [vmem:[%s1893_s11] sm:$0x1] }
 0x471   : > { %v875_v36 = vsub.f32 %v866_v29, %v874_v34  ;;  %v1245_v34 = vld [vmem:[%s1893_s11 + $0x1] sm:$0x1] }
 0x473   : > { %v876_v37 = vmul.f32 %v875_v36, %v875_v36 }
 0x475   : > { %v877_v38 = vsel %vm436_vm3, %v876_v37, 0.0 }
 0x476   : > { %878 = vadd.xlane.f32.xlu0 %v877_v38 }
 0x47a   : > { %667 = vadd.xlane.f32.xlu0 %v666_v40 }
 0x4ff   : > { %v879_v41 = vpop.xlane.xlu0 %878 }
 0x500   : > { %v880_v42 = vmul.f32 0.03125, %v879_v41  ;;  %v1243_v41 = vld [vmem:[%s1891_s9 + $0x1] ss:$0 sm:$0xff] }
 0x502   : > { %v881_v43 = vadd.f32 1e-05, %v880_v42 }
 0x503   : > { %v668_v44 = vpop.xlane.xlu0 %667 }
 0x504   : > { %1442 = vrsqrt.f32 %v881_v43  ;;  %v669_v45 = vmul.f32 0.03125, %v668_v44  ;;  %v1244_v44 = vld [vmem:[%s1892_s10 + $0x1] sm:$0x1] }
 0x506   : > { %v670_v46 = vadd.f32 1e-05, %v669_v45  ;;  %v696_v45 = vsub.s32 0, %v1567_v4 }
 0x508   : > { %1444 = vrsqrt.f32 %v670_v46 }
 0x511   : > { %v1443_v47 = vpop.eup %1442 }
 0x512   : > { %v883_v49 = vmul.f32 %v1443_v47, %v875_v36 }
 0x514   : > { %v890_v51 = vmul.f32 %v1223_v48, %v883_v49  ;;  %v391_v48 = vand.u32 127, %v390_v0 }
 0x515   : > { %v1445_v52 = vpop.eup %1444 }
 0x516   : > { %v672_v54 = vmul.f32 %v1445_v52, %v664_v35  ;;  %v897_v55 = vadd.f32 %v1224_v50, %v890_v51 }
 0x518   : > { %918 = vrot.lane.b32.xlu0 %v897_v55, %s1473_s22  ;;  %v915_v57 = vrot.slane %v897_v55, 1  ;;  %v679_v58 = vmul.f32 %v1202_v53, %v672_v54  ;;  %v913_v13 = vrot.slane %v897_v55, 7 }
 0x51a   : > { %v916_v59 = vsel %vm423_vm1, %v915_v57, 0.0  ;;  %v686_v60 = vadd.f32 %v1203_v56, %v679_v58  ;;  %v914_v15 = vsel %vm414_vm2, %v913_v13, 0.0 }
 0x51b   : > { %922 = vrot.lane.b32.xlu1 %v916_v59, %s1474_s28  ;;  %s389_s28 = sld [smem:[#allocation3 + %s1550_s0]] }
 0x51c   : > { %1361 = vmatpush3.xpose.msk.msra.mxu0 %vm436_vm3, %v686_v60 }
 0x51d   : > { %1392 = vmatprep.subr.mxu0 %v1471_v2 }
 0x51f   : > { %1363 = vmatmul.mubr.msk.f32.vlgmr.msra.gmra.mxu0 %vm436_vm3, %v687_v61 }
 0x520   : > { %1393 = vmatpush3.msra.mxu0 %v1236_v62  ;;  %1416 = vmatprep.mubr.msk.f32.mxu0 %vm1472_vm0, %v1471_v2 }
 0x521   : > { %1394 = vmatprep.subr.mxu0 %v1471_v2  ;;  %v392_v49 = vstv %s389_s28 }
 0x522   : > { %1395 = vmatpush3.msra.mxu0 %v1235_v6  ;;  %vm393_vm6 = vcmp.lt.s32.totalorder %v391_v48, %v392_v49 }
 0x523   : > { %1396 = vmatprep.subr.mxu0 %v1471_v2  ;;  %v1195_v55 = vsel %vm393_vm6, 1.0, %v1471_v2 }
 0x524   : > { %1397 = vmatpush3.msra.mxu0 %v1234_v63 }
 0x525   : > { %1398 = vmatprep.subr.mxu0 %v1471_v2 }
 0x526   : > { %1399 = vmatpush3.msra.mxu0 %v1233_v1 }
 0x527   : > { %1400 = vmatprep.subr.mxu0 %v1471_v2 }
 0x528   : > { %1401 = vmatpush3.msra.mxu0 %v1232_v3 }
 0x529   : > { %1402 = vmatprep.subr.mxu0 %v1471_v2 }
 0x52a   : > { %1403 = vmatpush3.msra.mxu0 %v1231_v5 }
 0x52b   : > { %1404 = vmatprep.subr.mxu0 %v1471_v2 }
 0x52c   : > { %1405 = vmatpush3.msra.mxu0 %v1230_v7 }
 0x52d   : > { %1406 = vmatprep.subr.mxu0 %v1471_v2 }
 0x52e   : > { %1407 = vmatpush3.msra.mxu0 %v1229_v8 }
 0x52f   : > { %1408 = vmatprep.subr.mxu0 %v1471_v2 }
 0x530   : > { %1409 = vmatpush3.msra.mxu0 %v1228_v9 }
 0x531   : > { %1410 = vmatprep.subr.mxu0 %v1471_v2 }
 0x532   : > { %1411 = vmatpush3.msra.mxu0 %v1227_v10 }
 0x533   : > { %1412 = vmatprep.subr.mxu0 %v1471_v2 }
 0x534   : > { %1413 = vmatpush3.msra.mxu0 %v1226_v11 }
 0x535   : > { %1414 = vmatprep.subr.mxu0 %v1471_v2 }
 0x536   : > { %1415 = vmatpush3.msra.mxu0 %v1225_v12 }
 0x58a   : > { %v919_v14 = vpop.permute.xlu0 %918 }
 0x58b   : > { %v925_v16 = vsel %vm436_vm3, %v914_v15, %v919_v14 }
 0x58d   : > { %v923_v17 = vpop.permute.xlu1 %922 }
 0x58e   : > { %v926_v18 = vsel %vm438_vm4, %v925_v16, %v923_v17 }
 0x58f   : > { %1417 = vmatmul.mubr.msk.f32.vlgmr.msra.gmra.mxu0 %vm446_vm5, %v926_v18 }
 0x5df   : > { %v770_v20 = vpop.f32.mrf.mxu0 }
 0x5e1   : > { %v1364_v21 = vpop.f32.mrf.mxu0 }
 0x64f   : > { %v1002_v23 = vpop.f32.mrf.mxu0 }
 0x650   : > { %v1003_v24 = vadd.f32 %v1238_v22, %v1002_v23 }
 0x651   : > { %v1418_v25 = vpop.f32.mrf.mxu0 }
 0x652   : > { %v1006_v26 = vmax.f32 %v1003_v24, 0.0 }
 0x654   : > { %v1011_v19 = vsel %vm436_vm3, %v1006_v26, 0.0 }
 0x655   : > { %1012 = vadd.xlane.f32.xlu0 %v1011_v19 }
 0x66b   : > { %1044 = vperm.xlu0 %1438, %v1245_v34  }
 0x6de   : > { %v1013_v28 = vpop.xlane.xlu0 %1012 }
 0x6df   : > { %v1014_v29 = vmul.f32 0.03125, %v1013_v28 }
 0x6e1   : > { %v1015_v30 = vsub.f32 %v1006_v26, %v1014_v29 }
 0x6e3   : > { %v1016_v31 = vmul.f32 %v1015_v30, %v1015_v30 }
 0x6e5   : > { %v1017_v32 = vsel %vm436_vm3, %v1016_v31, 0.0 }
 0x6e6   : > { %1018 = vadd.xlane.f32.xlu1 %v1017_v32  ;;  %v1045_v47 = vpop.permute.xlu0 %1044 }
 0x6e7   : > { %v1050_v51 = vrot.slane %v1045_v47, %v696_v45 }
 0x6f7   : > { %691 = vperm.xlu1 %1439, %v688_v33  }
 0x76f   : > { %v1019_v35 = vpop.xlane.xlu1 %1018 }
 0x770   : > { %v1020_v36 = vmul.f32 0.03125, %v1019_v35 }
 0x772   : > { %v1021_v37 = vadd.f32 1e-05, %v1020_v36 }
 0x773   : > { %v692_v46 = vpop.permute.xlu1 %691 }
 0x774   : > { %1446 = vrsqrt.f32 %v1021_v37  ;;  %v697_v50 = vrot.slane %v692_v46, %v696_v45 }
 0x776   : > { %v771_v53 = vadd.f32 %v770_v20, %v697_v50 }
 0x778   : > { %v774_v4 = vmul.f32 %v1195_v55, %v771_v53 }
 0x781   : > { %v1447_v38 = vpop.eup %1446 }
 0x782   : > { %v1023_v40 = vmul.f32 %v1447_v38, %v1015_v30 }
 0x784   : > { %v1030_v42 = vmul.f32 %v1242_v39, %v1023_v40 }
 0x786   : > { %v1037_v43 = vadd.f32 %v1243_v41, %v1030_v42 }
 0x788   : > { %1420 = vmatpush3.xpose.msk.msra.mxu1 %vm436_vm3, %v1037_v43 }
 0x78b   : > { %1422 = vmatmul.mubr.msk.f32.vlgmr.msra.gmra.mxu1 %vm436_vm3, %v1244_v44 }
 0x84b   : > { %v1123_v52 = vpop.f32.mrf.mxu1 }
 0x84c   : > { %v1124_v54 = vadd.f32 %v1123_v52, %v1050_v51 }
 0x84d   : > { %v1423_v56 = vpop.f32.mrf.mxu1 }
 0x84e   : > { %v1127_v57 = vmul.f32 %v1195_v55, %v1124_v54 }
 0x850   : > { %v1129_v58 = vrot.slane %v1127_v57, 7 }
 0x852   : > { %v1132_v0 = vsel %vm1131_vm7, %v774_v4, %v1129_v58 }
 0x853   : > { %1134 = vst.msk [vmem:[%s388_s30] sm:$0x3] %vm1133_vm8, %v1132_v0 }
 0x854 PF: > { %s28_s26 = sadd.s32 1, %s1468_s26  }
 0x855   : > { %p25_p9 = scmp.ge.s32.totalorder %s28_s26, 4  }
 0x857   :  { %27 = sbr.rel (!%p25_p9) target bundleno = 16 (0x10), region = 104 }

// kernel: fastspeech2_forward.4
= control target key start
LH: loop header
LB: loop body
LE: loop exit
PB: predicated region body
PF: predicated region fallthrough
CT: control target
= control target key end

     0   :  { %s2816_s0 = inlined_call_operand.vmem [shape: s32[2], index: 0, kind: input, shape index: {}]   ;;  %s2817_s1 = inlined_call_operand.vmem [shape: f32[2,8,32], index: 1, kind: input, shape index: {}]   ;;  %s2818_s2 = inlined_call_operand.vmem [shape: f32[2,32,96], index: 2, kind: input, shape index: {}]   ;;  %s2819_s3 = inlined_call_operand.vmem [shape: f32[2,1,96], index: 3, kind: input, shape index: {}]   ;;  %s2820_s4 = inlined_call_operand.hbm [shape: f32[2,32,32], index: 4, kind: input, shape index: {}]   ;;  %s2821_s5 = inlined_call_operand.vmem [shape: f32[2,1,32], index: 5, kind: input, shape index: {}, may-alias: {5,7,11,13}]   ;;  %s2822_s6 = inlined_call_operand.vmem [shape: f32[2,1,32], index: 6, kind: input, shape index: {}, may-alias: {6,12}]   ;;  %s2823_s7 = inlined_call_operand.vmem [shape: f32[2,1,32], index: 7, kind: input, shape index: {}, may-alias: {5,7,11,13}]   ;;  %s2824_s8 = inlined_call_operand.hbm [shape: f32[2,288,64], index: 8, kind: input, shape index: {}]   ;;  %s2825_s9 = inlined_call_operand.vmem [shape: f32[2,1,64], index: 9, kind: input, shape index: {}]   ;;  %s2826_s10 = inlined_call_operand.vmem [shape: f32[2,64,32], index: 10, kind: input, shape index: {}]   ;;  %s2827_s11 = inlined_call_operand.vmem [shape: f32[2,1,32], index: 11, kind: input, shape index: {}, may-alias: {5,7,11,13}]   ;;  %s2828_s12 = inlined_call_operand.vmem [shape: f32[2,1,32], index: 12, kind: input, shape index: {}, may-alias: {6,12}]   ;;  %s2829_s13 = inlined_call_operand.vmem [shape: f32[2,1,32], index: 13, kind: input, shape index: {}, may-alias: {5,7,11,13}]   ;;  %s2830_s14 = inlined_call_operand.vmem [shape: f32[2,8,32], index: 14, kind: output, shape index: {}]  }
   0x1   :  { %2837 = sst [smem:[#allocation20_spill]] %s2817_s1  ;;  %s19_s15 = sshll.u32 %s2816_s0, 4  ;;  %s20_s15 = int_to_ptr.vmem [resolvable:$true] %s19_s15 }
   0x2   :  { %2838 = sst [smem:[#allocation21_spill]] %s2818_s2  ;;  %s2159_s16 = scalar_lea.vmem %s20_s15, 16 }
   0x3   :  { %2839 = sst [smem:[#allocation22_spill]] %s2820_s4  ;;  %p2160_p0 = scmp.ne.s32.totalorder %s20_s15, %s2159_s16 }
   0x4   :  { %2840 = sst [smem:[#allocation23_spill]] %s2822_s6  ;;  %p2164_p1 = scmp.lt.s32.totalorder %s20_s15, %s20_s15 }
   0x5   :  { %2841 = sst [smem:[#allocation24_spill]] %s2823_s7  ;;  %p2165_p2 = scmp.lt.s32.totalorder %s2159_s16, %s2159_s16 }
   0x6   :  { %2842 = sst [smem:[#allocation25_spill]] %s2824_s8 }
   0x7   :  { %2843 = sst [smem:[#allocation26_spill]] %s2825_s9  ;;  %p2166_p3 = por %p2165_p2, %p2164_p1 }
   0x8   :  { %2844 = sst [smem:[#allocation27_spill]] %s2826_s10 }
   0x9   :  { %2845 = sst [smem:[#allocation28_spill]] %s2827_s11  ;;  %p2167_p4 = pnand %p2166_p3, %p2160_p0 }
   0xa   :  { %2846 = sst [smem:[#allocation29_spill]] %s2828_s12 }
   0xb   :  { %2847 = sst [smem:[#allocation30_spill]] %s2829_s13 }
   0xc   :  { %2848 = sst [smem:[#allocation31_spill]] %s2830_s14 }
   0xd   :  { %2170 = shalt.err (!%p2167_p4)  }
   0xe   :  { %s2301_s17 = smov [#allocation4]  }
   0xf   :  { %22 = dma.vmem_to_smem %s20_s15, 16, %s2301_s17, [#allocation3] }
  0x10   :  { %2259 = dma.done.wait [#allocation3], 16 }
  0x11   :  { %2260 = vsyncadd [#allocation3], 4294967280 }
  0x12   :  { %24 = sfence }
  0x13   :  { %25 = vsyncpa [#allocation6], 0 }
  0x14   :  { %27 = vsyncpa [#allocation6 + $0x1], 0 }
  0x15   :  { %28 = vsyncpa [#allocation8], 0 }
  0x16   :  { %30 = vsyncpa [#allocation8 + $0x1], 0  ;;  %s2393_s18 = smov 0   ;;  %s2395_s0 = smov 0  }
  0x17   :  { %s2397_s19 = smov 0   ;;  %s2399_s20 = smov 0  }
  0x18   :  { %s2401_s21 = smov 0   ;;  %s2403_s22 = smov 0  }
  0x19   :  { %s2405_s23 = smov 0   ;;  %s2407_s24 = smov 0  }
  0x1a LB: > { %2849 = sst [smem:[#allocation12_spill]] %s2275_s0  ;;  %s1860_s25 = sadd.s32 4294967295, %s2299_s24   ;;  %s2299_s24 = sphi %s2407_s24, %s36_s24   ;;  %s2295_s23 = sphi %s2405_s23, %s2891_s23   ;;  %s2291_s22 = sphi %s2403_s22, %s2890_s22   ;;  %s2287_s21 = sphi %s2401_s21, %s2889_s21   ;;  %s2283_s20 = sphi %s2399_s20, %s2888_s20   ;;  %s2279_s19 = sphi %s2397_s19, %s2887_s19   ;;  %s2275_s0 = sphi %s2395_s0, %s2886_s0   ;;  %s2271_s18 = sphi %s2393_s18, %s2885_s18  }
  0x1b   : > { %2850 = sst [smem:[#allocation13_spill]] %s2279_s19  ;;  %s45_s26 = sadd.s32 1, %s2291_s22 }
  0x1c   : > { %2851 = sst [smem:[#allocation14_spill]] %s2291_s22  ;;  %p46_p5 = scmp.ge.s32.totalorder %s45_s26, 2 }
  0x1d   : > { %2852 = sst [smem:[#allocation15_spill]] %s2295_s23  ;;  %s48_s27 = sadd.s32 1, %s2295_s23 }
  0x1e   : > { %2853 = sst [smem:[#allocation16_spill]] %s2299_s24  ;;  %s133_s28 = sadd.s32 1, %s2279_s19 }
  0x1f   : > { %p140_p6 = scmp.ne.s32.totalorder %s2279_s19, %s2275_s0  ;;  %s2893_s26 = smov (%p46_p5, %s45_s26), 0 }
  0x20   : > { %2854 = sst [smem:[#allocation17_spill]] %s2893_s26  ;;  %s2895_s27 = smov (!%p46_p5, %s48_s27), %s2295_s23 }
  0x21   : > { %s130_s29 = ssub.s32 %s2291_s22, %s2893_s26  ;;  %p141_p7 = scmp.eq.s32.totalorder %s2299_s24, 0 }
  0x22   : > { %p50_p8 = scmp.ge.s32.totalorder %s2895_s27, 2  ;;  %p131_p9 = scmp.eq.s32.totalorder %s130_s29, 0 }
  0x23   : > { %p2443_p10 = por %p141_p7, %p140_p6  ;;  %p146_p11 = scmp.ne.s32.totalorder %s2275_s0, %s2271_s18 }
  0x24   : > { %s2897_s27 = smov (%p50_p8, %s2895_s27), 0  ;;  %p147_p12 = scmp.eq.s32.totalorder %s1860_s25, 0 }
  0x25   : > { %2856 = sst [smem:[#allocation18_spill]] %s2897_s27  ;;  %p2055_p13 = scmp.lt.s32.totalorder %s2299_s24, 4 }
  0x26   : > { %s2451_s15 = scalar_select %p131_p9, %s2279_s19, %s133_s28  }
  0x27   : > { %s2455_s16 = sand.u32 1, %s2279_s19   ;;  %p2457_p0 = por %p147_p12, %p146_p11 }
  0x28   : > { %2857 = sst [smem:[#allocation19_spill]] %s2451_s15  ;;  %s1864_s29 = sshll.u32 %s2455_s16, 5 }
  0x29   : > { %s1899_s26 = sshll.u32 %s2291_s22, 9  ;;  %s2859_s4 = sld [smem:[#allocation22_spill]] }
  0x2a   : > { %s455_s13 = scalar_lea.vmem [#allocation5], %s1864_s29  ;;  %p2468_p1 = pnand %p2055_p13, %p2443_p10 }
  0x2b   : > { %s462_s27 = sshll.u32 %s455_s13, 4  ;;  %s452_s28 = scalar_lea.sflag [#allocation6], %s2455_s16  ;;  %s463_s27 = int_to_ptr.vmem [resolvable:$true] %s462_s27 }
  0x2c   : > { %p2173_p2 = pneg %p2468_p1  ;;  %s2184_s15 = scalar_lea.vmem %s463_s27, 512 }
  0x2d   : > { %p2185_p3 = scmp.ne.s32.totalorder %s463_s27, %s2184_s15  ;;  %s2302_s14 = smov [#allocation5]  }
  0x2e   : > { %s2189_s23 = sshll.u32 %s2302_s14, 4  ;;  %s2190_s23 = int_to_ptr.vmem [resolvable:$false] %s2189_s23 }
  0x2f   : > { %s461_s18 = scalar_lea.hbm %s2859_s4, %s1899_s26  ;;  %p2187_p4 = pnand %p2185_p3, %p2173_p2 }
  0x30   : > { %s2191_s13 = scalar_lea.vmem %s2190_s23, 1024  ;;  %p2192_p6 = scmp.lt.s32.totalorder %s463_s27, %s2190_s23 }
  0x31   : > { %p2188_p5 = pneg %p2187_p4  ;;  %p2193_p7 = scmp.lt.s32.totalorder %s2191_s13, %s2184_s15 }
  0x33   : > { %p2194_p8 = por %p2193_p7, %p2192_p6 }
  0x35   : > { %p2195_p9 = pnand %p2194_p8, %p2188_p5 }
  0x37   : > { %2198 = shalt.err (!%p2195_p9)
}
  0x38   : > { %s2303_s26 = smov 128   ;;  %s2304_s30 = smov 8  }
  0x39   : > { %2051 = dma.hbm_to_vmem [thread:$0]  (!%p2468_p1), %s461_s18, 512, %s463_s27, %s452_s28, %s2303_s26, %s2303_s26, %s2304_s30  }
  0x3a   : > { %p1868_p10 = scmp.ge.s32.totalorder %s2299_s24, 1  ;;  %p541_p11 = scmp.lt.s32.totalorder %s2299_s24, 5 }
  0x3b   : > { %s2041_s15 = smul.u32 288, %s2455_s16  ;;  %s2862_s8 = sld [smem:[#allocation25_spill]] }
  0x3c   : > { %p2486_p12 = pnand %p1868_p10, %p541_p11  ;;  %s2042_s14 = smul.u32 4608, %s2291_s22 }
  0x3d   : > { %s494_s19 = scalar_lea.vmem [#allocation7], %s2041_s15  ;;  %s491_s10 = scalar_lea.sflag [#allocation8], %s2455_s16 }
  0x3e   : > { %s501_s12 = sshll.u32 %s494_s19, 4  ;;  %s2305_s27 = smov [#allocation7]   ;;  %s502_s12 = int_to_ptr.vmem [resolvable:$true] %s501_s12 }
  0x3f   : > { %s2212_s11 = scalar_lea.vmem %s502_s12, 4608  ;;  %s2217_s18 = sshll.u32 %s2305_s27, 4  ;;  %s2218_s18 = int_to_ptr.vmem [resolvable:$false] %s2217_s18 }
  0x40   : > { %p2213_p13 = scmp.ne.s32.totalorder %s502_s12, %s2212_s11  ;;  %s2219_s28 = scalar_lea.vmem %s2218_s18, 9216 }
  0x41   : > { %s500_s4 = scalar_lea.hbm %s2862_s8, %s2042_s14  ;;  %p2220_p5 = scmp.lt.s32.totalorder %s502_s12, %s2218_s18 }
  0x42   : > { %p2215_p3 = pnand %p2213_p13, %p2173_p2  ;;  %p2221_p6 = scmp.lt.s32.totalorder %s2219_s28, %s2212_s11 }
  0x44   : > { %p2216_p4 = pneg %p2215_p3  ;;  %p2222_p7 = por %p2221_p6, %p2220_p5 }
  0x46   : > { %p2223_p8 = pnand %p2222_p7, %p2216_p4 }
  0x48   : > { %2226 = shalt.err (!%p2223_p8)
}
  0x49   : > { %2054 = dma.hbm_to_vmem [thread:$0]  (!%p2468_p1), %s500_s4, 4608, %s502_s12, %s491_s10, %s2303_s26, %s2303_s26, %s2304_s30  }
  0x4a   : > { %545 = sbr.rel (%p2486_p12) target bundleno = 2594 (0xa22), region = 72  ;;  %s547_s19 = sand.u32 (!%p2486_p12), 1, %s2275_s0  }
  0x4b   : > { %s1869_s16 = sshll.u32 (!%p2486_p12), %s547_s19, 5  ;;  %s548_s15 = scalar_lea.sflag (!%p2486_p12), [#allocation6], %s547_s19 }
  0x4c   : > { %s2506_s14 = scalar_lea.vmem (!%p2486_p12), [#allocation5], %s1869_s16 }
  0x4f   : > { %2262 = dma.done.wait (%p2457_p0), %s548_s15, 512  }
  0x50   : > { %2264 = vsyncadd (%p2457_p0), %s548_s15, 4294966784  ;;  %s2043_s11 = smul.u32 288, %s547_s19  ;;  %s557_s25 = scalar_lea.sflag [#allocation8], %s547_s19 }
  0x52   : > { %s2512_s23 = scalar_lea.vmem [#allocation7], %s2043_s11 }
  0x53   : > { %2266 = dma.done.wait (%p2457_p0), %s557_s25, 4608  }
  0x54   : > { %2268 = vsyncadd (%p2457_p0), %s557_s25, 4294962688  ;;  %p645_p1 = scmp.lt.s32.totalorder %s2287_s21, 1  ;;  %p649_p2 = scmp.lt.s32.totalorder %s2283_s20, 1 }
  0x55   : > { %s2863_s1 = sld [smem:[#allocation20_spill]]  ;;  %p1876_p0 = scmp.ne.s32.totalorder %s2283_s20, 0 }
  0x56   : > { %s646_s4 = scalar_select %p645_p1, %s2287_s21, 1 }
  0x57   : > { %s2522_s10 = scalar_select %p649_p2, %s2283_s20, 1 }
  0x58   : > { %s1870_s12 = sshll.u32 %s646_s4, 3  ;;  %s2864_s2 = sld [smem:[#allocation21_spill]] }
  0x59   : > { %s1900_s29 = sshll.u32 %s2522_s10, 5  ;;  %s1901_s27 = sshll.u32 %s2522_s10, 6 }
  0x5a   : > { %s2868_s19 = sld [smem:[#allocation28_spill]] }
  0x5b   : > { %s648_s30 = scalar_lea.vmem %s2863_s1, %s1870_s12  ;;  %s2869_s11 = sld [smem:[#allocation27_spill]] }
  0x5c   : > { %s2870_s22 = sld [smem:[#allocation29_spill]] }
  0x5d   : > { %s2871_s1 = sld [smem:[#allocation30_spill]] }
  0x5e   : > { %s2531_s18 = scalar_lea.vmem %s2864_s2, %s1900_s29  ;;  %s2872_s29 = sld [smem:[#allocation31_spill]] }
  0x60   : > { %s676_s16 = scalar_lea.vmem %s2868_s19, %s2522_s10  ;;  %690 = sbr.rel (%p1876_p0) target bundleno = 103 (0x67), region = 84 }
  0x61   : > { %s2561_s25 = scalar_lea.vmem %s2869_s11, %s1901_s27 }
  0x62   : > { %s679_s6 = scalar_lea.vmem %s2870_s22, %s2522_s10 }
  0x63   : > { %s682_s7 = scalar_lea.vmem %s2871_s1, %s2522_s10 }
  0x64   : > { %s2574_s9 = scalar_lea.vmem %s2872_s29, %s1870_s12 }
  0x65   : > { %v691_v0 = vld [vmem:[%s648_s30] sm:$0xff]  ;;  %vm692_vm0 = vcmask 261120  }
  0x66   : > { %693 = vst.msk [vmem:[#allocation2] sm:$0xff] %vm692_vm0, %v691_v0 }
  0x67 PF: > { %v705_v1 = vld [vmem:[%s2531_s18 + $0x18] sm:$0xff]  ;;  %v2306_v2 = vmov 0.0   ;;  %v704_v3 = vld [vmem:[%s2531_s18 + $0x10] sm:$0xff]  ;;  %vm2307_vm1 = vmmov 0   ;;  %v703_v4 = vld [vmem:[%s2531_s18 + $0x8] sm:$0xff]  ;;  %vm713_vm2 = vcmask 261120   ;;  %s2873_s22 = scalar_lea.vmem %s2819_s3, %s2522_s10  ;;  %v695_v14 = vlaneseq  ;;  %s2874_s19 = scalar_lea.vmem %s2821_s5, %s2522_s10 }
  0x68   : > { %1969 = vmatprep.subr.mxu0 %v2306_v2  ;;  %1977 = vmatprep.mubr.msk.f32.mxu0 %vm2307_vm1, %v2306_v2  ;;  %v702_v5 = vld [vmem:[%s2531_s18] sm:$0xff]  ;;  %s2308_s24 = smov 112   ;;  %s2309_s12 = smov 96   ;;  %vm792_vm3 = vcmask 130048   ;;  %vm870_vm5 = vcmask 64512   ;;  %v1132_v46 = vld [vmem:[%s2506_s14 + $0x10] sm:$0xff] }
  0x69   : > { %1970 = vmatpush3.msra.mxu0 %v705_v1  ;;  %1980 = vmatprep.subr.mxu1 %v2306_v2  ;;  %v1878_v7 = vld [vmem:[%s2873_s22] ss:$0 sm:$0xff]  ;;  %s2310_s30 = smov 80   ;;  %s2614_s18 = sld [smem:[#allocation4 + %s2287_s21]]  ;;  %v788_v15 = vand.u32 127, %v695_v14  ;;  %v1131_v47 = vld [vmem:[%s2506_s14 + $0x8] sm:$0xff] }
  0x6a   : > { %1971 = vmatprep.subr.mxu0 %v2306_v2  ;;  %1982 = vmatprep.mubr.msk.f32.mxu1 %vm2307_vm1, %v2306_v2  ;;  %s2311_s21 = smov 48   ;;  %s2312_s29 = smov 64   ;;  %v1133_v45 = vld [vmem:[%s2506_s14 + $0x18] sm:$0xff]  ;;  %v1130_v48 = vld [vmem:[%s2506_s14] sm:$0xff]  ;;  %vm1371_vm15 = vcmask 523264   ;;  %vm1373_vm0 = vcmask 785408  }
  0x6b   : > { %1972 = vmatpush3.msra.mxu0 %v704_v3  ;;  %s2313_s27 = smov 16   ;;  %v1886_v55 = vld [vmem:[%s2874_s19] ss:$0 sm:$0xff]  ;;  %s2875_s8 = sld [smem:[#allocation23_spill]] }
  0x6c   : > { %1973 = vmatprep.subr.mxu0 %v2306_v2  ;;  %v1281_v3 = vld [vmem:[%s2512_s23 + $0x118] sm:$0xff]  ;;  %s2877_s0 = sld [smem:[#allocation24_spill]]  ;;  %p1896_p9 = scmp.ne.s32.totalorder %s2283_s20, 1 }
  0x6d   : > { %1974 = vmatpush3.msra.mxu0 %v703_v4  ;;  %v2589_v6 = vld [vmem:[#allocation2] sm:$0xff]  ;;  %v1280_v4 = vld [vmem:[%s2512_s23 + $0x110] sm:$0xff]  ;;  %s2879_s22 = sld [smem:[#allocation26_spill]] }
  0x6e   : > { %1975 = vmatprep.subr.mxu0 %v2306_v2 }
  0x6f   : > { %1976 = vmatpush3.msra.mxu0 %v702_v5  ;;  %v698_v16 = vstv %s2614_s18  ;;  %v1279_v5 = vld [vmem:[%s2512_s23 + $0x108] sm:$0xff] }
  0x70   : > { %1978 = vmatmul.mubr.msk.f32.vlgmr.msra.gmra.mxu0 %vm713_vm2, %v2589_v6  ;;  %1990 = vmatprep.subr.mxu0 %v2306_v2  ;;  %vm868_vm4 = vcmp.lt.s32.totalorder %v788_v15, %v698_v16  ;;  %v1258_v15 = vld [vmem:[%s2512_s23 + $0x60] sm:$0xff] }
  0x71   : > { %1992 = vmatprep.mubr.msk.f32.mxu0 %vm2307_vm1, %v2306_v2  ;;  %s2876_s4 = scalar_lea.vmem %s2875_s8, %s2522_s10 }
  0x72   : > { %s2878_s13 = scalar_lea.vmem %s2877_s0, %s2522_s10 }
 0x130   : > { %v783_v8 = vpop.f32.mrf.mxu0 }
 0x131   : > { %v784_v9 = vadd.f32 %v1878_v7, %v783_v8  ;;  %v1277_v7 = vld [vmem:[%s2512_s23 + $0xf8] sm:$0xff] }
 0x132   : > { %v1979_v10 = vpop.f32.mrf.mxu0  ;;  %v1261_v8 = vld [vmem:[%s2512_s23 + $0x78] sm:$0xff] }
 0x133   : > { %958 = vrot.lane.b32.xlu1 %v784_v9, %s2308_s24  ;;  %790 = vrot.lane.b32.xlu0 %v784_v9, %s2309_s12  ;;  %v1260_v10 = vld [vmem:[%s2512_s23 + $0x70] sm:$0xff]  ;;  %s2880_s24 = scalar_lea.vmem %s2879_s22, %s2522_s10 }
 0x137   : > { %960 = vrot.lane.b32.xlu0 %v784_v9, %s2310_s30 }
 0x1a5   : > { %v791_v11 = vpop.permute.xlu0 %790  ;;  %v959_v13 = vpop.permute.xlu1 %958 }
 0x1a6   : > { %1981 = vmatpush3.xpose.msk.msra.mxu1 %vm792_vm3, %v791_v11  ;;  %v1275_v11 = vld [vmem:[%s2512_s23 + $0xe8] sm:$0xff] }
 0x1a7   : > { %1985 = vmatprep.subr.mxu1 %v2306_v2 }
 0x1a9   : > { %1983 = vmatmul.mubr.msk.f32.vlgmr.msra.gmra.mxu1 %vm792_vm3, %v784_v9  ;;  %v961_v12 = vpop.permute.xlu0 %960 }
 0x1aa   : > { %1991 = vmatpush3.xpose.msk.msra.mxu0 %vm792_vm3, %v961_v12  ;;  %1987 = vmatprep.mubr.msk.f32.mxu1 %vm2307_vm1, %v2306_v2  ;;  %v1259_v12 = vld [vmem:[%s2512_s23 + $0x68] sm:$0xff] }
 0x1ab   : > { %2000 = vmatprep.subr.mxu0 %v2306_v2 }
 0x1ad   : > { %1993 = vmatmul.mubr.msk.f32.vlgmr.msra.gmra.mxu0 %vm792_vm3, %v959_v13  ;;  %v1274_v13 = vld [vmem:[%s2512_s23 + $0xe0] sm:$0xff] }
 0x1ae   : > { %2008 = vmatprep.mubr.msk.f32.mxu0 %vm2307_vm1, %v2306_v2  ;;  %2001 = vmatpush3.msra.mxu0 %v1133_v45 }
 0x1af   : > { %2002 = vmatprep.subr.mxu0 %v2306_v2 }
 0x1b0   : > { %2003 = vmatpush3.msra.mxu0 %v1132_v46 }
 0x1b1   : > { %2004 = vmatprep.subr.mxu0 %v2306_v2 }
 0x1b2   : > { %2005 = vmatpush3.msra.mxu0 %v1131_v47 }
 0x1b3   : > { %2006 = vmatprep.subr.mxu0 %v2306_v2 }
 0x1b4   : > { %2007 = vmatpush3.msra.mxu0 %v1130_v48 }
 0x1b5   : > { %2011 = vmatprep.subr.mxu0 %v2306_v2 }
 0x269   : > { %v863_v17 = vpop.f32.mrf.mxu1 }
 0x26a   : > { %v867_v18 = vmul.f32 0.25, %v863_v17  ;;  %v1273_v17 = vld [vmem:[%s2512_s23 + $0xd8] sm:$0xff] }
 0x26b   : > { %v1984_v19 = vpop.f32.mrf.mxu1 }
 0x26c   : > { %v869_v20 = vsel %vm868_vm4, %v867_v18, -1e+09  ;;  %v1257_v18 = vld [vmem:[%s2512_s23 + $0x58] sm:$0xff]  ;;  %v1272_v19 = vld [vmem:[%s2512_s23 + $0xd0] sm:$0xff] }
 0x26d   : > { %v1032_v21 = vpop.f32.mrf.mxu0  ;;  %v871_v22 = vsel %vm870_vm5, %v869_v20, -inf }
 0x26e   : > { %v1036_v23 = vmul.f32 0.25, %v1032_v21  ;;  %872 = vmax.xlane.f32.xlu1 %v871_v22  ;;  %v1271_v21 = vld [vmem:[%s2512_s23 + $0xc8] sm:$0xff] }
 0x26f   : > { %v1994_v24 = vpop.f32.mrf.mxu0  ;;  %v1255_v22 = vld [vmem:[%s2512_s23 + $0x48] sm:$0xff] }
 0x270   : > { %v1037_v25 = vsel %vm868_vm4, %v1036_v23, -1e+09  ;;  %v1270_v23 = vld [vmem:[%s2512_s23 + $0xc0] sm:$0xff] }
 0x271   : > { %v1038_v26 = vsel %vm870_vm5, %v1037_v25, -inf  ;;  %v1254_v24 = vld [vmem:[%s2512_s23 + $0x40] sm:$0xff] }
 0x272   : > { %1039 = vmax.xlane.f32.xlu0 %v1038_v26  ;;  %v1253_v26 = vld [vmem:[%s2512_s23 + $0x38] sm:$0xff] }
 0x2f7   : > { %v873_v27 = vpop.xlane.xlu1 %872 }
 0x2f8   : > { %v874_v28 = vsub.f32 %v869_v20, %v873_v27  ;;  %v1256_v20 = vld [vmem:[%s2512_s23 + $0x50] sm:$0xff] }
 0x2f9   : > { %v1268_v27 = vld [vmem:[%s2512_s23 + $0xb0] sm:$0xff] }
 0x2fa   : > { %v875_v29 = vmul.f32 1.442695, %v874_v28  ;;  %v1252_v28 = vld [vmem:[%s2512_s23 + $0x30] sm:$0xff] }
 0x2fb   : > { %v1040_v30 = vpop.xlane.xlu0 %1039 }
 0x2fc   : > { %2147 = vpow2.f32 %v875_v29  ;;  %v1041_v31 = vsub.f32 %v1037_v25, %v1040_v30  ;;  %v1269_v25 = vld [vmem:[%s2512_s23 + $0xb8] sm:$0xff]  ;;  %v1267_v29 = vld [vmem:[%s2512_s23 + $0xa8] sm:$0xff] }
 0x2fd   : > { %v1251_v30 = vld [vmem:[%s2512_s23 + $0x28] sm:$0xff] }
 0x2fe   : > { %v1042_v32 = vmul.f32 1.442695, %v1041_v31  ;;  %v1266_v31 = vld [vmem:[%s2512_s23 + $0xa0] sm:$0xff] }
 0x300   : > { %2149 = vpow2.f32 %v1042_v32  ;;  %v1250_v32 = vld [vmem:[%s2512_s23 + $0x20] sm:$0xff] }
 0x309   : > { %v2148_v33 = vpop.eup %2147 }
 0x30a   : > { %v877_v34 = vsel %vm870_vm5, %v2148_v33, 0.0 }
 0x30b   : > { %878 = vadd.xlane.f32.xlu0 %v877_v34 }
 0x30d   : > { %v2150_v35 = vpop.eup %2149 }
 0x30e   : > { %v1044_v36 = vsel %vm870_vm5, %v2150_v35, 0.0 }
 0x30f   : > { %1045 = vadd.xlane.f32.xlu1 %v1044_v36  ;;  %v2687_v36 = vshrl.u32 %v695_v14, 7  ;;  %v1265_v14 = vld [vmem:[%s2512_s23 + $0x98] sm:$0xff] }
 0x311   : > { %vm699_vm6 = vcmp.lt.s32.totalorder %v2687_v36, %v698_v16  ;;  %v1339_v16 = vadd.s32 4, %v2687_v36  ;;  %v1324_v45 = vadd.s32 2, %v2687_v36  ;;  %v1292_v46 = vadd.s32 4294967293, %v2687_v36 }
 0x312   : > { %v1316_v47 = vadd.s32 1, %v2687_v36  ;;  %v1308_v48 = vadd.s32 4294967295, %v2687_v36 }
 0x313   : > { %vm1341_vm7 = vcmp.lt.s32.totalorder %v1339_v16, 8  ;;  %vm1326_vm9 = vcmp.lt.s32.totalorder %v1324_v45, 8  ;;  %vm1293_vm10 = vcmp.ge.s32.totalorder %v1292_v46, 0 }
 0x314   : > { %vm1318_vm11 = vcmp.lt.s32.totalorder %v1316_v47, 8  ;;  %vm1309_vm12 = vcmp.ge.s32.totalorder %v1308_v48, 0  ;;  %v1892_v47 = vld [vmem:[%s676_s16] ss:$0 sm:$0xff] }
 0x320   : > { %1049 = vrot.lane.b32.xlu1 %v784_v9, %s2311_s21 }
 0x321   : > { %882 = vrot.lane.b32.xlu0 %v784_v9, %s2312_s29  ;;  %v1276_v9 = vld [vmem:[%s2512_s23 + $0xf0] sm:$0xff] }
 0x394   : > { %v879_v37 = vpop.xlane.xlu0 %878 }
 0x395   : > { %2151 = vrcp.f32 %v879_v37 }
 0x398   : > { %v1046_v38 = vpop.xlane.xlu1 %1045  ;;  %v883_v39 = vpop.permute.xlu0 %882 }
 0x399   : > { %2153 = vrcp.f32 %v1046_v38  ;;  %1986 = vmatpush3.msra.mxu1 %v883_v39  ;;  %v1888_v38 = vld [vmem:[%s2876_s4] ss:$0 sm:$0xff] }
 0x39a   : > { %1995 = vmatprep.subr.mxu1 %v2306_v2 }
 0x39c   : > { %v1050_v42 = vpop.permute.xlu1 %1049 }
 0x3a2   : > { %v2152_v40 = vpop.eup %2151 }
 0x3a3   : > { %v881_v41 = vmul.f32 %v2152_v40, %v2148_v33  ;;  %v1889_v40 = vld [vmem:[%s2878_s13] ss:$0 sm:$0xff] }
 0x3a5   : > { %1988 = vmatmul.mubr.msk.f32.vlgmr.msra.gmra.mxu1 %vm870_vm5, %v881_v41  ;;  %v2705_v41 = vsel %vm699_vm6, 1.0, %v2306_v2 }
 0x3a6   : > { %v2154_v43 = vpop.eup %2153  ;;  %1996 = vmatpush3.msra.mxu1 %v1050_v42  ;;  %1997 = vmatprep.mubr.msk.f32.mxu1 %vm2307_vm1, %v2306_v2 }
 0x3a7   : > { %v1048_v44 = vmul.f32 %v2154_v43, %v2150_v35  ;;  %1920 = vmatprep.subr.mxu1 %v1277_v7  ;;  %v1300_v43 = vadd.s32 4294967294, %v2687_v36 }
 0x3a9   : > { %1998 = vmatmul.mubr.msk.f32.vlgmr.msra.gmra.mxu1 %vm870_vm5, %v1048_v44  ;;  %v1249_v44 = vld [vmem:[%s2512_s23 + $0x18] sm:$0xff]  ;;  %vm1301_vm8 = vcmp.ge.s32.totalorder %v1300_v43, 0 }
 0x3aa   : > { %1921 = vmatpush3.msra.mxu1 %v1261_v8 }
 0x3ab   : > { %1922 = vmatprep.subr.mxu1 %v1276_v9 }
 0x3ac   : > { %1923 = vmatpush3.msra.mxu1 %v1260_v10 }
 0x3ad   : > { %1924 = vmatprep.subr.mxu1 %v1275_v11 }
 0x3ae   : > { %1925 = vmatpush3.msra.mxu1 %v1259_v12  ;;  %v1535_v12 = vld [vmem:[%s2561_s25 + $0x38] sm:$0xff] }
 0x3af   : > { %1926 = vmatprep.subr.mxu1 %v1274_v13  ;;  %v1534_v13 = vld [vmem:[%s2561_s25 + $0x30] sm:$0xff] }
 0x3b0   : > { %1927 = vmatpush3.msra.mxu1 %v1258_v15  ;;  %v1284_v15 = vadd.s32 4294967292, %v2687_v36 }
 0x3b1   : > { %1928 = vmatprep.subr.mxu1 %v1273_v17 }
 0x3b2   : > { %1929 = vmatpush3.msra.mxu1 %v1257_v18  ;;  %vm1285_vm14 = vcmp.ge.s32.totalorder %v1284_v15, 0 }
 0x3b3   : > { %1930 = vmatprep.subr.mxu1 %v1272_v19 }
 0x3b4   : > { %1931 = vmatpush3.msra.mxu1 %v1256_v20 }
 0x3b5   : > { %1932 = vmatprep.subr.mxu1 %v1271_v21 }
 0x3b6   : > { %1933 = vmatpush3.msra.mxu1 %v1255_v22 }
 0x3b7   : > { %1934 = vmatprep.subr.mxu1 %v1270_v23 }
 0x3b8   : > { %1935 = vmatpush3.msra.mxu1 %v1254_v24 }
 0x3b9   : > { %1936 = vmatprep.subr.mxu1 %v1269_v25 }
 0x3ba   : > { %1937 = vmatpush3.msra.mxu1 %v1253_v26 }
 0x3bb   : > { %1938 = vmatprep.subr.mxu1 %v1268_v27 }
 0x3bc   : > { %1939 = vmatpush3.msra.mxu1 %v1252_v28 }
 0x3bd   : > { %1940 = vmatprep.subr.mxu1 %v1267_v29 }
 0x3be   : > { %1941 = vmatpush3.msra.mxu1 %v1251_v30 }
 0x3bf   : > { %1942 = vmatprep.subr.mxu1 %v1266_v31 }
 0x3c0   : > { %1943 = vmatpush3.msra.mxu1 %v1250_v32 }
 0x3c1   : > { %1944 = vmatprep.subr.mxu1 %v1265_v14 }
 0x3c2   : > { %1945 = vmatpush3.msra.mxu1 %v1249_v44 }
 0x465   : > { %v954_v49 = vpop.f32.mrf.mxu1 }
 0x467   : > { %v1989_v50 = vpop.f32.mrf.mxu1 }
 0x468   : > { %v1248_v50 = vld [vmem:[%s2512_s23 + $0x10] sm:$0xff] }
 0x469   : > { %v1121_v51 = vpop.f32.mrf.mxu1 }
 0x46a   : > { %1126 = vrot.lane.b32.xlu1 %v1121_v51, %s2313_s27 }
 0x46b   : > { %v1999_v52 = vpop.f32.mrf.mxu1 }
 0x46c   : > { %v1332_v52 = vadd.s32 3, %v2687_v36 }
 0x46e   : > { %vm1334_vm13 = vcmp.lt.s32.totalorder %v1332_v52, 8 }
 0x4dc   : > { %v1127_v53 = vpop.permute.xlu1 %1126 }
 0x4dd   : > { %v1129_v54 = vsel %vm792_vm3, %v954_v49, %v1127_v53  ;;  %v1264_v49 = vld [vmem:[%s2512_s23 + $0x90] sm:$0xff]  ;;  %v1263_v53 = vld [vmem:[%s2512_s23 + $0x88] sm:$0xff] }
 0x4de   : > { %2009 = vmatmul.mubr.msk.f32.vlgmr.msra.gmra.mxu0 %vm713_vm2, %v1129_v54  ;;  %1946 = vmatprep.subr.mxu1 %v1264_v49  ;;  %v1247_v54 = vld [vmem:[%s2512_s23 + $0x8] sm:$0xff] }
 0x4df   : > { %2019 = vmatprep.mubr.msk.f32.mxu0 %vm2307_vm1, %v2306_v2  ;;  %2012 = vmatpush3.msra.mxu0 %v1281_v3 }
 0x4e0   : > { %2013 = vmatprep.subr.mxu0 %v2306_v2  ;;  %1947 = vmatpush3.msra.mxu1 %v1248_v50 }
 0x4e1   : > { %2014 = vmatpush3.msra.mxu0 %v1280_v4  ;;  %1948 = vmatprep.subr.mxu1 %v1263_v53 }
 0x4e2   : > { %2015 = vmatprep.subr.mxu0 %v2306_v2  ;;  %1949 = vmatpush3.msra.mxu1 %v1247_v54 }
 0x4e3   : > { %2016 = vmatpush3.msra.mxu0 %v1279_v5 }
 0x4e4   : > { %2017 = vmatprep.subr.mxu0 %v2306_v2 }
 0x59e   : > { %v1210_v56 = vpop.f32.mrf.mxu0 }
 0x59f   : > { %v1211_v57 = vadd.f32 %v1886_v55, %v1210_v56  ;;  %v1262_v55 = vld [vmem:[%s2512_s23 + $0x80] sm:$0xff] }
 0x5a0   : > { %v2010_v58 = vpop.f32.mrf.mxu0  ;;  %1950 = vmatprep.subr.mxu1 %v1262_v55 }
 0x5a1   : > { %v1214_v59 = vadd.f32 %v1211_v57, %v2589_v6  ;;  %v1278_v6 = vld [vmem:[%s2512_s23 + $0x100] sm:$0xff] }
 0x5a2   : > { %2018 = vmatpush3.msra.mxu0 %v1278_v6  ;;  %v1246_v57 = vld [vmem:[%s2512_s23] sm:$0xff]  ;;  %s2314_s23 = smov 32  }
 0x5a3   : > { %v1217_v60 = vsel %vm713_vm2, %v1214_v59, 0.0  ;;  %2022 = vmatprep.subr.mxu0 %v2306_v2  ;;  %1951 = vmatpush3.msra.mxu1 %v1246_v57 }
 0x5a4   : > { %1218 = vadd.xlane.f32.xlu0 %v1217_v60 }
 0x62d   : > { %v1219_v61 = vpop.xlane.xlu0 %1218 }
 0x62e   : > { %v1221_v62 = vmul.f32 0.03125, %v1219_v61 }
 0x630   : > { %v2649_v63 = vsub.f32 %v1214_v59, %v1221_v62 }
 0x632   : > { %v1223_v0 = vmul.f32 %v2649_v63, %v2649_v63 }
 0x634   : > { %v1224_v1 = vsel %vm713_vm2, %v1223_v0, 0.0 }
 0x635   : > { %1225 = vadd.xlane.f32.xlu1 %v1224_v1 }
 0x6be   : > { %v1226_v33 = vpop.xlane.xlu1 %1225 }
 0x6bf   : > { %v1227_v34 = vmul.f32 0.03125, %v1226_v33  ;;  %v1533_v33 = vld [vmem:[%s2561_s25 + $0x28] sm:$0xff] }
 0x6c1   : > { %v1228_v35 = vadd.f32 1e-05, %v1227_v34 }
 0x6c3   : > { %2155 = vrsqrt.f32 %v1228_v35  ;;  %v1532_v35 = vld [vmem:[%s2561_s25 + $0x20] sm:$0xff] }
 0x6d0   : > { %v2156_v37 = vpop.eup %2155 }
 0x6d1   : > { %v1230_v39 = vmul.f32 %v2156_v37, %v2649_v63  ;;  %v1531_v37 = vld [vmem:[%s2561_s25 + $0x18] sm:$0xff] }
 0x6d3   : > { %v1237_v42 = vmul.f32 %v1888_v38, %v1230_v39  ;;  %v1530_v38 = vld [vmem:[%s2561_s25 + $0x10] sm:$0xff]  ;;  %v1529_v39 = vld [vmem:[%s2561_s25 + $0x8] sm:$0xff] }
 0x6d5   : > { %v1244_v51 = vadd.f32 %v1889_v40, %v1237_v42  ;;  %v1528_v40 = vld [vmem:[%s2561_s25] sm:$0xff] }
 0x6d6   : > { %v1890_v42 = vld [vmem:[%s2880_s24] ss:$0 sm:$0xff] }
 0x6d7   : > { %v2721_v56 = vmul.f32 %v2705_v41, %v1244_v51 }
 0x6d9   : > { %v1283_v58 = vrot.slane %v2721_v56, 4  ;;  %v1299_v59 = vrot.slane %v2721_v56, 6  ;;  %v1323_v60 = vrot.slane %v2721_v56, 2  ;;  %v1291_v61 = vrot.slane %v2721_v56, 5 }
 0x6da   : > { %v1315_v62 = vrot.slane %v2721_v56, 1  ;;  %v1307_v63 = vrot.slane %v2721_v56, 7  ;;  %v1331_v0 = vrot.slane %v2721_v56, 3 }
 0x6db   : > { %v1345_v1 = vsel %vm1341_vm7, %v1283_v58, 0.0  ;;  %v1306_v3 = vsel %vm1301_vm8, %v1299_v59, 0.0  ;;  %v1330_v4 = vsel %vm1326_vm9, %v1323_v60, 0.0  ;;  %v1298_v5 = vsel %vm1293_vm10, %v1291_v61, 0.0 }
 0x6dc   : > { %2020 = vmatmul.mubr.msk.f32.vlgmr.msra.gmra.mxu0 %vm713_vm2, %v1345_v1  ;;  %v2137_v6 = vpack.i.bf16 %v1306_v3, %v1330_v4  ;;  %v1322_v7 = vsel %vm1318_vm11, %v1315_v62, 0.0  ;;  %v1314_v9 = vsel %vm1309_vm12, %v1307_v63, 0.0  ;;  %v1338_v10 = vsel %vm1334_vm13, %v1331_v0, 0.0  ;;  %v1895_v63 = vld [vmem:[%s682_s7] ss:$0 sm:$0xff] }
 0x6dd   : > { %v2132_v8 = vpack.i.bf16 %v1298_v5, %v1322_v7  ;;  %2038 = vmatprep.mubr.msk.f32.mxu0 %vm2307_vm1, %v2306_v2  ;;  %v2142_v11 = vpack.i.bf16 %v1314_v9, %v1338_v10  ;;  %2023 = vmatpush3.msra.mxu0 %v1535_v12  ;;  %v1290_v23 = vsel %vm1285_vm14, %v1283_v58, 0.0 }
 0x6de   : > { %2138 = vrot.lane.b32.xlu1 %v2137_v6, %s2312_s29  ;;  %2024 = vmatprep.subr.mxu0 %v2306_v2 }
 0x6df   : > { %2133 = vrot.lane.b32.xlu0 %v2132_v8, %s2314_s23  ;;  %2025 = vmatpush3.msra.mxu0 %v1534_v13 }
 0x6e0   : > { %2026 = vmatprep.subr.mxu0 %v2306_v2 }
 0x6e1   : > { %2027 = vmatpush3.msra.mxu0 %v1533_v33 }
 0x6e2   : > { %2028 = vmatprep.subr.mxu0 %v2306_v2 }
 0x6e3   : > { %2143 = vrot.lane.b32.xlu0 %v2142_v11, %s2309_s12  ;;  %2029 = vmatpush3.msra.mxu0 %v1532_v35 }
 0x6e4   : > { %2030 = vmatprep.subr.mxu0 %v2306_v2 }
 0x6e5   : > { %2031 = vmatpush3.msra.mxu0 %v1531_v37 }
 0x6e6   : > { %2032 = vmatprep.subr.mxu0 %v2306_v2 }
 0x6e7   : > { %2033 = vmatpush3.msra.mxu0 %v1530_v38 }
 0x6e8   : > { %2034 = vmatprep.subr.mxu0 %v2306_v2 }
 0x6e9   : > { %2035 = vmatpush3.msra.mxu0 %v1529_v39 }
 0x6ea   : > { %2036 = vmatprep.subr.mxu0 %v2306_v2 }
 0x6eb   : > { %2037 = vmatpush3.msra.mxu0 %v1528_v40 }
 0x750   : > { %v2139_v17 = vpop.permute.xlu1 %2138 }
 0x751   : > { %v2134_v18 = vpop.permute.xlu0 %2133  ;;  %v2141_v21 = vunpack.i.h.bf16 %v2139_v17  ;;  %v2140_v22 = vunpack.i.l.bf16 %v2139_v17 }
 0x752   : > { %v2136_v19 = vunpack.i.h.bf16 %v2134_v18  ;;  %v2135_v20 = vunpack.i.l.bf16 %v2134_v18 }
 0x754   : > { %v1370_v24 = vsel %vm713_vm2, %v1290_v23, %v2136_v19  ;;  %v1375_v25 = vsel %vm713_vm2, %v2721_v56, %v2135_v20 }
 0x755   : > { %v2144_v26 = vpop.permute.xlu0 %2143  ;;  %v1376_v29 = vsel %vm1371_vm15, %v1375_v25, %v2140_v22  ;;  %v1372_v30 = vsel %vm1371_vm15, %v1370_v24, %v2141_v21 }
 0x756   : > { %v2146_v27 = vunpack.i.h.bf16 %v2144_v26  ;;  %v2145_v28 = vunpack.i.l.bf16 %v2144_v26 }
 0x758   : > { %v1377_v31 = vsel %vm1373_vm0, %v1376_v29, %v2145_v28  ;;  %v1374_v32 = vsel %vm1373_vm0, %v1372_v30, %v2146_v27 }
 0x759   : > { %1451 = vmatprep.mubr.f32.mxu1 %v1377_v31 }
 0x75a   : > { %1452 = vmatmul.mubr.f32.vlgmr.msra.gmra.mxu1 %v1374_v32 }
 0x79c   : > { %v1523_v34 = vpop.f32.mrf.mxu0 }
 0x79e   : > { %v2021_v36 = vpop.f32.mrf.mxu0 }
 0x81a   : > { %v1952_v14 = vpop.f32.mrf.mxu1 }
 0x81c   : > { %v1953_v16 = vpop.f32.mrf.mxu1 }
 0x81d   : > { %v1954_v43 = vadd.f32 %v1953_v16, %v1952_v14 }
 0x81f   : > { %v1454_v44 = vadd.f32 %v1954_v43, %v1890_v42 }
 0x821   : > { %v1524_v45 = vadd.f32 %v1523_v34, %v1454_v44 }
 0x823   : > { %v1527_v46 = vmax.f32 %v1524_v45, 0.0 }
 0x825   : > { %2039 = vmatmul.mubr.msk.f32.vlgmr.msra.gmra.mxu0 %vm1371_vm15, %v1527_v46 }
 0x8e5   : > { %v1612_v2 = vpop.f32.mrf.mxu0 }
 0x8e6   : > { %v1613_v48 = vadd.f32 %v1892_v47, %v1612_v2 }
 0x8e7   : > { %v2040_v49 = vpop.f32.mrf.mxu0 }
 0x8e8   : > { %v1616_v50 = vadd.f32 %v1613_v48, %v2721_v56  ;;  %v1894_v56 = vld [vmem:[%s679_s6] ss:$0 sm:$0xff] }
 0x8ea   : > { %v1619_v51 = vsel %vm713_vm2, %v1616_v50, 0.0 }
 0x8eb   : > { %1620 = vadd.xlane.f32.xlu1 %v1619_v51 }
 0x974   : > { %v1621_v52 = vpop.xlane.xlu1 %1620 }
 0x975   : > { %v1622_v53 = vmul.f32 0.03125, %v1621_v52 }
 0x977   : > { %v1623_v54 = vsub.f32 %v1616_v50, %v1622_v53 }
 0x979   : > { %v1624_v55 = vmul.f32 %v1623_v54, %v1623_v54 }
 0x97b   : > { %v1625_v57 = vsel %vm713_vm2, %v1624_v55, 0.0 }
 0x97c   : > { %1626 = vadd.xlane.f32.xlu0 %v1625_v57 }
 0xa05   : > { %v1627_v58 = vpop.xlane.xlu0 %1626 }
 0xa06   : > { %v1628_v59 = vmul.f32 0.03125, %v1627_v58 }
 0xa08   : > { %v1629_v60 = vadd.f32 1e-05, %v1628_v59 }
 0xa0a   : > { %2157 = vrsqrt.f32 %v1629_v60 }
 0xa17   : > { %v2158_v61 = vpop.eup %2157 }
 0xa18   : > { %v1631_v62 = vmul.f32 %v2158_v61, %v1623_v54 }
 0xa1a   : > { %v1638_v0 = vmul.f32 %v1894_v56, %v1631_v62 }
 0xa1c   : > { %v1645_v1 = vadd.f32 %v1895_v63, %v1638_v0  ;;  %1651 = sbr.rel (%p1896_p9) target bundleno = 2594 (0xa22), region = 88 }
 0xa1e   : > { %v1646_v3 = vmul.f32 %v2705_v41, %v1645_v1 }
 0xa20   : > { %1647 = vst.msk [vmem:[#allocation2] sm:$0xff] %vm713_vm2, %v1646_v3 }
 0xa21   : > { %1652 = vst.msk [vmem:[%s2574_s9] sm:$0xff] %vm713_vm2, %v1646_v3 }
 0xa22 PF: > { %s2884_s6 = sld [smem:[#allocation16_spill]] }
 0xa23   : > { %s2885_s18 = sld [smem:[#allocation12_spill]] }
 0xa24   : > { %s2886_s0 = sld [smem:[#allocation13_spill]] }
 0xa25   : > { %s2887_s19 = sld [smem:[#allocation19_spill]] }
 0xa26   : > { %s2888_s20 = sld [smem:[#allocation14_spill]] }
 0xa27   : > { %s2889_s21 = sld [smem:[#allocation15_spill]] }
 0xa28   : > { %s36_s24 = sadd.s32 1, %s2884_s6   ;;  %s2890_s22 = sld [smem:[#allocation17_spill]] }
 0xa29   : > { %p33_p10 = scmp.ge.s32.totalorder %s36_s24, 6   ;;  %s2891_s23 = sld [smem:[#allocation18_spill]] }
 0xa2b   :  { %35 = sbr.rel (!%p33_p10) target bundleno = 26 (0x1a), region = 166 }
 0xa30   :  { %1672 = vsyncpa [#allocation6], 1 }
 0xa31   :  { %1674 = vsyncpa [#allocation6 + $0x1], 1 }
 0xa32   :  { %1675 = vsyncpa [#allocation8], 1 }
 0xa33   :  { %1677 = vsyncpa [#allocation8 + $0x1], 1 }

// kernel: fastspeech2_forward.7
= control target key start
LH: loop header
LB: loop body
LE: loop exit
PB: predicated region body
PF: predicated region fallthrough
CT: control target
= control target key end

     0   :  { %s3157_s0 = inlined_call_operand.vmem [shape: s32[2], index: 0, kind: input, shape index: {}]   ;;  %s3158_s1 = inlined_call_operand.vmem [shape: f32[2,16,32], index: 1, kind: input, shape index: {}]   ;;  %s3159_s2 = inlined_call_operand.vmem [shape: f32[2,32,96], index: 2, kind: input, shape index: {}]   ;;  %s3160_s3 = inlined_call_operand.vmem [shape: f32[2,1,96], index: 3, kind: input, shape index: {}]   ;;  %s3161_s4 = inlined_call_operand.vmem [shape: f32[2,32,32], index: 4, kind: input, shape index: {}]   ;;  %s3162_s5 = inlined_call_operand.vmem [shape: f32[2,1,32], index: 5, kind: input, shape index: {}, may-alias: {5,7,11,13}]   ;;  %s3163_s6 = inlined_call_operand.vmem [shape: f32[2,1,32], index: 6, kind: input, shape index: {}, may-alias: {6,12}]   ;;  %s3164_s7 = inlined_call_operand.vmem [shape: f32[2,1,32], index: 7, kind: input, shape index: {}, may-alias: {5,7,11,13}]   ;;  %s3165_s8 = inlined_call_operand.vmem [shape: f32[2,288,64], index: 8, kind: input, shape index: {}]   ;;  %s3166_s9 = inlined_call_operand.vmem [shape: f32[2,1,64], index: 9, kind: input, shape index: {}]   ;;  %s3167_s10 = inlined_call_operand.vmem [shape: f32[2,64,32], index: 10, kind: input, shape index: {}]   ;;  %s3168_s11 = inlined_call_operand.vmem [shape: f32[2,1,32], index: 11, kind: input, shape index: {}, may-alias: {5,7,11,13}]   ;;  %s3169_s12 = inlined_call_operand.vmem [shape: f32[2,1,32], index: 12, kind: input, shape index: {}, may-alias: {6,12}]   ;;  %s3170_s13 = inlined_call_operand.vmem [shape: f32[2,1,32], index: 13, kind: input, shape index: {}, may-alias: {5,7,11,13}]   ;;  %s3171_s14 = inlined_call_operand.vmem [shape: f32[32,8], index: 14, kind: input, shape index: {}]   ;;  %s3172_s15 = inlined_call_operand.vmem [shape: f32[1,8], index: 15, kind: input, shape index: {}]   ;;  %s3173_s16 = inlined_call_operand.vmem [shape: f32[2,16,8], index: 16, kind: output, shape index: {}]  }
   0x1   :  { %3181 = sst [smem:[#allocation14_spill]] %s3157_s0 }
   0x2   :  { %3182 = sst [smem:[#allocation15_spill]] %s3158_s1 }
   0x3   :  { %3183 = sst [smem:[#allocation16_spill]] %s3159_s2 }
   0x4   :  { %3184 = sst [smem:[#allocation17_spill]] %s3161_s4 }
   0x5   :  { %3185 = sst [smem:[#allocation18_spill]] %s3166_s9 }
   0x6   :  { %3186 = sst [smem:[#allocation19_spill]] %s3167_s10 }
   0x7   :  { %3187 = sst [smem:[#allocation20_spill]] %s3171_s14 }
   0x8   :  { %3188 = sst [smem:[#allocation21_spill]] %s3172_s15 }
   0x9   :  { %s3189_s23 = sld [smem:[#allocation14_spill]] }
   0xf   :  { %s21_s10 = sshll.u32 %s3189_s23, 4  ;;  %s22_s10 = int_to_ptr.vmem [resolvable:$true] %s21_s10 }
  0x10   :  { %s2564_s24 = scalar_lea.vmem %s22_s10, 16  ;;  %p2569_p1 = scmp.lt.s32.totalorder %s22_s10, %s22_s10 }
  0x11   :  { %p2565_p0 = scmp.ne.s32.totalorder %s22_s10, %s2564_s24  ;;  %p2570_p2 = scmp.lt.s32.totalorder %s2564_s24, %s2564_s24 }
  0x13   :  { %p2571_p3 = por %p2570_p2, %p2569_p1 }
  0x15   :  { %p2572_p4 = pnand %p2571_p3, %p2565_p0 }
  0x17   :  { %2575 = shalt.err (!%p2572_p4)  }
  0x18   :  { %s2618_s25 = smov [#allocation4]  }
  0x19   :  { %24 = dma.vmem_to_smem %s22_s10, 16, %s2618_s25, [#allocation3] }
  0x1a   :  { %2596 = dma.done.wait [#allocation3], 16 }
  0x1b   :  { %2597 = vsyncadd [#allocation3], 4294967280 }
  0x1c   :  { %26 = sfence }
  0x1d   :  { %s2715_s26 = smov 0   ;;  %s2717_s27 = smov 0  }
  0x1e   :  { %s2719_s28 = smov 0   ;;  %s2721_s29 = smov 0  }
  0x1f   :  { %s2723_s30 = smov 0  }
  0x20 LB: > { %3190 = sst [smem:[#allocation6_spill]] %s2600_s26  ;;  %s41_s10 = sadd.s32 1, %s2608_s28  ;;  %s2616_s30 = sphi %s2723_s30, %s32_s30   ;;  %s2612_s29 = sphi %s2721_s29, %s3220_s29   ;;  %s2608_s28 = sphi %s2719_s28, %s3219_s28   ;;  %s2604_s27 = sphi %s2717_s27, %s3218_s27   ;;  %s2600_s26 = sphi %s2715_s26, %s3217_s26  }
  0x21   : > { %3191 = sst [smem:[#allocation7_spill]] %s2604_s27  ;;  %s44_s0 = sadd.s32 1, %s2612_s29 }
  0x22   : > { %3192 = sst [smem:[#allocation8_spill]] %s2608_s28  ;;  %p42_p5 = scmp.ge.s32.totalorder %s41_s10, 2 }
  0x23   : > { %3193 = sst [smem:[#allocation9_spill]] %s2612_s29  ;;  %p2227_p6 = scmp.ge.s32.totalorder %s2616_s30, 1 }
  0x24   : > { %3194 = sst [smem:[#allocation10_spill]] %s2616_s30  ;;  %p560_p7 = scmp.lt.s32.totalorder %s2616_s30, 5 }
  0x25   : > { %s3222_s10 = smov (%p42_p5, %s41_s10), 0  ;;  %s3224_s0 = smov (!%p42_p5, %s44_s0), %s2612_s29 }
  0x26   : > { %3195 = sst [smem:[#allocation11_spill]] %s3222_s10  ;;  %p561_p8 = pnand %p2227_p6, %p560_p7 }
  0x27   : > { %p46_p9 = scmp.ge.s32.totalorder %s3224_s0, 2 }
  0x28   : > { %564 = sbr.rel (%p561_p8) target bundleno = 2858 (0xb2a), region = 80 }
  0x29   : > { %s3226_s0 = smov (%p46_p9, %s3224_s0), 0 }
  0x2a   : > { %3196 = sst [smem:[#allocation12_spill]] %s3226_s0 }
  0x2d   : > { %p652_p10 = scmp.lt.s32.totalorder %s2604_s27, 1  ;;  %p657_p11 = scmp.lt.s32.totalorder %s2600_s26, 1 }
  0x2e   : > { %s3197_s1 = sld [smem:[#allocation15_spill]] }
  0x2f   : > { %s653_s17 = scalar_select %p652_p10, %s2604_s27, 1 }
  0x30   : > { %s2753_s18 = scalar_select %p657_p11, %s2600_s26, 1 }
  0x31   : > { %s2276_s19 = sshll.u32 %s653_s17, 4  ;;  %s3198_s2 = sld [smem:[#allocation16_spill]] }
  0x32   : > { %s2277_s23 = sshll.u32 %s2753_s18, 5  ;;  %s3200_s4 = sld [smem:[#allocation17_spill]] }
  0x33   : > { %s2279_s15 = sshll.u32 %s2753_s18, 6  ;;  %s3202_s26 = sld [smem:[#allocation19_spill]] }
  0x34   : > { %s656_s22 = scalar_lea.vmem %s3197_s1, %s2276_s19  ;;  %s697_s29 = scalar_lea.vmem %s3169_s12, %s2753_s18 }
  0x35   : > { %s700_s9 = scalar_lea.vmem %s3170_s13, %s2753_s18 }
  0x37   : > { %s2762_s0 = scalar_lea.vmem %s3198_s2, %s2277_s23 }
  0x38   : > { %3199 = sst [smem:[#allocation13_spill]] %s2762_s0  ;;  %s2771_s14 = scalar_lea.vmem %s3200_s4, %s2277_s23 }
  0x39   : > { %s2460_s0 = smul.u32 288, %s2753_s18  ;;  %s2803_s24 = scalar_lea.vmem %s3202_s26, %s2279_s15 }
  0x3a   : > { %s2816_s4 = scalar_lea.vmem %s3173_s16, %s2276_s19 }
  0x3b   : > { %s2798_s20 = scalar_lea.vmem %s3165_s8, %s2460_s0  ;;  %s3203_s0 = sld [smem:[#allocation6_spill]] }
  0x41   : > { %p2239_p12 = scmp.ne.s32.totalorder %s3203_s0, 0 }
  0x43   : > { %709 = sbr.rel (%p2239_p12) target bundleno = 74 (0x4a), region = 84 }
  0x48   : > { %v710_v0 = vld [vmem:[%s656_s22] sm:$0xff]  ;;  %vm712_vm0 = vcmask 261120   ;;  %v711_v1 = vld [vmem:[%s656_s22 + $0x8] sm:$0xff] }
  0x49   : > { %713 = vst.msk [vmem:[#allocation2] sm:$0xff] %vm712_vm0, %v710_v0  ;;  %714 = vst.msk [vmem:[#allocation2 + $0x8] sm:$0xff] %vm712_vm0, %v711_v1 }
  0x4a PF: > { %s3204_s2 = sld [smem:[#allocation13_spill]]  ;;  %vm739_vm1 = vcmask 261120   ;;  %s3205_s19 = scalar_lea.vmem %s3160_s3, %s2753_s18  ;;  %vm829_vm2 = vcmask 130048   ;;  %v717_v19 = vlaneseq }
  0x4b   : > { %v2242_v8 = vld [vmem:[%s3205_s19] ss:$0 sm:$0xff]  ;;  %s2619_s22 = smov 80   ;;  %s2620_s15 = smov 96  }
  0x4c   : > { %s2621_s27 = smov 112   ;;  %s3206_s17 = sld [smem:[#allocation7_spill]]  ;;  %v822_v20 = vand.u32 127, %v717_v19 }
  0x4d   : > { %s2622_s21 = smov 64   ;;  %s2623_s25 = smov 48  }
  0x4e   : > { %s2624_s10 = smov 16   ;;  %s3207_s23 = scalar_lea.vmem %s3162_s5, %s2753_s18 }
  0x4f   : > { %s3208_s26 = scalar_lea.vmem %s3163_s6, %s2753_s18 }
  0x50   : > { %v731_v2 = vld [vmem:[%s3204_s2 + $0x18] sm:$0xff]  ;;  %v730_v3 = vld [vmem:[%s3204_s2 + $0x10] sm:$0xff]  ;;  %v2821_v4 = vld [vmem:[#allocation2] sm:$0xff] }
  0x51   : > { %2369 = vmatprep.subr.mxu0 %v731_v2  ;;  %v729_v5 = vld [vmem:[%s3204_s2 + $0x8] sm:$0xff]  ;;  %2377 = vmatprep.mubr.msk.f32.mxu0 %vm739_vm1, %v2821_v4  ;;  %v728_v6 = vld [vmem:[%s3204_s2] sm:$0xff] }
  0x52   : > { %2370 = vmatpush3.msra.mxu0 %v731_v2  ;;  %v2827_v7 = vld [vmem:[#allocation2 + $0x8] sm:$0xff]  ;;  %s720_s1 = sld [smem:[#allocation4 + %s3206_s17]] }
  0x53   : > { %2371 = vmatprep.subr.mxu0 %v730_v3  ;;  %s3210_s17 = sld [smem:[#allocation18_spill]] }
  0x54   : > { %2372 = vmatpush3.msra.mxu0 %v730_v3 }
  0x55   : > { %2373 = vmatprep.subr.mxu0 %v729_v5 }
  0x56   : > { %2374 = vmatpush3.msra.mxu0 %v729_v5 }
  0x57   : > { %2375 = vmatprep.subr.mxu0 %v728_v6 }
  0x58   : > { %2376 = vmatpush3.msra.mxu0 %v728_v6  ;;  %v2864_v21 = vstv %s720_s1 }
  0x59   : > { %2378 = vmatmul.mubr.msk.f32.vlgmr.msra.gmra.mxu0 %vm739_vm1, %v2827_v7  ;;  %vm915_vm3 = vcmp.lt.s32.totalorder %v822_v20, %v2864_v21  ;;  %s3211_s1 = scalar_lea.vmem %s3210_s17, %s2753_s18 }
 0x119   : > { %v2379_v9 = vpop.f32.mrf.mxu0 }
 0x11a   : > { %v2836_v10 = vadd.f32 %v2379_v9, %v2242_v8 }
 0x11b   : > { %v812_v11 = vpop.f32.mrf.mxu0 }
 0x11c   : > { %v2838_v12 = vadd.f32 %v2242_v8, %v812_v11  ;;  %1033 = vrot.lane.b32.xlu1 %v2836_v10, %s2619_s22  ;;  %827 = vrot.lane.b32.xlu0 %v2836_v10, %s2620_s15 }
 0x11e   : > { %2384 = vmatprep.mubr.msk.f32.mxu1 %vm829_vm2, %v2838_v12 }
 0x120   : > { %1031 = vrot.lane.b32.xlu1 %v2838_v12, %s2619_s22  ;;  %825 = vrot.lane.b32.xlu0 %v2838_v12, %s2620_s15  ;;  %s3209_s22 = scalar_lea.vmem %s3164_s7, %s2753_s18 }
 0x124   : > { %1029 = vrot.lane.b32.xlu1 %v2836_v10, %s2621_s27  ;;  %1027 = vrot.lane.b32.xlu0 %v2838_v12, %s2621_s27 }
 0x18e   : > { %v828_v13 = vpop.permute.xlu0 %827  ;;  %v1034_v14 = vpop.permute.xlu1 %1033 }
 0x18f   : > { %2380 = vmatprep.subr.msk.mxu1 %vm829_vm2, %v828_v13 }
 0x190   : > { %2381 = vmatpush3.xpose.msk.msra.mxu1 %vm829_vm2, %v828_v13  ;;  %v1243_v13 = vld [vmem:[%s2771_s14 + $0x10] sm:$0xff] }
 0x192   : > { %v826_v15 = vpop.permute.xlu0 %825  ;;  %v1032_v17 = vpop.permute.xlu1 %1031 }
 0x193   : > { %2382 = vmatprep.subr.msk.mxu1 %vm829_vm2, %v826_v15 }
 0x194   : > { %2383 = vmatpush3.xpose.msk.msra.mxu1 %vm829_vm2, %v826_v15  ;;  %v1241_v15 = vld [vmem:[%s2771_s14] sm:$0xff] }
 0x195   : > { %2394 = vmatprep.subr.msk.mxu1 %vm829_vm2, %v1034_v14 }
 0x196   : > { %v1028_v16 = vpop.permute.xlu0 %1027  ;;  %v1030_v18 = vpop.permute.xlu1 %1029 }
 0x197   : > { %2385 = vmatmul.mubr.msk.f32.vlgmr.msra.gmra.mxu1 %vm829_vm2, %v2836_v10 }
 0x198   : > { %2395 = vmatpush3.xpose.msk.msra.mxu1 %vm829_vm2, %v1034_v14  ;;  %2398 = vmatprep.mubr.msk.f32.mxu1 %vm829_vm2, %v1028_v16  ;;  %v1242_v14 = vld [vmem:[%s2771_s14 + $0x8] sm:$0xff] }
 0x199   : > { %2396 = vmatprep.subr.msk.mxu1 %vm829_vm2, %v1032_v17 }
 0x19c   : > { %2397 = vmatpush3.xpose.msk.msra.mxu1 %vm829_vm2, %v1032_v17 }
 0x19f   : > { %2399 = vmatmul.mubr.msk.f32.vlgmr.msra.gmra.mxu1 %vm829_vm2, %v1030_v18 }
 0x257   : > { %v2386_v22 = vpop.f32.mrf.mxu1 }
 0x258   : > { %v914_v23 = vmul.f32 0.25, %v2386_v22 }
 0x259   : > { %v904_v24 = vpop.f32.mrf.mxu1 }
 0x25a   : > { %v913_v25 = vmul.f32 0.25, %v904_v24  ;;  %v917_v26 = vsel %vm915_vm3, %v914_v23, -1e+09 }
 0x25b   : > { %v921_v27 = vsel %vm829_vm2, %v917_v26, -inf }
 0x25c   : > { %922 = vmax.xlane.f32.xlu1 %v921_v27  ;;  %v916_v28 = vsel %vm915_vm3, %v913_v25, -1e+09 }
 0x25d   : > { %v918_v29 = vsel %vm829_vm2, %v916_v28, -inf }
 0x25e   : > { %919 = vmax.xlane.f32.xlu0 %v918_v29 }
 0x25f   : > { %v2400_v30 = vpop.f32.mrf.mxu1 }
 0x260   : > { %v1119_v32 = vmul.f32 0.25, %v2400_v30 }
 0x261   : > { %v1109_v31 = vpop.f32.mrf.mxu1 }
 0x262   : > { %v1118_v33 = vmul.f32 0.25, %v1109_v31  ;;  %v1121_v36 = vsel %vm915_vm3, %v1119_v32, -1e+09 }
 0x263   : > { %v1125_v37 = vsel %vm829_vm2, %v1121_v36, -inf }
 0x264   : > { %v1120_v34 = vsel %vm915_vm3, %v1118_v33, -1e+09 }
 0x265   : > { %v1122_v35 = vsel %vm829_vm2, %v1120_v34, -inf }
 0x266   : > { %1123 = vmax.xlane.f32.xlu0 %v1122_v35 }
 0x26a   : > { %1126 = vmax.xlane.f32.xlu0 %v1125_v37 }
 0x26d   : > { %942 = vrot.lane.b32.xlu1 %v2836_v10, %s2622_s21 }
 0x2e5   : > { %v923_v38 = vpop.xlane.xlu1 %922 }
 0x2e6   : > { %v925_v39 = vsub.f32 %v917_v26, %v923_v38  ;;  %v2257_v26 = vld [vmem:[%s3207_s23] ss:$0 sm:$0xff] }
 0x2e7   : > { %v920_v40 = vpop.xlane.xlu0 %919 }
 0x2e8   : > { %v928_v41 = vmul.f32 1.442695, %v925_v39  ;;  %v924_v42 = vsub.f32 %v916_v28, %v920_v40 }
 0x2e9   : > { %v943_v43 = vpop.permute.xlu1 %942 }
 0x2ea   : > { %2540 = vpow2.f32 %v928_v41  ;;  %v926_v44 = vmul.f32 1.442695, %v924_v42  ;;  %2387 = vmatprep.subr.mxu0 %v943_v43 }
 0x2eb   : > { %2388 = vmatpush3.msra.mxu0 %v943_v43  ;;  %v1417_v43 = vld [vmem:[%s2798_s20 + $0x118] sm:$0xff] }
 0x2ec   : > { %2542 = vpow2.f32 %v926_v44  ;;  %v1416_v44 = vld [vmem:[%s2798_s20 + $0x110] sm:$0xff] }
 0x2ef   : > { %v1124_v45 = vpop.xlane.xlu0 %1123 }
 0x2f0   : > { %v1128_v55 = vsub.f32 %v1120_v34, %v1124_v45  ;;  %v1415_v45 = vld [vmem:[%s2798_s20 + $0x108] sm:$0xff] }
 0x2f2   : > { %v1130_v56 = vmul.f32 1.442695, %v1128_v55  ;;  %v1409_v55 = vld [vmem:[%s2798_s20 + $0xd8] sm:$0xff] }
 0x2f3   : > { %v1127_v46 = vpop.xlane.xlu0 %1126 }
 0x2f4   : > { %v1129_v47 = vsub.f32 %v1121_v36, %v1127_v46  ;;  %v1414_v46 = vld [vmem:[%s2798_s20 + $0x100] sm:$0xff] }
 0x2f6   : > { %v1132_v48 = vmul.f32 1.442695, %v1129_v47  ;;  %v1413_v47 = vld [vmem:[%s2798_s20 + $0xf8] sm:$0xff] }
 0x2f7   : > { %v2541_v49 = vpop.eup %2540  ;;  %2309 = vmatprep.subr.mxu1 %v1413_v47 }
 0x2f8   : > { %2544 = vpow2.f32 %v1132_v48  ;;  %v933_v50 = vsel %vm829_vm2, %v2541_v49, 0.0  ;;  %v1397_v48 = vld [vmem:[%s2798_s20 + $0x78] sm:$0xff] }
 0x2f9   : > { %v2543_v51 = vpop.eup %2542  ;;  %934 = vadd.xlane.f32.xlu0 %v933_v50  ;;  %2546 = vpow2.f32 %v1130_v56  ;;  %v1396_v50 = vld [vmem:[%s2798_s20 + $0x70] sm:$0xff]  ;;  %2310 = vmatpush3.msra.mxu1 %v1397_v48  ;;  %v1393_v56 = vld [vmem:[%s2798_s20 + $0x58] sm:$0xff] }
 0x2fa   : > { %v930_v52 = vsel %vm829_vm2, %v2543_v51, 0.0 }
 0x2fb   : > { %931 = vadd.xlane.f32.xlu1 %v930_v52  ;;  %v1395_v52 = vld [vmem:[%s2798_s20 + $0x68] sm:$0xff] }
 0x305   : > { %v2545_v53 = vpop.eup %2544 }
 0x306   : > { %v1137_v54 = vsel %vm829_vm2, %v2545_v53, 0.0  ;;  %v2547_v57 = vpop.eup %2546 }
 0x307   : > { %1138 = vadd.xlane.f32.xlu0 %v1137_v54  ;;  %v1134_v58 = vsel %vm829_vm2, %v2547_v57, 0.0  ;;  %v1394_v54 = vld [vmem:[%s2798_s20 + $0x60] sm:$0xff] }
 0x30c   : > { %1146 = vrot.lane.b32.xlu1 %v2836_v10, %s2623_s25 }
 0x31d   : > { %940 = vrot.lane.b32.xlu0 %v2838_v12, %s2622_s21 }
 0x330   : > { %1135 = vadd.xlane.f32.xlu1 %v1134_v58  ;;  %v1392_v58 = vld [vmem:[%s2798_s20 + $0x50] sm:$0xff] }
 0x341   : > { %1144 = vrot.lane.b32.xlu1 %v2838_v12, %s2623_s25  ;;  %v1244_v12 = vld [vmem:[%s2771_s14 + $0x18] sm:$0xff]  ;;  %s3212_s25 = scalar_lea.vmem %s3168_s11, %s2753_s18 }
 0x382   : > { %v935_v59 = vpop.xlane.xlu0 %934 }
 0x383   : > { %2548 = vrcp.f32 %v935_v59  ;;  %v1407_v59 = vld [vmem:[%s2798_s20 + $0xc8] sm:$0xff] }
 0x384   : > { %v932_v60 = vpop.xlane.xlu1 %931 }
 0x385   : > { %2550 = vrcp.f32 %v932_v60  ;;  %v1391_v60 = vld [vmem:[%s2798_s20 + $0x48] sm:$0xff] }
 0x388   : > { %v1147_v3 = vpop.permute.xlu1 %1146 }
 0x390   : > { %v1139_v61 = vpop.xlane.xlu0 %1138  ;;  %v2549_v62 = vpop.eup %2548 }
 0x391   : > { %v939_v2 = vmul.f32 %v2549_v62, %v2541_v49  ;;  %2552 = vrcp.f32 %v1139_v61  ;;  %v1412_v49 = vld [vmem:[%s2798_s20 + $0xf0] sm:$0xff]  ;;  %v1406_v61 = vld [vmem:[%s2798_s20 + $0xc0] sm:$0xff] }
 0x392   : > { %v2551_v63 = vpop.eup %2550  ;;  %2311 = vmatprep.subr.mxu1 %v1412_v49  ;;  %v1390_v62 = vld [vmem:[%s2798_s20 + $0x40] sm:$0xff] }
 0x393   : > { %v938_v0 = vmul.f32 %v2551_v63, %v2543_v51  ;;  %v1411_v51 = vld [vmem:[%s2798_s20 + $0xe8] sm:$0xff]  ;;  %2312 = vmatpush3.msra.mxu1 %v1396_v50  ;;  %v1405_v63 = vld [vmem:[%s2798_s20 + $0xb8] sm:$0xff]  ;;  %v1398_v50 = vld [vmem:[%s2798_s20 + $0x80] sm:$0xff] }
 0x394   : > { %v941_v1 = vpop.permute.xlu0 %940  ;;  %2313 = vmatprep.subr.mxu1 %v1411_v51 }
 0x395   : > { %2389 = vmatprep.subr.mxu0 %v941_v1  ;;  %2391 = vmatprep.mubr.msk.f32.mxu0 %vm829_vm2, %v938_v0  ;;  %v1389_v0 = vld [vmem:[%s2798_s20 + $0x38] sm:$0xff] }
 0x396   : > { %2390 = vmatpush3.msra.mxu0 %v941_v1  ;;  %2314 = vmatpush3.msra.mxu1 %v1395_v52  ;;  %v1404_v1 = vld [vmem:[%s2798_s20 + $0xb0] sm:$0xff] }
 0x397   : > { %2392 = vmatmul.mubr.msk.f32.vlgmr.msra.gmra.mxu0 %vm829_vm2, %v939_v2  ;;  %2401 = vmatprep.subr.mxu0 %v1147_v3  ;;  %v1388_v2 = vld [vmem:[%s2798_s20 + $0x30] sm:$0xff] }
 0x398   : > { %2402 = vmatpush3.msra.mxu0 %v1147_v3  ;;  %v1403_v3 = vld [vmem:[%s2798_s20 + $0xa8] sm:$0xff] }
 0x39e   : > { %v2553_v8 = vpop.eup %2552 }
 0x39f   : > { %v1143_v11 = vmul.f32 %v2553_v8, %v2545_v53  ;;  %v1410_v53 = vld [vmem:[%s2798_s20 + $0xe0] sm:$0xff] }
 0x3a0   : > { %2315 = vmatprep.subr.mxu1 %v1410_v53  ;;  %v1386_v8 = vld [vmem:[%s2798_s20 + $0x20] sm:$0xff] }
 0x3a1   : > { %2316 = vmatpush3.msra.mxu1 %v1394_v54 }
 0x3a2   : > { %2317 = vmatprep.subr.mxu1 %v1409_v55  ;;  %v1382_v55 = vld [vmem:[%s2798_s20] sm:$0xff] }
 0x3a3   : > { %2318 = vmatpush3.msra.mxu1 %v1393_v56 }
 0x3b9   : > { %v1136_v5 = vpop.xlane.xlu1 %1135 }
 0x3ba   : > { %2554 = vrcp.f32 %v1136_v5  ;;  %v1387_v5 = vld [vmem:[%s2798_s20 + $0x28] sm:$0xff] }
 0x3bd   : > { %v1145_v6 = vpop.permute.xlu1 %1144 }
 0x3be   : > { %2403 = vmatprep.subr.mxu0 %v1145_v6 }
 0x3bf   : > { %2404 = vmatpush3.msra.mxu0 %v1145_v6  ;;  %v1402_v6 = vld [vmem:[%s2798_s20 + $0xa0] sm:$0xff] }
 0x3c0   : > { %2408 = vmatprep.subr.mxu0 %v1244_v12 }
 0x3c7   : > { %v2555_v9 = vpop.eup %2554 }
 0x3c8   : > { %v1142_v10 = vmul.f32 %v2555_v9, %v2547_v57  ;;  %v1408_v57 = vld [vmem:[%s2798_s20 + $0xd0] sm:$0xff] }
 0x3c9   : > { %2319 = vmatprep.subr.mxu1 %v1408_v57 }
 0x3ca   : > { %2405 = vmatprep.mubr.msk.f32.mxu0 %vm829_vm2, %v1142_v10  ;;  %2320 = vmatpush3.msra.mxu1 %v1392_v58 }
 0x3cb   : > { %2406 = vmatmul.mubr.msk.f32.vlgmr.msra.gmra.mxu0 %vm829_vm2, %v1143_v11  ;;  %2321 = vmatprep.subr.mxu1 %v1407_v59 }
 0x3cc   : > { %2409 = vmatpush3.msra.mxu0 %v1244_v12  ;;  %2322 = vmatpush3.msra.mxu1 %v1391_v60 }
 0x3cd   : > { %2410 = vmatprep.subr.mxu0 %v1243_v13  ;;  %2323 = vmatprep.subr.mxu1 %v1406_v61 }
 0x3ce   : > { %2411 = vmatpush3.msra.mxu0 %v1243_v13  ;;  %2324 = vmatpush3.msra.mxu1 %v1390_v62 }
 0x3cf   : > { %2412 = vmatprep.subr.mxu0 %v1242_v14  ;;  %2325 = vmatprep.subr.mxu1 %v1405_v63 }
 0x3d0   : > { %2413 = vmatpush3.msra.mxu0 %v1242_v14  ;;  %2326 = vmatpush3.msra.mxu1 %v1389_v0 }
 0x3d1   : > { %2414 = vmatprep.subr.mxu0 %v1241_v15  ;;  %2327 = vmatprep.subr.mxu1 %v1404_v1 }
 0x3d2   : > { %2415 = vmatpush3.msra.mxu0 %v1241_v15  ;;  %2328 = vmatpush3.msra.mxu1 %v1388_v2  ;;  %v2949_v15 = vshrl.u32 %v717_v19, 7  ;;  %v2261_v19 = vld [vmem:[%s3209_s22] ss:$0 sm:$0xff] }
 0x3d3   : > { %2419 = vmatprep.subr.mxu0 %v1417_v43  ;;  %2329 = vmatprep.subr.mxu1 %v1403_v3 }
 0x3d4   : > { %2330 = vmatpush3.msra.mxu1 %v1387_v5  ;;  %vm722_vm4 = vcmp.lt.s32.totalorder %v2949_v15, %v2864_v21  ;;  %vm1421_vm6 = vcmp.lt.s32.totalorder %v2949_v15, 4  ;;  %vm1459_vm7 = vcmp.lt.s32.totalorder %v2949_v15, 2  ;;  %vm1516_vm8 = vcmp.lt.s32.totalorder %v2949_v15, 6 }
 0x3d5   : > { %2331 = vmatprep.subr.mxu1 %v1402_v6  ;;  %vm1440_vm11 = vcmp.lt.s32.totalorder %v2949_v15, 3  ;;  %vm1497_vm13 = vcmp.lt.s32.totalorder %v2949_v15, 7  ;;  %vm1478_vm14 = vcmp.lt.s32.totalorder %v2949_v15, 1  ;;  %vm1535_vm15 = vcmp.lt.s32.totalorder %v2949_v15, 5 }
 0x3d6   : > { %2332 = vmatpush3.msra.mxu1 %v1386_v8 }
 0x457   : > { %v2393_v16 = vpop.f32.mrf.mxu0 }
 0x459   : > { %v1018_v17 = vpop.f32.mrf.mxu0 }
 0x48b   : > { %v2407_v18 = vpop.f32.mrf.mxu0 }
 0x48c   : > { %1235 = vrot.lane.b32.xlu1 %v2407_v18, %s2624_s10  ;;  %v2260_v18 = vld [vmem:[%s3208_s26] ss:$0 sm:$0xff] }
 0x48d   : > { %v1222_v20 = vpop.f32.mrf.mxu0 }
 0x48e   : > { %1233 = vrot.lane.b32.xlu0 %v1222_v20, %s2624_s10 }
 0x4fe   : > { %v1236_v22 = vpop.permute.xlu1 %1235 }
 0x4ff   : > { %v1240_v25 = vsel %vm829_vm2, %v2393_v16, %v1236_v22 }
 0x500   : > { %v1234_v23 = vpop.permute.xlu0 %1233 }
 0x501   : > { %v1239_v24 = vsel %vm829_vm2, %v1018_v17, %v1234_v23  ;;  %v2952_v17 = vadd.s32 8, %v2949_v15 }
 0x502   : > { %2416 = vmatprep.mubr.msk.f32.mxu0 %vm739_vm1, %v1239_v24  ;;  %v2625_v24 = vmov 0.0  }
 0x503   : > { %2417 = vmatmul.mubr.msk.f32.vlgmr.msra.gmra.mxu0 %vm739_vm1, %v1240_v25  ;;  %vm723_vm5 = vcmp.lt.s32.totalorder %v2952_v17, %v2864_v21  ;;  %v2969_v25 = vsel %vm722_vm4, 1.0, %v2625_v24  ;;  %v2978_v21 = vadd.s32 2, %v2952_v17 }
 0x504   : > { %2420 = vmatpush3.msra.mxu0 %v1417_v43 }
 0x505   : > { %2421 = vmatprep.subr.mxu0 %v1416_v44  ;;  %vm1524_vm0 = vcmp.lt.s32.totalorder %v2978_v21, 16 }
 0x506   : > { %2422 = vmatpush3.msra.mxu0 %v1416_v44 }
 0x507   : > { %2423 = vmatprep.subr.mxu0 %v1415_v45 }
 0x508   : > { %2424 = vmatpush3.msra.mxu0 %v1415_v45  ;;  %v1383_v45 = vld [vmem:[%s2798_s20 + $0x8] sm:$0xff] }
 0x509   : > { %2425 = vmatprep.subr.mxu0 %v1414_v46 }
 0x50a   : > { %2426 = vmatpush3.msra.mxu0 %v1414_v46 }
 0x5c3   : > { %v2418_v27 = vpop.f32.mrf.mxu0 }
 0x5c4   : > { %v1330_v28 = vadd.f32 %v2418_v27, %v2257_v26 }
 0x5c5   : > { %v1324_v29 = vpop.f32.mrf.mxu0 }
 0x5c6   : > { %v1325_v30 = vadd.f32 %v2257_v26, %v1324_v29  ;;  %v1334_v31 = vadd.f32 %v1330_v28, %v2827_v7  ;;  %v1553_v28 = vadd.s32 4, %v2952_v17  ;;  %v1462_v29 = vadd.s32 4294967294, %v2949_v15 }
 0x5c8   : > { %v1340_v32 = vsel %vm739_vm1, %v1334_v31, 0.0  ;;  %v1333_v33 = vadd.f32 %v1325_v30, %v2821_v4  ;;  %v1443_v30 = vadd.s32 4294967293, %v2949_v15  ;;  %vm1557_vm9 = vcmp.lt.s32.totalorder %v1553_v28, 16 }
 0x5c9   : > { %1341 = vadd.xlane.f32.xlu1 %v1340_v32  ;;  %vm1464_vm10 = vcmp.ge.s32.totalorder %v1462_v29, 0 }
 0x5ca   : > { %v1337_v34 = vsel %vm739_vm1, %v1333_v33, 0.0  ;;  %vm1445_vm12 = vcmp.ge.s32.totalorder %v1443_v30, 0 }
 0x5cb   : > { %1338 = vadd.xlane.f32.xlu0 %v1337_v34 }
 0x652   : > { %v1342_v35 = vpop.xlane.xlu1 %1341 }
 0x653   : > { %v1345_v36 = vmul.f32 0.03125, %v1342_v35 }
 0x654   : > { %v1339_v37 = vpop.xlane.xlu0 %1338 }
 0x655   : > { %v1344_v38 = vmul.f32 0.03125, %v1339_v37  ;;  %v2910_v39 = vsub.f32 %v1334_v31, %v1345_v36  ;;  %v2975_v31 = vsel %vm723_vm5, 1.0, %v2625_v24  ;;  %v1401_v36 = vld [vmem:[%s2798_s20 + $0x98] sm:$0xff] }
 0x656   : > { %v1385_v37 = vld [vmem:[%s2798_s20 + $0x18] sm:$0xff]  ;;  %2333 = vmatprep.subr.mxu1 %v1401_v36 }
 0x657   : > { %v2912_v40 = vsub.f32 %v1333_v33, %v1344_v38  ;;  %v1349_v41 = vmul.f32 %v2910_v39, %v2910_v39  ;;  %v2981_v33 = vadd.s32 4294967295, %v2949_v15  ;;  %v1400_v38 = vld [vmem:[%s2798_s20 + $0x90] sm:$0xff]  ;;  %2334 = vmatpush3.msra.mxu1 %v1385_v37 }
 0x658   : > { %2335 = vmatprep.subr.mxu1 %v1400_v38 }
 0x659   : > { %v1348_v7 = vmul.f32 %v2912_v40, %v2912_v40  ;;  %v1353_v42 = vsel %vm739_vm1, %v1349_v41, 0.0  ;;  %vm1483_vm2 = vcmp.ge.s32.totalorder %v2981_v33, 0 }
 0x65b   : > { %v1350_v4 = vsel %vm739_vm1, %v1348_v7, 0.0  ;;  %v1501_v7 = vadd.s32 1, %v2952_v17 }
 0x65c   : > { %1351 = vadd.xlane.f32.xlu0 %v1350_v4  ;;  %v1399_v4 = vld [vmem:[%s2798_s20 + $0x88] sm:$0xff] }
 0x65d   : > { %vm1505_vm3 = vcmp.lt.s32.totalorder %v1501_v7, 16 }
 0x660   : > { %1354 = vadd.xlane.f32.xlu0 %v1353_v42 }
 0x6e5   : > { %v1352_v9 = vpop.xlane.xlu0 %1351 }
 0x6e6   : > { %v1356_v10 = vmul.f32 0.03125, %v1352_v9 }
 0x6e8   : > { %v1358_v11 = vadd.f32 1e-05, %v1356_v10 }
 0x6e9   : > { %v1355_v12 = vpop.xlane.xlu0 %1354 }
 0x6ea   : > { %2556 = vrsqrt.f32 %v1358_v11  ;;  %v1357_v13 = vmul.f32 0.03125, %v1355_v12 }
 0x6ec   : > { %v1359_v14 = vadd.f32 1e-05, %v1357_v13 }
 0x6ee   : > { %2558 = vrsqrt.f32 %v1359_v14  ;;  %v1539_v14 = vadd.s32 3, %v2952_v17 }
 0x6f0   : > { %vm1543_vm4 = vcmp.lt.s32.totalorder %v1539_v14, 16 }
 0x6f7   : > { %v2557_v16 = vpop.eup %2556 }
 0x6f8   : > { %v1362_v20 = vmul.f32 %v2557_v16, %v2912_v40 }
 0x6fa   : > { %v1370_v22 = vmul.f32 %v2260_v18, %v1362_v20 }
 0x6fb   : > { %v2559_v23 = vpop.eup %2558 }
 0x6fc   : > { %v1378_v26 = vadd.f32 %v2261_v19, %v1370_v22  ;;  %v1363_v27 = vmul.f32 %v2559_v23, %v2910_v39  ;;  %v1384_v39 = vld [vmem:[%s2798_s20 + $0x10] sm:$0xff]  ;;  %s2626_s20 = smov 32  }
 0x6fd   : > { %2336 = vmatpush3.msra.mxu1 %v1384_v39 }
 0x6fe   : > { %v1371_v32 = vmul.f32 %v2260_v18, %v1363_v27  ;;  %v2984_v34 = vmul.f32 %v2969_v25, %v1378_v26  ;;  %2337 = vmatprep.subr.mxu1 %v1399_v4  ;;  %v1424_v27 = vadd.s32 4294967292, %v2949_v15 }
 0x6ff   : > { %2338 = vmatpush3.msra.mxu1 %v1383_v45 }
 0x700   : > { %v1379_v35 = vadd.f32 %v2261_v19, %v1371_v32  ;;  %v1419_v41 = vrot.slane %v2984_v34, 4  ;;  %v1457_v42 = vrot.slane %v2984_v34, 6  ;;  %v1514_v43 = vrot.slane %v2984_v34, 2  ;;  %2339 = vmatprep.subr.mxu1 %v1398_v50 }
 0x701   : > { %v1438_v44 = vrot.slane %v2984_v34, 5  ;;  %v1495_v51 = vrot.slane %v2984_v34, 1  ;;  %v1476_v63 = vrot.slane %v2984_v34, 7  ;;  %v1533_v3 = vrot.slane %v2984_v34, 3  ;;  %2340 = vmatpush3.msra.mxu1 %v1382_v55 }
 0x702   : > { %v2998_v40 = vmul.f32 %v2975_v31, %v1379_v35  ;;  %vm1426_vm5 = vcmp.ge.s32.totalorder %v1424_v27, 0 }
 0x704   : > { %v1420_v46 = vrot.slane %v2998_v40, 4  ;;  %v1458_v47 = vrot.slane %v2998_v40, 6  ;;  %v1515_v48 = vrot.slane %v2998_v40, 2  ;;  %v1439_v49 = vrot.slane %v2998_v40, 5 }
 0x705   : > { %v1496_v52 = vrot.slane %v2998_v40, 1  ;;  %v1477_v53 = vrot.slane %v2998_v40, 7  ;;  %v1534_v54 = vrot.slane %v2998_v40, 3 }
 0x706   : > { %v3021_v56 = vsel %vm1421_vm6, %v1419_v41, %v1420_v46  ;;  %v1423_v57 = vsel %vm1421_vm6, %v1420_v46, %v1419_v41  ;;  %v1461_v58 = vsel %vm1459_vm7, %v1458_v47, %v1457_v42  ;;  %v1517_v59 = vsel %vm1516_vm8, %v1514_v43, %v1515_v48 }
 0x707   : > { %2427 = vmatprep.mubr.msk.f32.mxu0 %vm739_vm1, %v3021_v56  ;;  %v1565_v60 = vsel %vm1557_vm9, %v1423_v57, 0.0  ;;  %v1474_v61 = vsel %vm1464_vm10, %v1461_v58, 0.0  ;;  %v1442_v62 = vsel %vm1440_vm11, %v1439_v49, %v1438_v44  ;;  %v1498_v2 = vsel %vm1497_vm13, %v1495_v51, %v1496_v52 }
 0x708   : > { %2428 = vmatmul.mubr.msk.f32.vlgmr.msra.gmra.mxu0 %vm739_vm1, %v1565_v60  ;;  %v2515_v0 = vpack.i.bf16 %v1474_v61, %v1517_v59  ;;  %v1455_v1 = vsel %vm1445_vm12, %v1442_v62, 0.0  ;;  %v1460_v6 = vsel %vm1459_vm7, %v1457_v42, %v1458_v47  ;;  %v1518_v8 = vsel %vm1516_vm8, %v1515_v48, %v1514_v43  ;;  %v1798_v59 = vld [vmem:[%s2803_s24 + $0x30] sm:$0xff]  ;;  %v1797_v60 = vld [vmem:[%s2803_s24 + $0x28] sm:$0xff]  ;;  %v1796_v61 = vld [vmem:[%s2803_s24 + $0x20] sm:$0xff] }
 0x709   : > { %v2510_v5 = vpack.i.bf16 %v1455_v1, %v1498_v2  ;;  %v1480_v9 = vsel %vm1478_vm14, %v1477_v53, %v1476_v63  ;;  %v1532_v10 = vsel %vm1524_vm0, %v1518_v8, 0.0  ;;  %v1536_v12 = vsel %vm1535_vm15, %v1533_v3, %v1534_v54  ;;  %v1795_v62 = vld [vmem:[%s2803_s24 + $0x18] sm:$0xff]  ;;  %v1792_v1 = vld [vmem:[%s2803_s24] sm:$0xff] }
 0x70a   : > { %2516 = vrot.lane.b32.xlu0 %v2515_v0, %s2622_s21  ;;  %v1493_v11 = vsel %vm1483_vm2, %v1480_v9, 0.0  ;;  %v1499_v13 = vsel %vm1497_vm13, %v1496_v52, %v1495_v51  ;;  %v2530_v16 = vpack.i.bf16 %v1460_v6, %v1532_v10  ;;  %v1441_v20 = vsel %vm1440_vm11, %v1438_v44, %v1439_v49  ;;  %v1793_v0 = vld [vmem:[%s2803_s24 + $0x8] sm:$0xff] }
 0x70b   : > { %2511 = vrot.lane.b32.xlu1 %v2510_v5, %s2626_s20  ;;  %v2520_v18 = vpack.i.bf16 %v1493_v11, %v1536_v12  ;;  %v1513_v19 = vsel %vm1505_vm3, %v1499_v13, 0.0  ;;  %v1537_v22 = vsel %vm1535_vm15, %v1534_v54, %v1533_v3  ;;  %v1479_v24 = vsel %vm1478_vm14, %v1476_v63, %v1477_v53  ;;  %v1794_v63 = vld [vmem:[%s2803_s24 + $0x10] sm:$0xff]  ;;  %v2262_v5 = vld [vmem:[%s3211_s1] ss:$0 sm:$0xff] }
 0x70c   : > { %v2525_v23 = vpack.i.bf16 %v1441_v20, %v1513_v19  ;;  %v1551_v26 = vsel %vm1543_vm4, %v1537_v22, 0.0  ;;  %v1436_v21 = vsel %vm1426_vm5, %v1423_v57, 0.0  ;;  %vm1616_vm6 = vcmask 523264   ;;  %v2265_v22 = vld [vmem:[%s3212_s25] ss:$0 sm:$0xff] }
 0x70d   : > { %v2535_v17 = vpack.i.bf16 %v1479_v24, %v1551_v26  ;;  %vm1619_vm7 = vcmask 785408  }
 0x70e   : > { %2531 = vrot.lane.b32.xlu0 %v2530_v16, %s2622_s21 }
 0x70f   : > { %2521 = vrot.lane.b32.xlu1 %v2520_v18, %s2620_s15 }
 0x713   : > { %2526 = vrot.lane.b32.xlu1 %v2525_v23, %s2626_s20 }
 0x717   : > { %2536 = vrot.lane.b32.xlu1 %v2535_v17, %s2620_s15 }
 0x77c   : > { %v2517_v28 = vpop.permute.xlu0 %2516 }
 0x77d   : > { %v2512_v29 = vpop.permute.xlu1 %2511  ;;  %v2519_v33 = vunpack.i.h.bf16 %v2517_v28  ;;  %v2518_v35 = vunpack.i.l.bf16 %v2517_v28 }
 0x77e   : > { %v2514_v30 = vunpack.i.h.bf16 %v2512_v29  ;;  %v2513_v32 = vunpack.i.l.bf16 %v2512_v29 }
 0x780   : > { %v1614_v36 = vsel %vm739_vm1, %v1436_v21, %v2514_v30  ;;  %v1622_v37 = vsel %vm739_vm1, %v2984_v34, %v2513_v32  ;;  %v2532_v44 = vpop.permute.xlu0 %2531 }
 0x781   : > { %v2522_v38 = vpop.permute.xlu1 %2521  ;;  %v1624_v15 = vsel %vm1616_vm6, %v1622_v37, %v2518_v35  ;;  %v1617_v4 = vsel %vm1616_vm6, %v1614_v36, %v2519_v33  ;;  %v2534_v49 = vunpack.i.h.bf16 %v2532_v44  ;;  %v2533_v50 = vunpack.i.l.bf16 %v2532_v44 }
 0x782   : > { %v2524_v39 = vunpack.i.h.bf16 %v2522_v38  ;;  %v2523_v7 = vunpack.i.l.bf16 %v2522_v38 }
 0x784   : > { %v1626_v41 = vsel %vm1619_vm7, %v1624_v15, %v2523_v7  ;;  %v1620_v42 = vsel %vm1619_vm7, %v1617_v4, %v2524_v39 }
 0x785   : > { %1704 = vmatprep.mubr.f32.mxu1 %v1626_v41  ;;  %v2527_v43 = vpop.permute.xlu1 %2526 }
 0x786   : > { %v2529_v45 = vunpack.i.h.bf16 %v2527_v43  ;;  %v2528_v46 = vunpack.i.l.bf16 %v2527_v43  ;;  %1705 = vmatmul.mubr.f32.vlgmr.msra.gmra.mxu1 %v1620_v42 }
 0x788   : > { %v1623_v47 = vsel %vm739_vm1, %v2998_v40, %v2528_v46  ;;  %v1615_v48 = vsel %vm739_vm1, %v3021_v56, %v2529_v45  ;;  %v1799_v56 = vld [vmem:[%s2803_s24 + $0x38] sm:$0xff]  ;;  %v2268_v45 = vld [vmem:[%s697_s29] ss:$0 sm:$0xff]  ;;  %s3213_s29 = sld [smem:[#allocation6_spill]] }
 0x789   : > { %v2537_v51 = vpop.permute.xlu1 %2536  ;;  %v1625_v54 = vsel %vm1616_vm6, %v1623_v47, %v2533_v50  ;;  %v1618_v55 = vsel %vm1616_vm6, %v1615_v48, %v2534_v49  ;;  %2430 = vmatprep.subr.mxu0 %v1799_v56  ;;  %v2269_v47 = vld [vmem:[%s700_s9] ss:$0 sm:$0xff] }
 0x78a   : > { %v2539_v52 = vunpack.i.h.bf16 %v2537_v51  ;;  %v2538_v53 = vunpack.i.l.bf16 %v2537_v51  ;;  %2431 = vmatpush3.msra.mxu0 %v1799_v56 }
 0x78b   : > { %2432 = vmatprep.subr.mxu0 %v1798_v59 }
 0x78c   : > { %v1627_v57 = vsel %vm1619_vm7, %v1625_v54, %v2538_v53  ;;  %v1621_v58 = vsel %vm1619_vm7, %v1618_v55, %v2539_v52  ;;  %2433 = vmatpush3.msra.mxu0 %v1798_v59 }
 0x78d   : > { %1709 = vmatprep.mubr.f32.mxu1 %v1627_v57  ;;  %2434 = vmatprep.subr.mxu0 %v1797_v60 }
 0x78e   : > { %1710 = vmatmul.mubr.f32.gmra.mxu1 %v1621_v58  ;;  %2435 = vmatpush3.msra.mxu0 %v1797_v60  ;;  %p2270_p13 = scmp.ne.s32.totalorder %s3213_s29, 1 }
 0x78f   : > { %2436 = vmatprep.subr.mxu0 %v1796_v61  ;;  %s3214_s9 = sld [smem:[#allocation20_spill]] (!%p2270_p13) }
 0x790   : > { %2437 = vmatpush3.msra.mxu0 %v1796_v61  ;;  %s3215_s17 = sld [smem:[#allocation21_spill]] (!%p2270_p13) }
 0x791   : > { %2438 = vmatprep.subr.mxu0 %v1795_v62 }
 0x792   : > { %2439 = vmatpush3.msra.mxu0 %v1795_v62 }
 0x793   : > { %2440 = vmatprep.subr.mxu0 %v1794_v63 }
 0x794   : > { %2441 = vmatpush3.msra.mxu0 %v1794_v63 }
 0x795   : > { %2442 = vmatprep.subr.mxu0 %v1793_v0 }
 0x796   : > { %2443 = vmatpush3.msra.mxu0 %v1793_v0 }
 0x797   : > { %2444 = vmatprep.subr.mxu0 %v1792_v1 }
 0x798   : > { %2445 = vmatpush3.msra.mxu0 %v1792_v1 }
 0x7c8   : > { %v2429_v3 = vpop.f32.mrf.mxu0 }
 0x7ca   : > { %v1781_v10 = vpop.f32.mrf.mxu0 }
 0x846   : > { %v2341_v2 = vpop.f32.mrf.mxu1 }
 0x848   : > { %v2342_v6 = vpop.f32.mrf.mxu1 }
 0x849   : > { %v2343_v8 = vadd.f32 %v2342_v6, %v2341_v2 }
 0x84b   : > { %v1707_v9 = vadd.f32 %v2343_v8, %v2262_v5 }
 0x84d   : > { %v1782_v11 = vadd.f32 %v1781_v10, %v1707_v9 }
 0x84e   : > { %v2344_v12 = vpop.f32.mrf.mxu1 }
 0x84f   : > { %v1790_v13 = vmax.f32 %v1782_v11, 0.0 }
 0x850   : > { %v2345_v14 = vpop.f32.mrf.mxu1 }
 0x851   : > { %v2346_v16 = vadd.f32 %v2345_v14, %v2344_v12  ;;  %2446 = vmatprep.mubr.msk.f32.mxu0 %vm1616_vm6, %v1790_v13 }
 0x853   : > { %v1712_v18 = vadd.f32 %v2346_v16, %v2262_v5 }
 0x855   : > { %v1787_v20 = vadd.f32 %v2429_v3, %v1712_v18 }
 0x857   : > { %v1791_v19 = vmax.f32 %v1787_v20, 0.0 }
 0x859   : > { %2447 = vmatmul.mubr.msk.f32.vlgmr.msra.gmra.mxu0 %vm1616_vm6, %v1791_v19 }
 0x919   : > { %v2448_v23 = vpop.f32.mrf.mxu0 }
 0x91a   : > { %v1885_v24 = vadd.f32 %v2448_v23, %v2265_v22 }
 0x91b   : > { %v1879_v26 = vpop.f32.mrf.mxu0 }
 0x91c   : > { %v1880_v17 = vadd.f32 %v2265_v22, %v1879_v26  ;;  %v1889_v27 = vadd.f32 %v1885_v24, %v2998_v40 }
 0x91e   : > { %v1895_v28 = vsel %vm739_vm1, %v1889_v27, 0.0  ;;  %v1888_v29 = vadd.f32 %v1880_v17, %v2984_v34 }
 0x91f   : > { %1896 = vadd.xlane.f32.xlu1 %v1895_v28 }
 0x920   : > { %v1892_v30 = vsel %vm739_vm1, %v1888_v29, 0.0 }
 0x921   : > { %1893 = vadd.xlane.f32.xlu0 %v1892_v30 }
 0x9a8   : > { %v1897_v32 = vpop.xlane.xlu1 %1896 }
 0x9a9   : > { %v1899_v21 = vmul.f32 0.03125, %v1897_v32 }
 0x9aa   : > { %v1894_v33 = vpop.xlane.xlu0 %1893 }
 0x9ab   : > { %v1898_v35 = vmul.f32 0.03125, %v1894_v33  ;;  %v1901_v36 = vsub.f32 %v1889_v27, %v1899_v21 }
 0x9ad   : > { %v1900_v37 = vsub.f32 %v1888_v29, %v1898_v35  ;;  %v1903_v40 = vmul.f32 %v1901_v36, %v1901_v36 }
 0x9af   : > { %v1902_v38 = vmul.f32 %v1900_v37, %v1900_v37  ;;  %v1907_v7 = vsel %vm739_vm1, %v1903_v40, 0.0 }
 0x9b1   : > { %v1904_v39 = vsel %vm739_vm1, %v1902_v38, 0.0 }
 0x9b2   : > { %1905 = vadd.xlane.f32.xlu0 %v1904_v39 }
 0x9b6   : > { %1908 = vadd.xlane.f32.xlu0 %v1907_v7 }
 0xa3b   : > { %v1906_v34 = vpop.xlane.xlu0 %1905 }
 0xa3c   : > { %v1910_v15 = vmul.f32 0.03125, %v1906_v34 }
 0xa3e   : > { %v1912_v4 = vadd.f32 1e-05, %v1910_v15 }
 0xa3f   : > { %v1909_v41 = vpop.xlane.xlu0 %1908 }
 0xa40   : > { %2560 = vrsqrt.f32 %v1912_v4  ;;  %v1911_v42 = vmul.f32 0.03125, %v1909_v41 }
 0xa42   : > { %v1913_v43 = vadd.f32 1e-05, %v1911_v42 }
 0xa44   : > { %2562 = vrsqrt.f32 %v1913_v43 }
 0xa4d   : > { %v2561_v44 = vpop.eup %2560 }
 0xa4e   : > { %v1916_v46 = vmul.f32 %v2561_v44, %v1900_v37 }
 0xa50   : > { %v1924_v48 = vmul.f32 %v2268_v45, %v1916_v46 }
 0xa51   : > { %v2563_v49 = vpop.eup %2562 }
 0xa52   : > { %v1932_v50 = vadd.f32 %v2269_v47, %v1924_v48  ;;  %v1917_v51 = vmul.f32 %v2563_v49, %v1901_v36 }
 0xa54   : > { %v1934_v52 = vmul.f32 %v2969_v25, %v1932_v50  ;;  %v1925_v53 = vmul.f32 %v2268_v45, %v1917_v51 }
 0xa56   : > { %1936 = vst.msk [vmem:[#allocation2] sm:$0xff] %vm739_vm1, %v1934_v52  ;;  %v1933_v54 = vadd.f32 %v2269_v47, %v1925_v53  ;;  %1941 = sbr.rel (%p2270_p13) target bundleno = 2858 (0xb2a), region = 88 }
 0xa58   : > { %v1935_v55 = vmul.f32 %v2975_v31, %v1933_v54 }
 0xa5a   : > { %1937 = vst.msk [vmem:[#allocation2 + $0x8] sm:$0xff] %vm739_vm1, %v1935_v55 }
 0xa5b   : > { %v1945_v57 = vld [vmem:[%s3214_s9 + $0x18] sm:$0xff]  ;;  %v1944_v58 = vld [vmem:[%s3214_s9 + $0x10] sm:$0xff]  ;;  %2457 = vmatprep.mubr.msk.f32.mxu0 %vm739_vm1, %v1934_v52  ;;  %v1943_v25 = vld [vmem:[%s3214_s9 + $0x8] sm:$0xff]  ;;  %vm2034_vm8 = vcmask 64512  }
 0xa5c   : > { %2449 = vmatprep.subr.mxu0 %v1945_v57  ;;  %v1942_v31 = vld [vmem:[%s3214_s9] sm:$0xff] }
 0xa5d   : > { %2450 = vmatpush3.msra.mxu0 %v1945_v57  ;;  %v2271_v56 = vld [vmem:[%s3215_s17] ss:$0 sm:$0xff] }
 0xa5e   : > { %2451 = vmatprep.subr.mxu0 %v1944_v58 }
 0xa5f   : > { %2452 = vmatpush3.msra.mxu0 %v1944_v58 }
 0xa60   : > { %2453 = vmatprep.subr.mxu0 %v1943_v25 }
 0xa61   : > { %2454 = vmatpush3.msra.mxu0 %v1943_v25 }
 0xa62   : > { %2455 = vmatprep.subr.mxu0 %v1942_v31 }
 0xa63   : > { %2456 = vmatpush3.msra.mxu0 %v1942_v31 }
 0xa64   : > { %2458 = vmatmul.mubr.msk.f32.vlgmr.msra.gmra.mxu0 %vm739_vm1, %v1935_v55 }
 0xb24   : > { %v2459_v59 = vpop.f32.mrf.mxu0 }
 0xb25   : > { %v2031_v60 = vadd.f32 %v2459_v59, %v2271_v56 }
 0xb26   : > { %v2025_v61 = vpop.f32.mrf.mxu0 }
 0xb27   : > { %2036 = vst.msk [vmem:[%s2816_s4 + $0x8] sm:$0xff] %vm2034_vm8, %v2031_v60  ;;  %v2026_v62 = vadd.f32 %v2271_v56, %v2025_v61 }
 0xb29   : > { %2035 = vst.msk [vmem:[%s2816_s4] sm:$0xff] %vm2034_vm8, %v2026_v62 }
 0xb2a PF: > { %s3216_s1 = sld [smem:[#allocation10_spill]] }
 0xb2b   : > { %s3217_s26 = sld [smem:[#allocation8_spill]] }
 0xb2c   : > { %s3218_s27 = sld [smem:[#allocation9_spill]] }
 0xb2d   : > { %s3219_s28 = sld [smem:[#allocation11_spill]] }
 0xb2e   : > { %s3220_s29 = sld [smem:[#allocation12_spill]] }
 0xb30   : > { %s32_s30 = sadd.s32 1, %s3216_s1  }
 0xb31   : > { %p29_p0 = scmp.ge.s32.totalorder %s32_s30, 6  }
 0xb33   :  { %31 = sbr.rel (!%p29_p0) target bundleno = 32 (0x20), region = 154 }

</bundles_post_ra>
